<compile_context>
chip_gen: v7x
topology: tpu7x:2x2x1
jax: 0.10.0
libtpu: 0.0.40
codegen_flags: <defaults>
</compile_context>

<pallas_src>
import functools

import jax
import jax.numpy as jnp
from jax import lax
from jax.experimental import pallas as pl
from jax.experimental.pallas import tpu as pltpu

_BN_EPS = 1e-5                 # nn.BatchNorm2d default
_FUSED_MAX_PACKED_ROWS = 4096  # fused single-call path while the slab stays well under VMEM
_TARGET_TILE_ROWS = 2048       # fallback: packed (lane-dense, 128-wide) rows per tile


# ---------------------------------------------------------------------------
# Kernel helpers
# ---------------------------------------------------------------------------
def _lane_block_fold(stats, block, pack):
    """stats: (rows, pack*block) f32 lane-wise sums.  Sum the `pack` lane blocks of width
    `block` and replicate the result into every block so it can be applied lane-wise to
    the packed activations.  Implemented as a tiny 0/1 matmul (MXU) - shape-safe for any
    packed width (pltpu.roll along lanes would also work when the width is 128)."""
    if pack == 1:
        return stats
    L = pack * block
    i = lax.broadcasted_iota(jnp.int32, (L, L), 0) % block
    j = lax.broadcasted_iota(jnp.int32, (L, L), 1) % block
    fold = (i == j).astype(jnp.float32)
    return jnp.dot(stats, fold, preferred_element_type=jnp.float32)


# ---------------------------------------------------------------------------
# Fused single-call kernel (primary path)
# ---------------------------------------------------------------------------
def _fused_sa_kernel(x_ref, w1_ref, w2_ref, g1_ref, b1_ref, g2_ref, b2_ref, out_ref,
                     *, nsample, pack, c1, c2, m_real):
    inv_m = 1.0 / m_real

    def bn_relu(h, block, g, b):
        # Training-mode BatchNorm (biased variance) + ReLU, stats over all real rows.
        s = jnp.concatenate([jnp.sum(h, axis=0, keepdims=True),
                             jnp.sum(h * h, axis=0, keepdims=True)], axis=0)     # (2, L)
        s = _lane_block_fold(s, block, pack)
        mean = s[0:1] * inv_m
        var = jnp.maximum(s[1:2] * inv_m - mean * mean, 0.0)
        scale = g * lax.rsqrt(var + _BN_EPS)     # rsqrt -> EUP slot
        shift = b - mean * scale
        return jnp.maximum(h * scale + shift, 0.0)

    h1 = jnp.dot(x_ref[...], w1_ref[...], preferred_element_type=jnp.float32)   # (Mp, L1)
    a1 = bn_relu(h1, c1, g1_ref[...], b1_ref[...])
    h2 = jnp.dot(a1.astype(w2_ref.dtype), w2_ref[...],
                 preferred_element_type=jnp.float32)                             # (Mp, L2)
    a2 = bn_relu(h2, c2, g2_ref[...], b2_ref[...])

    # Rows are ordered (group-quad, k): each packed group's K neighbors are contiguous,
    # so the pool is a reduction over the middle axis (minor lane dim preserved).
    n_gq, L2 = out_ref.shape
    out_ref[...] = jnp.max(a2.reshape(n_gq, nsample, L2), axis=1)


# ---------------------------------------------------------------------------
# Tiled two-pass fallback kernels (only used when the slab is too big to fuse)
# ---------------------------------------------------------------------------
def _tiled_stats1_kernel(x_ref, w1_ref, stat_ref):
    """Layer-1 pre-activation partial batch statistics for one row tile."""
    h = jnp.dot(x_ref[...], w1_ref[...], preferred_element_type=jnp.float32)
    s = jnp.sum(h, axis=0, keepdims=True)
    q = jnp.sum(h * h, axis=0, keepdims=True)
    stat_ref[...] = jnp.concatenate([s, q], axis=0)[None]        # (1, 2, L1) - one store


def _tiled_fwd_kernel(x_ref, w1_ref, w2_ref, s1_ref, sh1_ref,
                      pmax_ref, pmin_ref, stat_ref, *, nsample, rows_real):
    """Fused BN1+ReLU, layer-2 matmul, masked BN2 partial stats, neighbor max/min pool."""
    h1 = jnp.dot(x_ref[...], w1_ref[...], preferred_element_type=jnp.float32)
    a1 = jnp.maximum(h1 * s1_ref[...] + sh1_ref[...], 0.0)
    h2 = jnp.dot(a1.astype(w2_ref.dtype), w2_ref[...], preferred_element_type=jnp.float32)

    trow, L2 = h2.shape
    # Mask rows of padded (all-zero) groups so BN2 statistics stay exact.
    rid = pl.program_id(0) * trow + lax.broadcasted_iota(jnp.int32, (trow, 1), 0)
    h2m = h2 * (rid < rows_real).astype(jnp.float32)
    s = jnp.sum(h2m, axis=0, keepdims=True)
    q = jnp.sum(h2m * h2m, axis=0, keepdims=True)
    stat_ref[...] = jnp.concatenate([s, q], axis=0)[None]        # (1, 2, L2)

    gq = pmax_ref.shape[0]
    hg = h2.reshape(gq, nsample, L2)
    pmax_ref[...] = jnp.max(hg, axis=1)      # lane-dense (gq_tile, 128) blocks
    pmin_ref[...] = jnp.min(hg, axis=1)      # needed for the BN2/ReLU-pool commutation


def _tiled_two_pass(xb, w1p, w2p, params, *, nsample, pack, c1, c2, n_gq, m_real):
    _, g1, be1, _, g2, be2 = params
    Mp, Lin = xb.shape
    L1, L2 = pack * c1, pack * c2

    gq_tile = max(8, ((_TARGET_TILE_ROWS // nsample) // 8) * 8)
    num_tiles = int(pl.cdiv(n_gq, gq_tile))
    if num_tiles > 1 and num_tiles % 2 == 1:
        num_tiles += 1                          # even split across v7x's 2 TensorCores
    n_gq_pad = num_tiles * gq_tile
    trow = gq_tile * nsample
    if n_gq_pad != n_gq:                        # pad with all-zero groups (masked above)
        xb = jnp.pad(xb, ((0, (n_gq_pad - n_gq) * nsample), (0, 0)))

    cparams = pltpu.CompilerParams(dimension_semantics=("parallel",))

    # ---------------- pass 1: layer-1 batch statistics ----------------
    stats1 = pl.pallas_call(
        _tiled_stats1_kernel,
        grid=(num_tiles,),
        in_specs=[pl.BlockSpec((trow, Lin), lambda i: (i, 0)),
                  pl.BlockSpec((Lin, L1), lambda i: (0, 0))],
        out_specs=pl.BlockSpec((1, 2, L1), lambda i: (i, 0, 0)),
        out_shape=jax.ShapeDtypeStruct((num_tiles, 2, L1), jnp.float32),
        compiler_params=cparams,
    )(xb, w1p)

    tot1 = jnp.sum(stats1, axis=0).reshape(2, pack, c1).sum(axis=1)     # fold lane blocks
    mean1 = tot1[0] / m_real
    var1 = jnp.maximum(tot1[1] / m_real - mean1 * mean1, 0.0)
    scale1 = g1 * lax.rsqrt(var1 + _BN_EPS)
    shift1 = be1 - mean1 * scale1
    scale1t = jnp.tile(scale1, pack).reshape(1, L1)
    shift1t = jnp.tile(shift1, pack).reshape(1, L1)

    # ---- pass 2: BN1+ReLU, layer 2, masked BN2 stats, neighbor max/min pool ----
    kernel2 = functools.partial(_tiled_fwd_kernel, nsample=nsample,
                                rows_real=n_gq * nsample)
    pmax, pmin, stats2 = pl.pallas_call(
        kernel2,
        grid=(num_tiles,),
        in_specs=[pl.BlockSpec((trow, Lin), lambda i: (i, 0)),
                  pl.BlockSpec((Lin, L1), lambda i: (0, 0)),
                  pl.BlockSpec((L1, L2), lambda i: (0, 0)),
                  pl.BlockSpec((1, L1), lambda i: (0, 0)),
                  pl.BlockSpec((1, L1), lambda i: (0, 0))],
        out_specs=[pl.BlockSpec((gq_tile, L2), lambda i: (i, 0)),
                   pl.BlockSpec((gq_tile, L2), lambda i: (i, 0)),
                   pl.BlockSpec((1, 2, L2), lambda i: (i, 0, 0))],
        out_shape=(jax.ShapeDtypeStruct((n_gq_pad, L2), jnp.float32),
                   jax.ShapeDtypeStruct((n_gq_pad, L2), jnp.float32),
                   jax.ShapeDtypeStruct((num_tiles, 2, L2), jnp.float32)),
        compiler_params=cparams,
    )(xb, w1p, w2p, scale1t, shift1t)

    tot2 = jnp.sum(stats2, axis=0).reshape(2, pack, c2).sum(axis=1)
    mean2 = tot2[0] / m_real
    var2 = jnp.maximum(tot2[1] / m_real - mean2 * mean2, 0.0)
    scale2 = g2 * lax.rsqrt(var2 + _BN_EPS)
    shift2 = be2 - mean2 * scale2
    scale2t = jnp.tile(scale2, pack).reshape(1, L2)
    shift2t = jnp.tile(shift2, pack).reshape(1, L2)

    # max_k relu(a*h + b) = relu(a * (max_k h if a>=0 else min_k h) + b)
    pooled = jnp.where(scale2t >= 0.0, pmax[:n_gq], pmin[:n_gq])
    return jnp.maximum(pooled * scale2t + shift2t, 0.0)


# ---------------------------------------------------------------------------
# Wrapper: packing, block-diagonal weights, dispatch
# ---------------------------------------------------------------------------
def _pick_pack(S, c_in, c2):
    """Lane-packing factor: number of consecutive groups packed into the lane axis so the
    matmuls/outputs become K/lane-dense (target K >= 64, output width >= 128)."""
    pack = 1
    while (pack < 8 and (pack * c2 < 128 or pack * c_in < 64)
           and S % (pack * 2) == 0):
        pack *= 2
    return pack


def _sa_mlp_maxpool(grouped, params):
    """grouped: (B, S, K, C) grouped point features -> (B, S, c2) pooled features."""
    w1, g1, be1, w2, g2, be2 = params
    B, S, K, C = grouped.shape
    c1, c2 = w1.shape[1], w2.shape[1]
    ngroups = B * S
    m_real = ngroups * K

    pack = _pick_pack(S, C, c2)
    Sq = S // pack
    n_gq = ngroups // pack
    Mp = n_gq * K
    Lin, L1, L2 = pack * C, pack * c1, pack * c2

    # Packed layout: row (b, sq, k), lanes (p, c) -> `pack` consecutive groups share a
    # row's lane axis.  Wrapper-side reshape/transpose only (layout plumbing).
    x = grouped.reshape(B, Sq, pack, K, C).transpose(0, 1, 3, 2, 4).reshape(Mp, Lin)
    xb = x.astype(jnp.bfloat16)                     # bf16 MXU inputs, f32 accumulation

    eye = jnp.eye(pack, dtype=jnp.float32)
    w1p = jnp.kron(eye, w1).astype(jnp.bfloat16)    # block-diagonal (Lin, L1)
    w2p = jnp.kron(eye, w2).astype(jnp.bfloat16)    # block-diagonal (L1, L2)
    g1t = jnp.tile(g1, pack).reshape(1, L1)
    b1t = jnp.tile(be1, pack).reshape(1, L1)
    g2t = jnp.tile(g2, pack).reshape(1, L2)
    b2t = jnp.tile(be2, pack).reshape(1, L2)

    if Mp <= _FUSED_MAX_PACKED_ROWS:
        # Single fused call.  (Gives up the v7x 2nd TensorCore, but at this size launch +
        # per-step overhead dominates; large inputs take the tiled parallel fallback.)
        kernel = functools.partial(_fused_sa_kernel, nsample=K, pack=pack,
                                   c1=c1, c2=c2, m_real=m_real)
        out_packed = pl.pallas_call(
            kernel,
            grid=(1,),
            in_specs=[
                pl.BlockSpec((Mp, Lin), lambda i: (0, 0)),
                pl.BlockSpec((Lin, L1), lambda i: (0, 0)),
                pl.BlockSpec((L1, L2), lambda i: (0, 0)),
                pl.BlockSpec((1, L1), lambda i: (0, 0)),
                pl.BlockSpec((1, L1), lambda i: (0, 0)),
                pl.BlockSpec((1, L2), lambda i: (0, 0)),
                pl.BlockSpec((1, L2), lambda i: (0, 0)),
            ],
            out_specs=pl.BlockSpec((n_gq, L2), lambda i: (0, 0)),
            out_shape=jax.ShapeDtypeStruct((n_gq, L2), jnp.float32),
        )(xb, w1p, w2p, g1t, b1t, g2t, b2t)
    else:
        out_packed = _tiled_two_pass(xb, w1p, w2p, params, nsample=K, pack=pack,
                                     c1=c1, c2=c2, n_gq=n_gq, m_real=m_real)

    # Unpack the lane-packed groups (cheap XLA reshape; row-major, no transpose).
    return out_packed.reshape(B, Sq, pack, c2).reshape(B, S, c2)


# ---------------------------------------------------------------------------
# Plain-JAX glue: FPS, kNN, gathers (index manipulation, not the compute hot path)
# ---------------------------------------------------------------------------
def _index_points(points, idx):
    """points: (B, N, C); idx: (B, ...) int -> (B, ..., C)."""
    B = points.shape[0]
    batch_idx = jnp.arange(B).reshape((B,) + (1,) * (idx.ndim - 1))
    return points[batch_idx, idx]


def _square_distance(src, dst):
    """src: (B, S, 3), dst: (B, N, 3) -> (B, S, N)."""
    return jnp.sum((src[:, :, None, :] - dst[:, None, :, :]) ** 2, axis=-1)


def _farthest_point_sample(xyz, npoint):
    # TODO(synk): PyTorch reference seeds FPS with torch.randint; we start deterministically at 0.
    B, N, _ = xyz.shape

    def body(i, state):
        dist_min, farthest, centroids = state
        centroids = centroids.at[:, i].set(farthest)
        centroid = xyz[jnp.arange(B), farthest][:, None, :]        # (B, 1, 3)
        dist = jnp.sum((xyz - centroid) ** 2, axis=-1)             # (B, N)
        dist_min = jnp.minimum(dist_min, dist)
        farthest = jnp.argmax(dist_min, axis=-1).astype(jnp.int32)
        return dist_min, farthest, centroids

    init = (jnp.full((B, N), 1e10, jnp.float32),
            jnp.zeros((B,), jnp.int32),
            jnp.zeros((B, npoint), jnp.int32))
    _, _, centroids = lax.fori_loop(0, npoint, body, init)
    return centroids


def _group(xyz, points, *, npoint, nsample):
    fps_idx = _farthest_point_sample(xyz, npoint)                  # (B, S)
    new_xyz = _index_points(xyz, fps_idx)                          # (B, S, 3)
    # kNN via top_k on negated squared distances (O(N) vs a full argsort).
    _, idx = lax.top_k(-_square_distance(new_xyz, xyz), nsample)   # (B, S, K)
    grouped_xyz_norm = _index_points(xyz, idx) - new_xyz[:, :, None, :]
    grouped_points = _index_points(points, idx)                    # (B, S, K, D)
    grouped = jnp.concatenate([grouped_xyz_norm, grouped_points], axis=-1)
    return new_xyz, grouped


def transition_down_forward(xyz, points, params, *, npoint, nsample):
    """Matches TransitionDown.forward: returns (new_xyz [B,S,3], new_points [B,S,C_out])."""
    new_xyz, grouped = _group(xyz, points, npoint=npoint, nsample=nsample)
    return new_xyz, _sa_mlp_maxpool(grouped, params)


def _reference_forward(xyz, points, params, *, npoint, nsample):
    """Pure-JAX f32 reference (training-mode BN) for the numerical sanity check."""
    w1, g1, be1, w2, g2, be2 = params
    new_xyz, grouped = _group(xyz, points, npoint=npoint, nsample=nsample)
    B, S, K, C = grouped.shape
    x = grouped.reshape(B * S * K, C)

    def bn_relu(h, g, b):
        mean = jnp.mean(h, axis=0)
        var = jnp.mean((h - mean) ** 2, axis=0)
        return jnp.maximum((h - mean) * lax.rsqrt(var + _BN_EPS) * g + b, 0.0)

    a1 = bn_relu(x @ w1, g1, be1)
    a2 = bn_relu(a1 @ w2, g2, be2)
    return new_xyz, jnp.max(a2.reshape(B, S, K, -1), axis=2)


# ---------------------------------------------------------------------------
# Deterministic parameter construction (Conv2d 1x1 weights, BN gamma/beta)
# ---------------------------------------------------------------------------
def make_params(key, channels):
    c_in, c1, c2 = channels
    k1, k2 = jax.random.split(key, 2)
    w1 = jax.random.normal(k1, (c_in, c1), jnp.float32) * 0.1
    w2 = jax.random.normal(k2, (c1, c2), jnp.float32) * 0.1
    # Conv biases omitted: a bias immediately followed by training-mode BatchNorm is
    # exactly cancelled by the mean subtraction (dead work in the PyTorch reference too).
    g1, be1 = jnp.ones((c1,), jnp.float32), jnp.zeros((c1,), jnp.float32)
    g2, be2 = jnp.ones((c2,), jnp.float32), jnp.zeros((c2,), jnp.float32)
    return (w1, g1, be1, w2, g2, be2)


if __name__ == "__main__":
    # TransitionDown(k=64, nneighbor=16, channels=[16, 32, 32]); point feature dim D = 16 - 3
    B, N, D = 2, 256, 13
    npoint, nneighbor = 64, 16
    channels = [D + 3, 32, 32]

    key = jax.random.PRNGKey(0)
    k_xyz, k_pts, k_par = jax.random.split(key, 3)
    xyz = jax.random.normal(k_xyz, (B, N, 3), jnp.float32)
    points = jax.random.normal(k_pts, (B, N, D), jnp.float32)
    params = make_params(k_par, channels)

    fwd = jax.jit(functools.partial(transition_down_forward,
                                    npoint=npoint, nsample=nneighbor))
    new_xyz, new_points = fwd(xyz, points, params)
    jax.block_until_ready((new_xyz, new_points))

    assert new_xyz.shape == (B, npoint, 3)
    assert new_points.shape == (B, npoint, channels[-1])

    # Numerical sanity check vs. a pure-JAX f32 reference (loose tol: bf16 MXU inputs).
    _, ref_points = _reference_forward(xyz, points, params,
                                       npoint=npoint, nsample=nneighbor)
    err = float(jnp.max(jnp.abs(new_points - ref_points)))
    assert err < 0.1, f"max abs error vs f32 reference: {err}"
    print("KERNEL_OK")
</pallas_src>

<mosaic_0001>
module attributes {stable_mosaic.version = 11 : i64} {
  func.func @_fused_sa_kernel(%arg0: i32, %arg1: memref<512x64xbf16, #tpu.memory_space<vmem>>, %arg2: memref<64x128xbf16, #tpu.memory_space<vmem>>, %arg3: memref<128x128xbf16, #tpu.memory_space<vmem>>, %arg4: memref<1x128xf32, #tpu.memory_space<vmem>>, %arg5: memref<1x128xf32, #tpu.memory_space<vmem>>, %arg6: memref<1x128xf32, #tpu.memory_space<vmem>>, %arg7: memref<1x128xf32, #tpu.memory_space<vmem>>, %arg8: memref<32x128xf32, #tpu.memory_space<vmem>>) attributes {dimension_semantics = [#tpu.dimension_semantics<arbitrary>], iteration_bounds = array<i64: 1>, scalar_prefetch = 0 : i64, scratch_operands = 0 : i64, tpu.core_type = #tpu.core_type<tc>, window_params = [{pipeline_mode = #tpu.pipeline_mode<synchronous>, transform_indices = @transform_0, window_bounds = array<i64: 512, 64>}, {pipeline_mode = #tpu.pipeline_mode<synchronous>, transform_indices = @transform_1, window_bounds = array<i64: 64, 128>}, {pipeline_mode = #tpu.pipeline_mode<synchronous>, transform_indices = @transform_2, window_bounds = array<i64: 128, 128>}, {pipeline_mode = #tpu.pipeline_mode<synchronous>, transform_indices = @transform_3, window_bounds = array<i64: 1, 128>}, {pipeline_mode = #tpu.pipeline_mode<synchronous>, transform_indices = @transform_4, window_bounds = array<i64: 1, 128>}, {pipeline_mode = #tpu.pipeline_mode<synchronous>, transform_indices = @transform_5, window_bounds = array<i64: 1, 128>}, {pipeline_mode = #tpu.pipeline_mode<synchronous>, transform_indices = @transform_6, window_bounds = array<i64: 1, 128>}, {pipeline_mode = #tpu.pipeline_mode<synchronous>, transform_indices = @transform_7, window_bounds = array<i64: 32, 128>}]} {
    %c0 = arith.constant 0 : index
    %c0_0 = arith.constant 0 : index
    %0 = vector.load %arg1[%c0, %c0_0] : memref<512x64xbf16, #tpu.memory_space<vmem>>, vector<512x64xbf16>
    %c0_1 = arith.constant 0 : index
    %c0_2 = arith.constant 0 : index
    %1 = vector.load %arg2[%c0_1, %c0_2] : memref<64x128xbf16, #tpu.memory_space<vmem>>, vector<64x128xbf16>
    %cst = arith.constant dense<0.000000e+00> : vector<512x128xf32>
    %2 = tpu.matmul %0, %1, %cst {dimension_numbers = #tpu.dot_dimension_numbers<[1], [0], [0], [1], [0, 0, 1, 1], [], []>} : vector<512x64xbf16>, vector<64x128xbf16>, vector<512x128xf32> -> vector<512x128xf32>
    %c0_3 = arith.constant 0 : index
    %c0_4 = arith.constant 0 : index
    %3 = vector.load %arg4[%c0_3, %c0_4] : memref<1x128xf32, #tpu.memory_space<vmem>>, vector<1x128xf32>
    %c0_5 = arith.constant 0 : index
    %c0_6 = arith.constant 0 : index
    %4 = vector.load %arg5[%c0_5, %c0_6] : memref<1x128xf32, #tpu.memory_space<vmem>>, vector<1x128xf32>
    %cst_7 = arith.constant dense<0.000000e+00> : vector<128xf32>
    %5 = vector.multi_reduction <add>, %2, %cst_7 [0] : vector<512x128xf32> to vector<128xf32>
    %6 = vector.shape_cast %5 : vector<128xf32> to vector<1x128xf32>
    %7 = arith.mulf %2, %2 : vector<512x128xf32>
    %cst_8 = arith.constant dense<0.000000e+00> : vector<128xf32>
    %8 = vector.multi_reduction <add>, %7, %cst_8 [0] : vector<512x128xf32> to vector<128xf32>
    %9 = vector.shape_cast %8 : vector<128xf32> to vector<1x128xf32>
    %10 = tpu.concatenate %6, %9 in 0 : vector<1x128xf32>, vector<1x128xf32> -> vector<2x128xf32>
    %11 = tpu.iota {dimensions = array<i32: 0>} : vector<128x128xi32>
    %c32_i32 = arith.constant 32 : i32
    %c0_i32 = arith.constant 0 : i32
    %12 = arith.cmpi eq, %c32_i32, %c0_i32 : i32
    %c1_i32 = arith.constant 1 : i32
    %13 = arith.select %12, %c1_i32, %c32_i32 : i32
    %14 = vector.broadcast %13 : i32 to vector<128x128xi32>
    %15 = arith.remsi %11, %14 : vector<128x128xi32>
    %c0_i32_9 = arith.constant 0 : i32
    %16 = vector.broadcast %c0_i32_9 : i32 to vector<128x128xi32>
    %17 = arith.cmpi ne, %15, %16 : vector<128x128xi32>
    %c0_i32_10 = arith.constant 0 : i32
    %18 = vector.broadcast %c0_i32_10 : i32 to vector<128x128xi32>
    %19 = arith.cmpi slt, %15, %18 : vector<128x128xi32>
    %c0_i32_11 = arith.constant 0 : i32
    %20 = arith.cmpi slt, %13, %c0_i32_11 : i32
    %21 = vector.broadcast %20 : i1 to vector<128x128xi1>
    %22 = vector.broadcast %21 : vector<128x128xi1> to vector<128x128xi1>
    %23 = arith.xori %19, %22 : vector<128x128xi1>
    %24 = arith.andi %23, %17 : vector<128x128xi1>
    %25 = vector.broadcast %13 : i32 to vector<128x128xi32>
    %26 = arith.addi %15, %25 : vector<128x128xi32>
    %27 = arith.select %24, %26, %15 : vector<128x128xi1>, vector<128x128xi32>
    %28 = tpu.iota {dimensions = array<i32: 1>} : vector<128x128xi32>
    %c32_i32_12 = arith.constant 32 : i32
    %c0_i32_13 = arith.constant 0 : i32
    %29 = arith.cmpi eq, %c32_i32_12, %c0_i32_13 : i32
    %c1_i32_14 = arith.constant 1 : i32
    %30 = arith.select %29, %c1_i32_14, %c32_i32_12 : i32
    %31 = vector.broadcast %30 : i32 to vector<128x128xi32>
    %32 = arith.remsi %28, %31 : vector<128x128xi32>
    %c0_i32_15 = arith.constant 0 : i32
    %33 = vector.broadcast %c0_i32_15 : i32 to vector<128x128xi32>
    %34 = arith.cmpi ne, %32, %33 : vector<128x128xi32>
    %c0_i32_16 = arith.constant 0 : i32
    %35 = vector.broadcast %c0_i32_16 : i32 to vector<128x128xi32>
    %36 = arith.cmpi slt, %32, %35 : vector<128x128xi32>
    %c0_i32_17 = arith.constant 0 : i32
    %37 = arith.cmpi slt, %30, %c0_i32_17 : i32
    %38 = vector.broadcast %37 : i1 to vector<128x128xi1>
    %39 = vector.broadcast %38 : vector<128x128xi1> to vector<128x128xi1>
    %40 = arith.xori %36, %39 : vector<128x128xi1>
    %41 = arith.andi %40, %34 : vector<128x128xi1>
    %42 = vector.broadcast %30 : i32 to vector<128x128xi32>
    %43 = arith.addi %32, %42 : vector<128x128xi32>
    %44 = arith.select %41, %43, %32 : vector<128x128xi1>, vector<128x128xi32>
    %45 = arith.cmpi eq, %27, %44 : vector<128x128xi32>
    %46 = arith.extui %45 : vector<128x128xi1> to vector<128x128xi32>
    %47 = arith.sitofp %46 : vector<128x128xi32> to vector<128x128xf32>
    %cst_18 = arith.constant dense<0.000000e+00> : vector<2x128xf32>
    %48 = tpu.matmul %10, %47, %cst_18 {dimension_numbers = #tpu.dot_dimension_numbers<[1], [0], [0], [1], [0, 0, 1, 1], [], []>} : vector<2x128xf32>, vector<128x128xf32>, vector<2x128xf32> -> vector<2x128xf32>
    %49 = vector.extract_strided_slice %48 {offsets = [0, 0], sizes = [1, 128], strides = [1, 1]} : vector<2x128xf32> to vector<1x128xf32>
    %cst_19 = arith.constant 4.8828125E-4 : f32
    %50 = vector.broadcast %cst_19 : f32 to vector<1x128xf32>
    %51 = arith.mulf %49, %50 : vector<1x128xf32>
    %52 = vector.extract_strided_slice %48 {offsets = [1, 0], sizes = [1, 128], strides = [1, 1]} : vector<2x128xf32> to vector<1x128xf32>
    %cst_20 = arith.constant 4.8828125E-4 : f32
    %53 = vector.broadcast %cst_20 : f32 to vector<1x128xf32>
    %54 = arith.mulf %52, %53 : vector<1x128xf32>
    %55 = arith.mulf %51, %51 : vector<1x128xf32>
    %56 = arith.subf %54, %55 : vector<1x128xf32>
    %cst_21 = arith.constant 0.000000e+00 : f32
    %57 = vector.broadcast %cst_21 : f32 to vector<1x128xf32>
    %58 = arith.maximumf %56, %57 : vector<1x128xf32>
    %cst_22 = arith.constant 9.99999974E-6 : f32
    %59 = vector.broadcast %cst_22 : f32 to vector<1x128xf32>
    %60 = arith.addf %58, %59 : vector<1x128xf32>
    %61 = math.rsqrt %60 : vector<1x128xf32>
    %62 = arith.mulf %3, %61 : vector<1x128xf32>
    %63 = arith.mulf %51, %62 : vector<1x128xf32>
    %64 = arith.subf %4, %63 : vector<1x128xf32>
    %65 = vector.broadcast %62 : vector<1x128xf32> to vector<512x128xf32>
    %66 = arith.mulf %2, %65 : vector<512x128xf32>
    %67 = vector.broadcast %64 : vector<1x128xf32> to vector<512x128xf32>
    %68 = arith.addf %66, %67 : vector<512x128xf32>
    %cst_23 = arith.constant 0.000000e+00 : f32
    %69 = vector.broadcast %cst_23 : f32 to vector<512x128xf32>
    %70 = arith.maximumf %68, %69 : vector<512x128xf32>
    %71 = arith.truncf %70 : vector<512x128xf32> to vector<512x128xbf16>
    %c0_24 = arith.constant 0 : index
    %c0_25 = arith.constant 0 : index
    %72 = vector.load %arg3[%c0_24, %c0_25] : memref<128x128xbf16, #tpu.memory_space<vmem>>, vector<128x128xbf16>
    %cst_26 = arith.constant dense<0.000000e+00> : vector<512x128xf32>
    %73 = tpu.matmul %71, %72, %cst_26 {dimension_numbers = #tpu.dot_dimension_numbers<[1], [0], [0], [1], [0, 0, 1, 1], [], []>} : vector<512x128xbf16>, vector<128x128xbf16>, vector<512x128xf32> -> vector<512x128xf32>
    %c0_27 = arith.constant 0 : index
    %c0_28 = arith.constant 0 : index
    %74 = vector.load %arg6[%c0_27, %c0_28] : memref<1x128xf32, #tpu.memory_space<vmem>>, vector<1x128xf32>
    %c0_29 = arith.constant 0 : index
    %c0_30 = arith.constant 0 : index
    %75 = vector.load %arg7[%c0_29, %c0_30] : memref<1x128xf32, #tpu.memory_space<vmem>>, vector<1x128xf32>
    %cst_31 = arith.constant dense<0.000000e+00> : vector<128xf32>
    %76 = vector.multi_reduction <add>, %73, %cst_31 [0] : vector<512x128xf32> to vector<128xf32>
    %77 = vector.shape_cast %76 : vector<128xf32> to vector<1x128xf32>
    %78 = arith.mulf %73, %73 : vector<512x128xf32>
    %cst_32 = arith.constant dense<0.000000e+00> : vector<128xf32>
    %79 = vector.multi_reduction <add>, %78, %cst_32 [0] : vector<512x128xf32> to vector<128xf32>
    %80 = vector.shape_cast %79 : vector<128xf32> to vector<1x128xf32>
    %81 = tpu.concatenate %77, %80 in 0 : vector<1x128xf32>, vector<1x128xf32> -> vector<2x128xf32>
    %82 = tpu.iota {dimensions = array<i32: 0>} : vector<128x128xi32>
    %c32_i32_33 = arith.constant 32 : i32
    %c0_i32_34 = arith.constant 0 : i32
    %83 = arith.cmpi eq, %c32_i32_33, %c0_i32_34 : i32
    %c1_i32_35 = arith.constant 1 : i32
    %84 = arith.select %83, %c1_i32_35, %c32_i32_33 : i32
    %85 = vector.broadcast %84 : i32 to vector<128x128xi32>
    %86 = arith.remsi %82, %85 : vector<128x128xi32>
    %c0_i32_36 = arith.constant 0 : i32
    %87 = vector.broadcast %c0_i32_36 : i32 to vector<128x128xi32>
    %88 = arith.cmpi ne, %86, %87 : vector<128x128xi32>
    %c0_i32_37 = arith.constant 0 : i32
    %89 = vector.broadcast %c0_i32_37 : i32 to vector<128x128xi32>
    %90 = arith.cmpi slt, %86, %89 : vector<128x128xi32>
    %c0_i32_38 = arith.constant 0 : i32
    %91 = arith.cmpi slt, %84, %c0_i32_38 : i32
    %92 = vector.broadcast %91 : i1 to vector<128x128xi1>
    %93 = vector.broadcast %92 : vector<128x128xi1> to vector<128x128xi1>
    %94 = arith.xori %90, %93 : vector<128x128xi1>
    %95 = arith.andi %94, %88 : vector<128x128xi1>
    %96 = vector.broadcast %84 : i32 to vector<128x128xi32>
    %97 = arith.addi %86, %96 : vector<128x128xi32>
    %98 = arith.select %95, %97, %86 : vector<128x128xi1>, vector<128x128xi32>
    %99 = tpu.iota {dimensions = array<i32: 1>} : vector<128x128xi32>
    %c32_i32_39 = arith.constant 32 : i32
    %c0_i32_40 = arith.constant 0 : i32
    %100 = arith.cmpi eq, %c32_i32_39, %c0_i32_40 : i32
    %c1_i32_41 = arith.constant 1 : i32
    %101 = arith.select %100, %c1_i32_41, %c32_i32_39 : i32
    %102 = vector.broadcast %101 : i32 to vector<128x128xi32>
    %103 = arith.remsi %99, %102 : vector<128x128xi32>
    %c0_i32_42 = arith.constant 0 : i32
    %104 = vector.broadcast %c0_i32_42 : i32 to vector<128x128xi32>
    %105 = arith.cmpi ne, %103, %104 : vector<128x128xi32>
    %c0_i32_43 = arith.constant 0 : i32
    %106 = vector.broadcast %c0_i32_43 : i32 to vector<128x128xi32>
    %107 = arith.cmpi slt, %103, %106 : vector<128x128xi32>
    %c0_i32_44 = arith.constant 0 : i32
    %108 = arith.cmpi slt, %101, %c0_i32_44 : i32
    %109 = vector.broadcast %108 : i1 to vector<128x128xi1>
    %110 = vector.broadcast %109 : vector<128x128xi1> to vector<128x128xi1>
    %111 = arith.xori %107, %110 : vector<128x128xi1>
    %112 = arith.andi %111, %105 : vector<128x128xi1>
    %113 = vector.broadcast %101 : i32 to vector<128x128xi32>
    %114 = arith.addi %103, %113 : vector<128x128xi32>
    %115 = arith.select %112, %114, %103 : vector<128x128xi1>, vector<128x128xi32>
    %116 = arith.cmpi eq, %98, %115 : vector<128x128xi32>
    %117 = arith.extui %116 : vector<128x128xi1> to vector<128x128xi32>
    %118 = arith.sitofp %117 : vector<128x128xi32> to vector<128x128xf32>
    %cst_45 = arith.constant dense<0.000000e+00> : vector<2x128xf32>
    %119 = tpu.matmul %81, %118, %cst_45 {dimension_numbers = #tpu.dot_dimension_numbers<[1], [0], [0], [1], [0, 0, 1, 1], [], []>} : vector<2x128xf32>, vector<128x128xf32>, vector<2x128xf32> -> vector<2x128xf32>
    %120 = vector.extract_strided_slice %119 {offsets = [0, 0], sizes = [1, 128], strides = [1, 1]} : vector<2x128xf32> to vector<1x128xf32>
    %cst_46 = arith.constant 4.8828125E-4 : f32
    %121 = vector.broadcast %cst_46 : f32 to vector<1x128xf32>
    %122 = arith.mulf %120, %121 : vector<1x128xf32>
    %123 = vector.extract_strided_slice %119 {offsets = [1, 0], sizes = [1, 128], strides = [1, 1]} : vector<2x128xf32> to vector<1x128xf32>
    %cst_47 = arith.constant 4.8828125E-4 : f32
    %124 = vector.broadcast %cst_47 : f32 to vector<1x128xf32>
    %125 = arith.mulf %123, %124 : vector<1x128xf32>
    %126 = arith.mulf %122, %122 : vector<1x128xf32>
    %127 = arith.subf %125, %126 : vector<1x128xf32>
    %cst_48 = arith.constant 0.000000e+00 : f32
    %128 = vector.broadcast %cst_48 : f32 to vector<1x128xf32>
    %129 = arith.maximumf %127, %128 : vector<1x128xf32>
    %cst_49 = arith.constant 9.99999974E-6 : f32
    %130 = vector.broadcast %cst_49 : f32 to vector<1x128xf32>
    %131 = arith.addf %129, %130 : vector<1x128xf32>
    %132 = math.rsqrt %131 : vector<1x128xf32>
    %133 = arith.mulf %74, %132 : vector<1x128xf32>
    %134 = arith.mulf %122, %133 : vector<1x128xf32>
    %135 = arith.subf %75, %134 : vector<1x128xf32>
    %136 = vector.broadcast %133 : vector<1x128xf32> to vector<512x128xf32>
    %137 = arith.mulf %73, %136 : vector<512x128xf32>
    %138 = vector.broadcast %135 : vector<1x128xf32> to vector<512x128xf32>
    %139 = arith.addf %137, %138 : vector<512x128xf32>
    %cst_50 = arith.constant 0.000000e+00 : f32
    %140 = vector.broadcast %cst_50 : f32 to vector<512x128xf32>
    %141 = arith.maximumf %139, %140 : vector<512x128xf32>
    %142 = vector.shape_cast %141 : vector<512x128xf32> to vector<32x16x128xf32>
    %cst_51 = arith.constant dense<0xFF800000> : vector<32x128xf32>
    %143 = vector.multi_reduction <maximumf>, %142, %cst_51 [1] : vector<32x16x128xf32> to vector<32x128xf32>
    %c0_52 = arith.constant 0 : index
    %c0_53 = arith.constant 0 : index
    %144 = vector.load %arg8[%c0_52, %c0_53] : memref<32x128xf32, #tpu.memory_space<vmem>>, vector<32x128xf32>
    tpu.vector_store %arg8[%c0_52, %c0_53], %143 {strides = array<i32>} : memref<32x128xf32, #tpu.memory_space<vmem>>, vector<32x128xf32>,
    return
  }
  func.func @transform_0(%arg0: i32) -> (i32, i32) {
    %c0_i32 = arith.constant 0 : i32
    %c0_i32_0 = arith.constant 0 : i32
    %c0_i32_1 = arith.constant 0 : i32
    return %c0_i32, %c0_i32_0 : i32, i32
  }
  func.func @transform_1(%arg0: i32) -> (i32, i32) {
    %c0_i32 = arith.constant 0 : i32
    %c0_i32_0 = arith.constant 0 : i32
    %c0_i32_1 = arith.constant 0 : i32
    return %c0_i32, %c0_i32_0 : i32, i32
  }
  func.func @transform_2(%arg0: i32) -> (i32, i32) {
    %c0_i32 = arith.constant 0 : i32
    %c0_i32_0 = arith.constant 0 : i32
    %c0_i32_1 = arith.constant 0 : i32
    return %c0_i32, %c0_i32_0 : i32, i32
  }
  func.func @transform_3(%arg0: i32) -> (i32, i32) {
    %c0_i32 = arith.constant 0 : i32
    %c0_i32_0 = arith.constant 0 : i32
    %c0_i32_1 = arith.constant 0 : i32
    return %c0_i32, %c0_i32_0 : i32, i32
  }
  func.func @transform_4(%arg0: i32) -> (i32, i32) {
    %c0_i32 = arith.constant 0 : i32
    %c0_i32_0 = arith.constant 0 : i32
    %c0_i32_1 = arith.constant 0 : i32
    return %c0_i32, %c0_i32_0 : i32, i32
  }
  func.func @transform_5(%arg0: i32) -> (i32, i32) {
    %c0_i32 = arith.constant 0 : i32
    %c0_i32_0 = arith.constant 0 : i32
    %c0_i32_1 = arith.constant 0 : i32
    return %c0_i32, %c0_i32_0 : i32, i32
  }
  func.func @transform_6(%arg0: i32) -> (i32, i32) {
    %c0_i32 = arith.constant 0 : i32
    %c0_i32_0 = arith.constant 0 : i32
    %c0_i32_1 = arith.constant 0 : i32
    return %c0_i32, %c0_i32_0 : i32, i32
  }
  func.func @transform_7(%arg0: i32) -> (i32, i32) {
    %c0_i32 = arith.constant 0 : i32
    %c0_i32_0 = arith.constant 0 : i32
    %c0_i32_1 = arith.constant 0 : i32
    return %c0_i32, %c0_i32_0 : i32, i32
  }
}

</mosaic_0001>

<bundles_post_ra>
// kernel: custom-call.8
= control target key start
LH: loop header
LB: loop body
LE: loop exit
PB: predicated region body
PF: predicated region fallthrough
CT: control target
= control target key end

     0   :  { %s6_s0 = inlined_call_operand.vmem [shape: f32[2,256], index: 0, kind: output, shape index: {}]  }

// kernel: neg.1
= control target key start
LH: loop header
LB: loop body
LE: loop exit
PB: predicated region body
PF: predicated region fallthrough
CT: control target
= control target key end

     0   :  { %s520_s0 = inlined_call_operand.vmem [shape: f32[2,64,256], index: 0, kind: input, shape index: {}]   ;;  %s521_s1 = inlined_call_operand.vmem [shape: f32[2,64,256], index: 1, kind: output, shape index: {}]  }
   0x1   :  { %v2_v0 = vld [vmem:[%s520_s0] sm:$0xff]  ;;  %v258_v2 = vld [vmem:[%s520_s0 + $0x10] sm:$0xff]  ;;  %v286_v31 = vld [vmem:[%s520_s0 + $0x8] sm:$0xff] }
   0x2   :  { %v256_v1 = vld [vmem:[%s520_s0 + $0x80] sm:$0xff]  ;;  %v5_v3 = vxor.u32 2147483648, %v2_v0  ;;  %v20_v5 = vxor.u32 2147483648, %v258_v2  ;;  %v260_v6 = vld [vmem:[%s520_s0 + $0x90] sm:$0xff]  ;;  %v288_v32 = vld [vmem:[%s520_s0 + $0x88] sm:$0xff]  ;;  %v132_v34 = vxor.u32 2147483648, %v286_v31 }
   0x3   :  { %v12_v4 = vxor.u32 2147483648, %v256_v1  ;;  %v262_v7 = vld [vmem:[%s520_s0 + $0x20] sm:$0xff]  ;;  %v28_v9 = vxor.u32 2147483648, %v260_v6  ;;  %v266_v12 = vld [vmem:[%s520_s0 + $0x30] sm:$0xff]  ;;  %v140_v35 = vxor.u32 2147483648, %v288_v32  ;;  %v290_v36 = vld [vmem:[%s520_s0 + $0x18] sm:$0xff] }
   0x4   :  { %v264_v8 = vld [vmem:[%s520_s0 + $0xa0] sm:$0xff]  ;;  %v36_v10 = vxor.u32 2147483648, %v262_v7  ;;  %v268_v13 = vld [vmem:[%s520_s0 + $0xb0] sm:$0xff]  ;;  %7 = vst [vmem:[%s521_s1] sm:$0xff] %v5_v3  ;;  %259 = vst [vmem:[%s521_s1 + $0x10] sm:$0xff] %v20_v5  ;;  %v52_v15 = vxor.u32 2147483648, %v266_v12  ;;  %v148_v39 = vxor.u32 2147483648, %v290_v36 }
   0x5   :  { %v44_v11 = vxor.u32 2147483648, %v264_v8  ;;  %v270_v14 = vld [vmem:[%s520_s0 + $0x40] sm:$0xff]  ;;  %257 = vst [vmem:[%s521_s1 + $0x80] sm:$0xff] %v12_v4  ;;  %v60_v16 = vxor.u32 2147483648, %v268_v13  ;;  %v274_v19 = vld [vmem:[%s520_s0 + $0x50] sm:$0xff]  ;;  %261 = vst [vmem:[%s521_s1 + $0x90] sm:$0xff] %v28_v9 }
   0x6   :  { %v68_v17 = vxor.u32 2147483648, %v270_v14  ;;  %v272_v18 = vld [vmem:[%s520_s0 + $0xc0] sm:$0xff]  ;;  %v276_v20 = vld [vmem:[%s520_s0 + $0xd0] sm:$0xff]  ;;  %263 = vst [vmem:[%s521_s1 + $0x20] sm:$0xff] %v36_v10  ;;  %v84_v22 = vxor.u32 2147483648, %v274_v19  ;;  %267 = vst [vmem:[%s521_s1 + $0x30] sm:$0xff] %v52_v15 }
   0x7   :  { %265 = vst [vmem:[%s521_s1 + $0xa0] sm:$0xff] %v44_v11  ;;  %v76_v21 = vxor.u32 2147483648, %v272_v18  ;;  %v92_v23 = vxor.u32 2147483648, %v276_v20  ;;  %v278_v24 = vld [vmem:[%s520_s0 + $0x60] sm:$0xff]  ;;  %v282_v26 = vld [vmem:[%s520_s0 + $0x70] sm:$0xff]  ;;  %269 = vst [vmem:[%s521_s1 + $0xb0] sm:$0xff] %v60_v16 }
   0x8   :  { %v280_v25 = vld [vmem:[%s520_s0 + $0xe0] sm:$0xff]  ;;  %271 = vst [vmem:[%s521_s1 + $0x40] sm:$0xff] %v68_v17  ;;  %v100_v27 = vxor.u32 2147483648, %v278_v24  ;;  %v116_v29 = vxor.u32 2147483648, %v282_v26  ;;  %v284_v30 = vld [vmem:[%s520_s0 + $0xf0] sm:$0xff]  ;;  %275 = vst [vmem:[%s521_s1 + $0x50] sm:$0xff] %v84_v22 }
   0x9   :  { %v108_v28 = vxor.u32 2147483648, %v280_v25  ;;  %273 = vst [vmem:[%s521_s1 + $0xc0] sm:$0xff] %v76_v21  ;;  %277 = vst [vmem:[%s521_s1 + $0xd0] sm:$0xff] %v92_v23  ;;  %v124_v33 = vxor.u32 2147483648, %v284_v30  ;;  %v292_v37 = vld [vmem:[%s520_s0 + $0x98] sm:$0xff]  ;;  %v294_v38 = vld [vmem:[%s520_s0 + $0x28] sm:$0xff] }
   0xa   :  { %279 = vst [vmem:[%s521_s1 + $0x60] sm:$0xff] %v100_v27  ;;  %283 = vst [vmem:[%s521_s1 + $0x70] sm:$0xff] %v116_v29  ;;  %v156_v40 = vxor.u32 2147483648, %v292_v37  ;;  %v164_v41 = vxor.u32 2147483648, %v294_v38  ;;  %v296_v42 = vld [vmem:[%s520_s0 + $0xa8] sm:$0xff]  ;;  %v298_v43 = vld [vmem:[%s520_s0 + $0x38] sm:$0xff] }
   0xb   :  { %281 = vst [vmem:[%s521_s1 + $0xe0] sm:$0xff] %v108_v28  ;;  %v300_v44 = vld [vmem:[%s520_s0 + $0xb8] sm:$0xff]  ;;  %285 = vst [vmem:[%s521_s1 + $0xf0] sm:$0xff] %v124_v33  ;;  %v172_v45 = vxor.u32 2147483648, %v296_v42  ;;  %v180_v46 = vxor.u32 2147483648, %v298_v43  ;;  %v302_v48 = vld [vmem:[%s520_s0 + $0x48] sm:$0xff] }
   0xc   :  { %287 = vst [vmem:[%s521_s1 + $0x8] sm:$0xff] %v132_v34  ;;  %289 = vst [vmem:[%s521_s1 + $0x88] sm:$0xff] %v140_v35  ;;  %v188_v47 = vxor.u32 2147483648, %v300_v44  ;;  %v304_v49 = vld [vmem:[%s520_s0 + $0xc8] sm:$0xff]  ;;  %v306_v50 = vld [vmem:[%s520_s0 + $0x58] sm:$0xff]  ;;  %v196_v51 = vxor.u32 2147483648, %v302_v48 }
   0xd   :  { %291 = vst [vmem:[%s521_s1 + $0x18] sm:$0xff] %v148_v39  ;;  %293 = vst [vmem:[%s521_s1 + $0x98] sm:$0xff] %v156_v40  ;;  %v204_v52 = vxor.u32 2147483648, %v304_v49  ;;  %v212_v53 = vxor.u32 2147483648, %v306_v50  ;;  %v308_v54 = vld [vmem:[%s520_s0 + $0xd8] sm:$0xff]  ;;  %v310_v55 = vld [vmem:[%s520_s0 + $0x68] sm:$0xff] }
   0xe   :  { %295 = vst [vmem:[%s521_s1 + $0x28] sm:$0xff] %v164_v41  ;;  %v312_v56 = vld [vmem:[%s520_s0 + $0xe8] sm:$0xff]  ;;  %297 = vst [vmem:[%s521_s1 + $0xa8] sm:$0xff] %v172_v45  ;;  %v220_v57 = vxor.u32 2147483648, %v308_v54  ;;  %v228_v58 = vxor.u32 2147483648, %v310_v55  ;;  %v314_v60 = vld [vmem:[%s520_s0 + $0x78] sm:$0xff] }
   0xf   :  { %299 = vst [vmem:[%s521_s1 + $0x38] sm:$0xff] %v180_v46  ;;  %301 = vst [vmem:[%s521_s1 + $0xb8] sm:$0xff] %v188_v47  ;;  %v236_v59 = vxor.u32 2147483648, %v312_v56  ;;  %v316_v61 = vld [vmem:[%s520_s0 + $0xf8] sm:$0xff]  ;;  %v244_v62 = vxor.u32 2147483648, %v314_v60 }
  0x10   :  { %303 = vst [vmem:[%s521_s1 + $0x48] sm:$0xff] %v196_v51  ;;  %305 = vst [vmem:[%s521_s1 + $0xc8] sm:$0xff] %v204_v52  ;;  %v252_v63 = vxor.u32 2147483648, %v316_v61 }
  0x11   :  { %307 = vst [vmem:[%s521_s1 + $0x58] sm:$0xff] %v212_v53  ;;  %309 = vst [vmem:[%s521_s1 + $0xd8] sm:$0xff] %v220_v57 }
  0x12   :  { %311 = vst [vmem:[%s521_s1 + $0x68] sm:$0xff] %v228_v58  ;;  %313 = vst [vmem:[%s521_s1 + $0xe8] sm:$0xff] %v236_v59 }
  0x13   :  { %315 = vst [vmem:[%s521_s1 + $0x78] sm:$0xff] %v244_v62  ;;  %317 = vst [vmem:[%s521_s1 + $0xf8] sm:$0xff] %v252_v63 }

// kernel: tile.23
= control target key start
LH: loop header
LB: loop body
LE: loop exit
PB: predicated region body
PF: predicated region fallthrough
CT: control target
= control target key end

     0   :  { %s22_s0 = inlined_call_operand.vmem [shape: f32[32], index: 0, kind: input, shape index: {}]   ;;  %s23_s1 = inlined_call_operand.vmem [shape: f32[4,32], index: 1, kind: output, shape index: {}]  }
   0x1   :  { %v4_v0 = vld [vmem:[%s22_s0] ss:$0 sm:$0xff] }
   0x2   :  { %5 = vst [vmem:[%s23_s1] sm:$0xf] %v4_v0 }

// kernel: tile.24
= control target key start
LH: loop header
LB: loop body
LE: loop exit
PB: predicated region body
PF: predicated region fallthrough
CT: control target
= control target key end

     0   :  { %vm7_vm0 = vcmask 261120   ;;  %s37_s8 = smov 32   ;;  %s38_s9 = smov 64   ;;  %vm13_vm1 = vcmask 1048320   ;;  %vm19_vm2 = vcmask 785920   ;;  %vm25_vm3 = vcmask 523520   ;;  %s55_s0 = inlined_call_operand.vmem [shape: f32[4,32], index: 0, kind: input, shape index: {}]   ;;  %s56_s1 = inlined_call_operand.vmem [shape: f32[1,128], index: 1, kind: output, shape index: {}]  }
   0x1   :  { %v4_v0 = vld [vmem:[%s55_s0] sm:$0xf]  ;;  %s36_s0 = smov 96  }
   0x2   :  { %5 = vst [vmem:[#allocation1] sm:$0xf] %v4_v0 }
   0x9   :  { %v10_v1 = vld [vmem:[#allocation1 + $0x3] sm:$0x1]   ;;  %v22_v2 = vld [vmem:[#allocation1 + $0x1] sm:$0x1]   ;;  %v6_v3 = vld [vmem:[#allocation1] sm:$0x1]  }
   0xa   :  { %11 = vrot.lane.b32.xlu0 %v10_v1, %s36_s0  ;;  %23 = vrot.lane.b32.xlu1 %v22_v2, %s37_s8  ;;  %v16_v4 = vld [vmem:[#allocation1 + $0x2] sm:$0x1]   ;;  %8 = vst.msk [vmem:[#allocation0] sm:$0x1] %vm7_vm0, %v6_v3  }
   0xe   :  { %17 = vrot.lane.b32.xlu0 %v16_v4, %s38_s9 }
  0x7c   :  { %v12_v5 = vpop.permute.xlu0 %11   ;;  %v24_v6 = vpop.permute.xlu1 %23  }
  0x7d   :  { %14 = vst.msk [vmem:[#allocation0] sm:$0x1] %vm13_vm1, %v12_v5  }
  0x80   :  { %v18_v7 = vpop.permute.xlu0 %17  }
  0x81   :  { %20 = vst.msk [vmem:[#allocation0] sm:$0x1] %vm19_vm2, %v18_v7  }
  0x82   :  { %26 = vst.msk [vmem:[#allocation0] sm:$0x1] %vm25_vm3, %v24_v6  }
  0x89   :  { %v30_v8 = vld [vmem:[#allocation0] sm:$0x1] }
  0x8a   :  { %32 = vst [vmem:[%s56_s1] sm:$0x1] %v30_v8 }

// kernel: transition_down_forward.1
= control target key start
LH: loop header
LB: loop body
LE: loop exit
PB: predicated region body
PF: predicated region fallthrough
CT: control target
= control target key end

     0   :  { %vm283_vm0 = vcmask 523264   ;;  %v5589_v33 = vmov 0.0|0.0   ;;  %v875_v34 = vlaneseq  ;;  %v5680_v43 = vmov 0  ;;  %s5569_s1 = inlined_call_operand.vmem [shape: bf16[64,128], index: 1, kind: input, shape index: {}]   ;;  %s5570_s0 = inlined_call_operand.vmem [shape: bf16[512,64], index: 0, kind: input, shape index: {}]   ;;  %s5571_s2 = inlined_call_operand.vmem [shape: bf16[128,128], index: 2, kind: input, shape index: {}]   ;;  %s5572_s3 = inlined_call_operand.vmem [shape: f32[1,128], index: 3, kind: input, shape index: {}]   ;;  %s5573_s4 = inlined_call_operand.vmem [shape: f32[1,128], index: 4, kind: input, shape index: {}]   ;;  %s5574_s5 = inlined_call_operand.vmem [shape: f32[1,128], index: 5, kind: input, shape index: {}]   ;;  %s5575_s6 = inlined_call_operand.vmem [shape: f32[1,128], index: 6, kind: input, shape index: {}]   ;;  %s5576_s7 = inlined_call_operand.vmem [shape: f32[32,128], index: 7, kind: output, shape index: {}]  }
   0x1   :  { %v3154_v0 = vld [vmem:[%s5569_s1] sm:$0xff]   ;;  %v3155_v1 = vld [vmem:[%s5569_s1 + $0x8] sm:$0xff]   ;;  %v3156_v2 = vld [vmem:[%s5569_s1 + $0x10] sm:$0xff]   ;;  %v5683_v44 = vmov 0  ;;  %v5587_v45 = vmov 1.0|1.0  }
   0x2   :  { %2879 = vmatprep.subr.bf16.mxu0 %v3154_v0  ;;  %v3158_v3 = vld [vmem:[%s5570_s0] sm:$0xff]   ;;  %v3157_v4 = vld [vmem:[%s5569_s1 + $0x18] sm:$0xff]   ;;  %v3159_v5 = vld [vmem:[%s5570_s0 + $0x8] sm:$0xff]   ;;  %v3376_v35 = vshrl.u32 %v875_v34, 7  ;;  %v1085_v36 = vand.u32 127, %v875_v34  ;;  %v5686_v51 = vmov 0 }
   0x3   :  { %2880 = vmatpush3.bf16.msra.mxu0 %v3154_v0  ;;  %2887 = vmatprep.mubr.msk.bf16.mxu0 %vm283_vm0, %v3158_v3  ;;  %v3160_v6 = vld [vmem:[%s5570_s0 + $0x10] sm:$0xff]   ;;  %v3161_v7 = vld [vmem:[%s5570_s0 + $0x18] sm:$0xff]   ;;  %v3162_v8 = vld [vmem:[%s5570_s0 + $0x20] sm:$0xff]   ;;  %v5689_v52 = vmov 0  ;;  %v5692_v57 = vmov 0  ;;  %v5695_v58 = vmov 0 }
   0x4   :  { %2881 = vmatprep.subr.bf16.mxu0 %v3155_v1  ;;  %v3163_v9 = vld [vmem:[%s5570_s0 + $0x28] sm:$0xff]   ;;  %v3164_v10 = vld [vmem:[%s5570_s0 + $0x30] sm:$0xff]   ;;  %v3165_v11 = vld [vmem:[%s5570_s0 + $0x38] sm:$0xff]   ;;  %v877_v37 = vadd.s32 8, %v3376_v35  ;;  %v896_v38 = vand.u32 31, %v3376_v35  ;;  %v3380_v39 = vand.u32 31, %v1085_v36 }
   0x5   :  { %v3166_v12 = vld [vmem:[%s5570_s0 + $0x40] sm:$0xff]   ;;  %v3167_v13 = vld [vmem:[%s5570_s0 + $0x48] sm:$0xff]   ;;  %v3168_v14 = vld [vmem:[%s5570_s0 + $0x50] sm:$0xff]   ;;  %v878_v47 = vadd.s32 16, %v3376_v35  ;;  %v879_v48 = vadd.s32 24, %v3376_v35  ;;  %v880_v53 = vadd.s32 32, %v3376_v35 }
   0x6   :  { %v3169_v15 = vld [vmem:[%s5570_s0 + $0x58] sm:$0xff]   ;;  %v3170_v16 = vld [vmem:[%s5570_s0 + $0x60] sm:$0xff]   ;;  %v3171_v17 = vld [vmem:[%s5570_s0 + $0x68] sm:$0xff]   ;;  %v903_v42 = vand.u32 31, %v877_v37  ;;  %vm3389_vm1 = vcmp.eq.s32.totalorder %v896_v38, %v3380_v39  ;;  %v881_v54 = vadd.s32 40, %v3376_v35  ;;  %v882_v59 = vadd.s32 48, %v3376_v35 }
   0x7   :  { %2882 = vmatpush3.bf16.msra.mxu0 %v3155_v1  ;;  %v3172_v18 = vld [vmem:[%s5570_s0 + $0x70] sm:$0xff]   ;;  %v3173_v19 = vld [vmem:[%s5570_s0 + $0x78] sm:$0xff]   ;;  %v3174_v20 = vld [vmem:[%s5570_s0 + $0x80] sm:$0xff]   ;;  %v5681_v43 = vsel %vm3389_vm1, 4294967295, %v5680_v43  ;;  %v910_v49 = vand.u32 31, %v878_v47  ;;  %v917_v50 = vand.u32 31, %v879_v48 }
   0x8   :  { %2883 = vmatprep.subr.bf16.mxu0 %v3156_v2  ;;  %v3175_v21 = vld [vmem:[%s5570_s0 + $0x88] sm:$0xff]   ;;  %v3176_v22 = vld [vmem:[%s5570_s0 + $0x90] sm:$0xff]   ;;  %v3177_v23 = vld [vmem:[%s5570_s0 + $0x98] sm:$0xff]   ;;  %5682 = vst [vmem:[#allocation2_spill] sm:$0xff] %v5681_v43  ;;  %vm3394_vm2 = vcmp.eq.s32.totalorder %v903_v42, %v3380_v39  ;;  %v924_v55 = vand.u32 31, %v880_v53  ;;  %v931_v56 = vand.u32 31, %v881_v54 }
   0x9   :  { %v3178_v24 = vld [vmem:[%s5570_s0 + $0xa0] sm:$0xff]   ;;  %v3179_v25 = vld [vmem:[%s5570_s0 + $0xa8] sm:$0xff]   ;;  %v3180_v26 = vld [vmem:[%s5570_s0 + $0xb0] sm:$0xff]   ;;  %v5684_v44 = vsel %vm3394_vm2, 4294967295, %v5683_v44  ;;  %vm3418_vm4 = vcmp.eq.s32.totalorder %v910_v49, %v3380_v39  ;;  %vm3423_vm5 = vcmp.eq.s32.totalorder %v917_v50, %v3380_v39  ;;  %v883_v60 = vadd.s32 56, %v3376_v35 }
   0xa   :  { %v3181_v27 = vld [vmem:[%s5570_s0 + $0xb8] sm:$0xff]   ;;  %v3182_v28 = vld [vmem:[%s5570_s0 + $0xc0] sm:$0xff]   ;;  %v3183_v29 = vld [vmem:[%s5570_s0 + $0xc8] sm:$0xff]   ;;  %5685 = vst [vmem:[#allocation3_spill] sm:$0xff] %v5684_v44  ;;  %v5687_v51 = vsel %vm3418_vm4, 4294967295, %v5686_v51  ;;  %v5690_v52 = vsel %vm3423_vm5, 4294967295, %v5689_v52  ;;  %vm3441_vm7 = vcmp.eq.s32.totalorder %v924_v55, %v3380_v39  ;;  %vm3446_vm8 = vcmp.eq.s32.totalorder %v931_v56, %v3380_v39 }
   0xb   :  { %2884 = vmatpush3.bf16.msra.mxu0 %v3156_v2  ;;  %v3184_v30 = vld [vmem:[%s5570_s0 + $0xd0] sm:$0xff]   ;;  %v3185_v31 = vld [vmem:[%s5570_s0 + $0xd8] sm:$0xff]   ;;  %v3186_v32 = vld [vmem:[%s5570_s0 + $0xe0] sm:$0xff]   ;;  %5688 = vst [vmem:[#allocation4_spill] sm:$0xff] %v5687_v51  ;;  %v5693_v57 = vsel %vm3441_vm7, 4294967295, %v5692_v57  ;;  %v5696_v58 = vsel %vm3446_vm8, 4294967295, %v5695_v58 }
   0xc   :  { %2885 = vmatprep.subr.bf16.mxu0 %v3157_v4  ;;  %v3187_v40 = vld [vmem:[%s5570_s0 + $0xe8] sm:$0xff]   ;;  %v3188_v41 = vld [vmem:[%s5570_s0 + $0xf0] sm:$0xff]   ;;  %vm5583_vm3 = vmpackc.low %vm3394_vm2, %vm3389_vm1  ;;  %5691 = vst [vmem:[#allocation5_spill] sm:$0xff] %v5690_v52  ;;  %v938_v61 = vand.u32 31, %v882_v59  ;;  %v945_v62 = vand.u32 31, %v883_v60  ;;  %v5698_v63 = vmov 0 }
   0xd   :  { %v3189_v46 = vld [vmem:[%s5570_s0 + $0xf8] sm:$0xff]   ;;  %vm5580_vm6 = vmpackc.low %vm3423_vm5, %vm3418_vm4  ;;  %5694 = vst [vmem:[#allocation6_spill] sm:$0xff] %v5693_v57  ;;  %v5701_v0 = vmov 0  ;;  %v884_v1 = vadd.s32 64, %v3376_v35  ;;  %v885_v2 = vadd.s32 72, %v3376_v35  ;;  %v890_v34 = vadd.s32 112, %v3376_v35 }
   0xe   :  { %5697 = vst [vmem:[#allocation7_spill] sm:$0xff] %v5696_v58  ;;  %vm5579_vm9 = vmpackc.low %vm3446_vm8, %vm3441_vm7  ;;  %vm3464_vm10 = vcmp.eq.s32.totalorder %v938_v61, %v3380_v39  ;;  %vm3469_vm11 = vcmp.eq.s32.totalorder %v945_v62, %v3380_v39  ;;  %v891_v36 = vadd.s32 120, %v3376_v35  ;;  %v5586_v47 = vmov 0.0  }
   0xf   :  { %2886 = vmatpush3.bf16.msra.mxu0 %v3157_v4  ;;  %v5699_v63 = vsel %vm3464_vm10, 4294967295, %v5698_v63  ;;  %v5702_v0 = vsel %vm3469_vm11, 4294967295, %v5701_v0  ;;  %vm5577_vm12 = vmpackc.low %vm3469_vm11, %vm3464_vm10  ;;  %v952_v3 = vand.u32 31, %v884_v1  ;;  %v959_v4 = vand.u32 31, %v885_v2 }
  0x10   :  { %3101 = vmatprep.subr.bf16.mxu0 %v5589_v33  ;;  %5700 = vst [vmem:[#allocation8_spill] sm:$0xff] %v5699_v63  ;;  %5703 = vst [vmem:[#allocation9_spill] sm:$0xff] %v5702_v0  ;;  %v1001_v49 = vand.u32 31, %v891_v36  ;;  %v5722_v55 = vmov 0  ;;  %v5725_v56 = vmov 0 }
  0x11   :  { %vm3487_vm13 = vcmp.eq.s32.totalorder %v952_v3, %v3380_v39  ;;  %vm3492_vm14 = vcmp.eq.s32.totalorder %v959_v4, %v3380_v39 }
  0x12   :  { %2888 = vmatmul.mubr.msk.bf16.vlgmr.msra.gmra.mrb[0].mxu0 %vm283_vm0, %v3159_v5  ;;  %v5704_v5 = vmov 0  ;;  %vm5578_vm15 = vmpackc.low %vm3492_vm14, %vm3487_vm13 }
  0x13   :  { %2891 = vmatprep.mubr.msk.bf16.mxu0 %vm283_vm0, %v3160_v6  ;;  %3103 = vmatpush3.bf16.msk.msra.mxu0 %vm5583_vm3, %v5587_v45  ;;  %v5705_v5 = vsel %vm3487_vm13, 4294967295, %v5704_v5  ;;  %v5707_v6 = vmov 0 }
  0x14   :  { %3104 = vmatprep.subr.bf16.mxu0 %v5589_v33  ;;  %5706 = vst [vmem:[#allocation10_spill] sm:$0xff] %v5705_v5  ;;  %v5708_v6 = vsel %vm3492_vm14, 4294967295, %v5707_v6 }
  0x15   :  { %5709 = vst [vmem:[#allocation11_spill] sm:$0xff] %v5708_v6 }
  0x17   :  { %3106 = vmatpush3.bf16.msk.msra.mxu0 %vm5580_vm6, %v5587_v45 }
  0x18   :  { %3107 = vmatprep.subr.bf16.mxu0 %v5589_v33 }
  0x1a   :  { %2892 = vmatmul.mubr.msk.bf16.gmra.mrb[4].mxu0 %vm283_vm0, %v3161_v7  ;;  %v886_v7 = vadd.s32 80, %v3376_v35 }
  0x1b   :  { %2895 = vmatprep.mubr.msk.bf16.mxu0 %vm283_vm0, %v3162_v8  ;;  %3109 = vmatpush3.bf16.msk.msra.mxu0 %vm5579_vm9, %v5587_v45  ;;  %v887_v8 = vadd.s32 88, %v3376_v35 }
  0x1c   :  { %3110 = vmatprep.subr.bf16.mxu0 %v5589_v33 }
  0x1f   :  { %3112 = vmatpush3.bf16.msk.msra.mxu0 %vm5577_vm12, %v5587_v45 }
  0x20   :  { %3113 = vmatprep.subr.bf16.mxu0 %v5589_v33 }
  0x22   :  { %2896 = vmatmul.mubr.msk.bf16.gmra.mrb[8].mxu0 %vm283_vm0, %v3163_v9  ;;  %v966_v9 = vand.u32 31, %v886_v7 }
  0x23   :  { %2899 = vmatprep.mubr.msk.bf16.mxu0 %vm283_vm0, %v3164_v10  ;;  %3115 = vmatpush3.bf16.msk.msra.mxu0 %vm5578_vm15, %v5587_v45  ;;  %v973_v10 = vand.u32 31, %v887_v8 }
  0x24   :  { %3116 = vmatprep.subr.bf16.mxu0 %v5589_v33 }
  0x25   :  { %vm3515_vm12 = vcmp.eq.s32.totalorder %v973_v10, %v3380_v39 }
  0x2a   :  { %2900 = vmatmul.mubr.msk.bf16.gmra.mrb[12].mxu0 %vm283_vm0, %v3165_v11  ;;  %v5710_v11 = vmov 0 }
  0x2b   :  { %2903 = vmatprep.mubr.msk.bf16.mxu0 %vm283_vm0, %v3166_v12  ;;  %v5713_v12 = vmov 0 }
  0x2c   :  { %v5714_v12 = vsel %vm3515_vm12, 4294967295, %v5713_v12 }
  0x2d   :  { %5715 = vst [vmem:[#allocation13_spill] sm:$0xff] %v5714_v12 }
  0x32   :  { %2904 = vmatmul.mubr.msk.bf16.gmra.mrb[16].mxu0 %vm283_vm0, %v3167_v13  ;;  %v888_v13 = vadd.s32 96, %v3376_v35 }
  0x33   :  { %2907 = vmatprep.mubr.msk.bf16.mxu0 %vm283_vm0, %v3168_v14  ;;  %v889_v14 = vadd.s32 104, %v3376_v35 }
  0x3a   :  { %2908 = vmatmul.mubr.msk.bf16.gmra.mrb[20].mxu0 %vm283_vm0, %v3169_v15  ;;  %v980_v15 = vand.u32 31, %v888_v13 }
  0x3b   :  { %2911 = vmatprep.mubr.msk.bf16.mxu0 %vm283_vm0, %v3170_v16  ;;  %v987_v16 = vand.u32 31, %v889_v14 }
  0x3c   :  { %vm3533_vm9 = vcmp.eq.s32.totalorder %v980_v15, %v3380_v39 }
  0x3d   :  { %vm3538_vm6 = vcmp.eq.s32.totalorder %v987_v16, %v3380_v39 }
  0x42   :  { %2912 = vmatmul.mubr.msk.bf16.gmra.mrb[24].mxu0 %vm283_vm0, %v3171_v17  ;;  %v5716_v17 = vmov 0 }
  0x43   :  { %2915 = vmatprep.mubr.msk.bf16.mxu0 %vm283_vm0, %v3172_v18  ;;  %v5717_v17 = vsel %vm3533_vm9, 4294967295, %v5716_v17  ;;  %v5719_v18 = vmov 0 }
  0x44   :  { %5718 = vst [vmem:[#allocation14_spill] sm:$0xff] %v5717_v17  ;;  %v5720_v18 = vsel %vm3538_vm6, 4294967295, %v5719_v18 }
  0x45   :  { %5721 = vst [vmem:[#allocation15_spill] sm:$0xff] %v5720_v18 }
  0x4a   :  { %2916 = vmatmul.mubr.msk.bf16.gmra.mrb[28].mxu0 %vm283_vm0, %v3173_v19 }
  0x4b   :  { %2919 = vmatprep.mubr.msk.bf16.mxu0 %vm283_vm0, %v3174_v20 }
  0x52   :  { %2920 = vmatmul.mubr.msk.bf16.gmra.mrb[32].mxu0 %vm283_vm0, %v3175_v21 }
  0x53   :  { %2923 = vmatprep.mubr.msk.bf16.mxu0 %vm283_vm0, %v3176_v22 }
  0x5a   :  { %2924 = vmatmul.mubr.msk.bf16.gmra.mrb[36].mxu0 %vm283_vm0, %v3177_v23 }
  0x5b   :  { %2927 = vmatprep.mubr.msk.bf16.mxu0 %vm283_vm0, %v3178_v24 }
  0x62   :  { %2928 = vmatmul.mubr.msk.bf16.gmra.mrb[40].mxu0 %vm283_vm0, %v3179_v25 }
  0x63   :  { %2931 = vmatprep.mubr.msk.bf16.mxu0 %vm283_vm0, %v3180_v26 }
  0x6a   :  { %2932 = vmatmul.mubr.msk.bf16.gmra.mrb[44].mxu0 %vm283_vm0, %v3181_v27 }
  0x6b   :  { %2935 = vmatprep.mubr.msk.bf16.mxu0 %vm283_vm0, %v3182_v28 }
  0x72   :  { %2936 = vmatmul.mubr.msk.bf16.gmra.mrb[48].mxu0 %vm283_vm0, %v3183_v29 }
  0x73   :  { %2939 = vmatprep.mubr.msk.bf16.mxu0 %vm283_vm0, %v3184_v30 }
  0x7a   :  { %2940 = vmatmul.mubr.msk.bf16.gmra.mrb[52].mxu0 %vm283_vm0, %v3185_v31 }
  0x7b   :  { %2943 = vmatprep.mubr.msk.bf16.mxu0 %vm283_vm0, %v3186_v32 }
  0x82   :  { %2944 = vmatmul.mubr.msk.bf16.gmra.mrb[56].mxu0 %vm283_vm0, %v3187_v40 }
  0x83   :  { %2947 = vmatprep.mubr.msk.bf16.mxu0 %vm283_vm0, %v3188_v41 }
  0x8a   :  { %2948 = vmatmul.mubr.msk.bf16.gmra.mrb[60].mxu0 %vm283_vm0, %v3189_v46  ;;  %vm3510_vm0 = vcmp.eq.s32.totalorder %v966_v9, %v3380_v39  ;;  %v994_v46 = vand.u32 31, %v890_v34 }
  0x8b   :  { %v5711_v11 = vsel %vm3510_vm0, 4294967295, %v5710_v11  ;;  %vm5581_vm15 = vmpackc.low %vm3515_vm12, %vm3510_vm0 }
  0x8c   :  { %5712 = vst [vmem:[#allocation12_spill] sm:$0xff] %v5711_v11  ;;  %3118 = vmatpush3.bf16.msk.msra.mxu0 %vm5581_vm15, %v5587_v45  ;;  %vm5582_vm15 = vmpackc.low %vm3538_vm6, %vm3533_vm9  ;;  %vm3592_vm3 = vcmp.eq.s32.totalorder %v994_v46, %v3380_v39  ;;  %vm3597_vm9 = vcmp.eq.s32.totalorder %v1001_v49, %v3380_v39 }
  0x8d   :  { %3119 = vmatprep.subr.bf16.mxu0 %v5589_v33  ;;  %v5723_v55 = vsel %vm3592_vm3, 4294967295, %v5722_v55  ;;  %v5726_v56 = vsel %vm3597_vm9, 4294967295, %v5725_v56 }
  0x8e   :  { %5724 = vst [vmem:[#allocation16_spill] sm:$0xff] %v5723_v55  ;;  %5727 = vst [vmem:[#allocation17_spill] sm:$0xff] %v5726_v56 }
  0x90   :  { %3121 = vmatpush3.bf16.msk.msra.mxu0 %vm5582_vm15, %v5587_v45  ;;  %vm5585_vm15 = vmmov 0  }
  0x91   :  { %3122 = vmatprep.subr.bf16.mxu0 %v5589_v33  ;;  %2983 = vmatprep.mubr.msk.f32.mxu0 %vm5585_vm15, %v5586_v47  ;;  %vm5628_vm15 = vmpackc.low %vm3597_vm9, %vm3592_vm3 }
  0x94   :  { %3124 = vmatpush3.bf16.msk.msra.mxu0 %vm5628_vm15, %v5587_v45  ;;  %vm5635_vm15 = vcmask 1040384  }
  0xe5   :  { %v3553_v19 = vpop.f32.mrb[0].mxu0 }
  0xe6   :  { %v3555_v20 = vpop.f32.mrb[1].mxu0  ;;  %v742_v26 = vmul.f32 %v3553_v19, %v3553_v19 }
  0xe7   :  { %v3557_v21 = vpop.f32.mrb[2].mxu0  ;;  %v740_v23 = vmul.f32 %v3555_v20, %v3555_v20 }
  0xe8   :  { %v3559_v22 = vpop.f32.mrb[3].mxu0  ;;  %v743_v29 = vmul.f32 %v3557_v21, %v3557_v21 }
  0xe9   :  { %v671_v24 = vadd.f32 %v3559_v22, %v3555_v20  ;;  %v741_v25 = vmul.f32 %v3559_v22, %v3559_v22 }
  0xeb   :  { %v672_v27 = vadd.f32 %v3553_v19, %v671_v24  ;;  %v804_v28 = vadd.f32 %v741_v25, %v740_v23 }
  0xed   :  { %v805_v30 = vadd.f32 %v804_v28, %v742_v26  ;;  %v3572_v31 = vpop.f32.mrb[4].mxu0  ;;  %v673_v32 = vadd.f32 %v3557_v21, %v672_v27 }
  0xee   :  { %v3577_v37 = vpop.f32.mrb[5].mxu0  ;;  %v746_v59 = vmul.f32 %v3572_v31, %v3572_v31 }
  0xef   :  { %v674_v38 = vadd.f32 %v673_v32, %v3577_v37  ;;  %v744_v40 = vmul.f32 %v3577_v37, %v3577_v37  ;;  %v806_v41 = vadd.f32 %v805_v30, %v743_v29  ;;  %v3582_v42 = vpop.f32.mrb[6].mxu0 }
  0xf0   :  { %v3586_v48 = vpop.f32.mrb[7].mxu0  ;;  %v747_v39 = vmul.f32 %v3582_v42, %v3582_v42 }
  0xf1   :  { %v807_v50 = vadd.f32 %v806_v41, %v744_v40  ;;  %v675_v53 = vadd.f32 %v674_v38, %v3586_v48  ;;  %v745_v54 = vmul.f32 %v3586_v48, %v3586_v48 }
  0xf3   :  { %v676_v60 = vadd.f32 %v3572_v31, %v675_v53  ;;  %v808_v61 = vadd.f32 %v807_v50, %v745_v54 }
  0xf5   :  { %v809_v62 = vadd.f32 %v808_v61, %v746_v59  ;;  %v3616_v1 = vpop.f32.mrb[8].mxu0  ;;  %v677_v2 = vadd.f32 %v3582_v42, %v676_v60 }
  0xf6   :  { %v3619_v3 = vpop.f32.mrb[9].mxu0  ;;  %v750_v16 = vmul.f32 %v3616_v1, %v3616_v1 }
  0xf7   :  { %v678_v4 = vadd.f32 %v677_v2, %v3619_v3  ;;  %v748_v7 = vmul.f32 %v3619_v3, %v3619_v3  ;;  %v810_v8 = vadd.f32 %v809_v62, %v747_v39  ;;  %v3624_v9 = vpop.f32.mrb[10].mxu0 }
  0xf8   :  { %v3626_v10 = vpop.f32.mrb[11].mxu0  ;;  %v751_v25 = vmul.f32 %v3624_v9, %v3624_v9 }
  0xf9   :  { %v811_v13 = vadd.f32 %v810_v8, %v748_v7  ;;  %v679_v14 = vadd.f32 %v678_v4, %v3626_v10  ;;  %v749_v15 = vmul.f32 %v3626_v10, %v3626_v10 }
  0xfb   :  { %v680_v23 = vadd.f32 %v3616_v1, %v679_v14  ;;  %v812_v24 = vadd.f32 %v811_v13, %v749_v15 }
  0xfd   :  { %v813_v26 = vadd.f32 %v812_v24, %v750_v16  ;;  %v3636_v27 = vpop.f32.mrb[12].mxu0  ;;  %v681_v28 = vadd.f32 %v3624_v9, %v680_v23 }
  0xfe   :  { %v3639_v29 = vpop.f32.mrb[13].mxu0  ;;  %v754_v49 = vmul.f32 %v3636_v27, %v3636_v27 }
  0xff   :  { %v682_v30 = vadd.f32 %v681_v28, %v3639_v29  ;;  %v752_v32 = vmul.f32 %v3639_v29, %v3639_v29  ;;  %v814_v34 = vadd.f32 %v813_v26, %v751_v25  ;;  %v3644_v36 = vpop.f32.mrb[14].mxu0 }
 0x100   :  { %v3646_v38 = vpop.f32.mrb[15].mxu0  ;;  %v755_v54 = vmul.f32 %v3644_v36, %v3644_v36 }
 0x101   :  { %v815_v40 = vadd.f32 %v814_v34, %v752_v32  ;;  %v683_v41 = vadd.f32 %v682_v30, %v3646_v38  ;;  %v753_v46 = vmul.f32 %v3646_v38, %v3646_v38 }
 0x103   :  { %v684_v50 = vadd.f32 %v3636_v27, %v683_v41  ;;  %v816_v53 = vadd.f32 %v815_v40, %v753_v46 }
 0x105   :  { %v817_v59 = vadd.f32 %v816_v53, %v754_v49  ;;  %v3656_v60 = vpop.f32.mrb[16].mxu0  ;;  %v685_v61 = vadd.f32 %v3644_v36, %v684_v50 }
 0x106   :  { %v3659_v39 = vpop.f32.mrb[17].mxu0  ;;  %v758_v16 = vmul.f32 %v3656_v60, %v3656_v60 }
 0x107   :  { %v686_v62 = vadd.f32 %v685_v61, %v3659_v39  ;;  %v756_v2 = vmul.f32 %v3659_v39, %v3659_v39  ;;  %v818_v4 = vadd.f32 %v817_v59, %v755_v54  ;;  %v3664_v7 = vpop.f32.mrb[18].mxu0 }
 0x108   :  { %v3666_v8 = vpop.f32.mrb[19].mxu0  ;;  %v759_v25 = vmul.f32 %v3664_v7, %v3664_v7 }
 0x109   :  { %v819_v13 = vadd.f32 %v818_v4, %v756_v2  ;;  %v687_v14 = vadd.f32 %v686_v62, %v3666_v8  ;;  %v757_v15 = vmul.f32 %v3666_v8, %v3666_v8 }
 0x10b   :  { %v688_v23 = vadd.f32 %v3656_v60, %v687_v14  ;;  %v820_v24 = vadd.f32 %v819_v13, %v757_v15 }
 0x10d   :  { %v821_v26 = vadd.f32 %v820_v24, %v758_v16  ;;  %v3676_v28 = vpop.f32.mrb[20].mxu0  ;;  %v689_v30 = vadd.f32 %v3664_v7, %v688_v23 }
 0x10e   :  { %v3679_v32 = vpop.f32.mrb[21].mxu0  ;;  %v762_v59 = vmul.f32 %v3676_v28, %v3676_v28 }
 0x10f   :  { %v690_v34 = vadd.f32 %v689_v30, %v3679_v32  ;;  %v760_v40 = vmul.f32 %v3679_v32, %v3679_v32  ;;  %v822_v41 = vadd.f32 %v821_v26, %v759_v25  ;;  %v3684_v46 = vpop.f32.mrb[22].mxu0 }
 0x110   :  { %v3686_v49 = vpop.f32.mrb[23].mxu0  ;;  %v763_v2 = vmul.f32 %v3684_v46, %v3684_v46 }
 0x111   :  { %v823_v50 = vadd.f32 %v822_v41, %v760_v40  ;;  %v691_v53 = vadd.f32 %v690_v34, %v3686_v49  ;;  %v761_v54 = vmul.f32 %v3686_v49, %v3686_v49 }
 0x113   :  { %v692_v61 = vadd.f32 %v3676_v28, %v691_v53  ;;  %v824_v62 = vadd.f32 %v823_v50, %v761_v54 }
 0x115   :  { %v825_v4 = vadd.f32 %v824_v62, %v762_v59  ;;  %v3696_v13 = vpop.f32.mrb[24].mxu0  ;;  %v693_v14 = vadd.f32 %v3684_v46, %v692_v61 }
 0x116   :  { %v3699_v15 = vpop.f32.mrb[25].mxu0  ;;  %v766_v41 = vmul.f32 %v3696_v13, %v3696_v13 }
 0x117   :  { %v694_v16 = vadd.f32 %v693_v14, %v3699_v15  ;;  %v764_v23 = vmul.f32 %v3699_v15, %v3699_v15  ;;  %v826_v24 = vadd.f32 %v825_v4, %v763_v2  ;;  %v3704_v25 = vpop.f32.mrb[26].mxu0 }
 0x118   :  { %v3706_v26 = vpop.f32.mrb[27].mxu0  ;;  %v767_v54 = vmul.f32 %v3704_v25, %v3704_v25 }
 0x119   :  { %v827_v30 = vadd.f32 %v826_v24, %v764_v23  ;;  %v695_v34 = vadd.f32 %v694_v16, %v3706_v26  ;;  %v765_v40 = vmul.f32 %v3706_v26, %v3706_v26 }
 0x11b   :  { %v696_v50 = vadd.f32 %v3696_v13, %v695_v34  ;;  %v828_v53 = vadd.f32 %v827_v30, %v765_v40 }
 0x11d   :  { %v829_v59 = vadd.f32 %v828_v53, %v766_v41  ;;  %v3716_v61 = vpop.f32.mrb[28].mxu0  ;;  %v697_v62 = vadd.f32 %v3704_v25, %v696_v50 }
 0x11e   :  { %v3719_v2 = vpop.f32.mrb[29].mxu0  ;;  %v770_v41 = vmul.f32 %v3716_v61, %v3716_v61 }
 0x11f   :  { %v698_v4 = vadd.f32 %v697_v62, %v3719_v2  ;;  %v768_v14 = vmul.f32 %v3719_v2, %v3719_v2  ;;  %v830_v16 = vadd.f32 %v829_v59, %v767_v54  ;;  %v3724_v23 = vpop.f32.mrb[30].mxu0 }
 0x120   :  { %v3726_v24 = vpop.f32.mrb[31].mxu0  ;;  %v771_v62 = vmul.f32 %v3724_v23, %v3724_v23 }
 0x121   :  { %v831_v30 = vadd.f32 %v830_v16, %v768_v14  ;;  %v699_v34 = vadd.f32 %v698_v4, %v3726_v24  ;;  %v769_v40 = vmul.f32 %v3726_v24, %v3726_v24 }
 0x123   :  { %v700_v50 = vadd.f32 %v3716_v61, %v699_v34  ;;  %v832_v53 = vadd.f32 %v831_v30, %v769_v40 }
 0x125   :  { %v833_v54 = vadd.f32 %v832_v53, %v770_v41  ;;  %v3736_v59 = vpop.f32.mrb[32].mxu0  ;;  %v701_v47 = vadd.f32 %v3724_v23, %v700_v50 }
 0x126   :  { %v3739_v14 = vpop.f32.mrb[33].mxu0  ;;  %v774_v50 = vmul.f32 %v3736_v59, %v3736_v59 }
 0x127   :  { %v702_v4 = vadd.f32 %v701_v47, %v3739_v14  ;;  %v772_v16 = vmul.f32 %v3739_v14, %v3739_v14  ;;  %v834_v45 = vadd.f32 %v833_v54, %v771_v62  ;;  %v3744_v33 = vpop.f32.mrb[34].mxu0 }
 0x128   :  { %v3746_v34 = vpop.f32.mrb[35].mxu0  ;;  %v775_v55 = vmul.f32 %v3744_v33, %v3744_v33 }
 0x129   :  { %v835_v30 = vadd.f32 %v834_v45, %v772_v16  ;;  %v703_v40 = vadd.f32 %v702_v4, %v3746_v34  ;;  %v773_v41 = vmul.f32 %v3746_v34, %v3746_v34 }
 0x12b   :  { %v704_v53 = vadd.f32 %v3736_v59, %v703_v40  ;;  %v836_v47 = vadd.f32 %v835_v30, %v773_v41 }
 0x12d   :  { %v837_v62 = vadd.f32 %v836_v47, %v774_v50  ;;  %v3756_v54 = vpop.f32.mrb[36].mxu0  ;;  %v705_v56 = vadd.f32 %v3744_v33, %v704_v53 }
 0x12e   :  { %v3759_v45 = vpop.f32.mrb[37].mxu0  ;;  %v778_v53 = vmul.f32 %v3756_v54, %v3756_v54 }
 0x12f   :  { %v706_v4 = vadd.f32 %v705_v56, %v3759_v45  ;;  %v776_v16 = vmul.f32 %v3759_v45, %v3759_v45  ;;  %v838_v17 = vadd.f32 %v837_v62, %v775_v55  ;;  %v3764_v18 = vpop.f32.mrb[38].mxu0 }
 0x130   :  { %v3766_v40 = vpop.f32.mrb[39].mxu0  ;;  %v779_v11 = vmul.f32 %v3764_v18, %v3764_v18 }
 0x131   :  { %v839_v30 = vadd.f32 %v838_v17, %v776_v16  ;;  %v707_v41 = vadd.f32 %v706_v4, %v3766_v40  ;;  %v777_v50 = vmul.f32 %v3766_v40, %v3766_v40 }
 0x133   :  { %v708_v47 = vadd.f32 %v3756_v54, %v707_v41  ;;  %v840_v56 = vadd.f32 %v839_v30, %v777_v50 }
 0x135   :  { %v841_v55 = vadd.f32 %v840_v56, %v778_v53  ;;  %v3776_v62 = vpop.f32.mrb[40].mxu0  ;;  %v709_v12 = vadd.f32 %v3764_v18, %v708_v47 }
 0x136   :  { %5728 = vst [vmem:[#allocation18_spill] sm:$0xff] %v3776_v62  ;;  %v3779_v17 = vpop.f32.mrb[41].mxu0  ;;  %v782_v47 = vmul.f32 %v3776_v62, %v3776_v62 }
 0x137   :  { %v710_v4 = vadd.f32 %v709_v12, %v3779_v17  ;;  %v780_v16 = vmul.f32 %v3779_v17, %v3779_v17  ;;  %v842_v5 = vadd.f32 %v841_v55, %v779_v11  ;;  %v3784_v6 = vpop.f32.mrb[42].mxu0 }
 0x138   :  { %5729 = vst [vmem:[#allocation19_spill] sm:$0xff] %v3784_v6  ;;  %v3786_v41 = vpop.f32.mrb[43].mxu0  ;;  %v783_v63 = vmul.f32 %v3784_v6, %v3784_v6 }
 0x139   :  { %5730 = vst [vmem:[#allocation20_spill] sm:$0xff] %v3786_v41  ;;  %v843_v30 = vadd.f32 %v842_v5, %v780_v16  ;;  %v711_v50 = vadd.f32 %v710_v4, %v3786_v41  ;;  %v781_v53 = vmul.f32 %v3786_v41, %v3786_v41 }
 0x13b   :  { %v712_v56 = vadd.f32 %v3776_v62, %v711_v50  ;;  %v844_v12 = vadd.f32 %v843_v30, %v781_v53 }
 0x13d   :  { %v845_v11 = vadd.f32 %v844_v12, %v782_v47  ;;  %v3796_v55 = vpop.f32.mrb[44].mxu0  ;;  %v713_v0 = vadd.f32 %v3784_v6, %v712_v56 }
 0x13e   :  { %5731 = vst [vmem:[#allocation21_spill] sm:$0xff] %v3796_v55  ;;  %v3799_v5 = vpop.f32.mrb[45].mxu0  ;;  %v786_v56 = vmul.f32 %v3796_v55, %v3796_v55 }
 0x13f   :  { %5732 = vst [vmem:[#allocation22_spill] sm:$0xff] %v3799_v5  ;;  %v714_v4 = vadd.f32 %v713_v0, %v3799_v5  ;;  %v784_v16 = vmul.f32 %v3799_v5, %v3799_v5  ;;  %v846_v57 = vadd.f32 %v845_v11, %v783_v63  ;;  %v3804_v58 = vpop.f32.mrb[46].mxu0 }
 0x140   :  { %5733 = vst [vmem:[#allocation23_spill] sm:$0xff] %v3804_v58  ;;  %v3806_v50 = vpop.f32.mrb[47].mxu0  ;;  %v787_v51 = vmul.f32 %v3804_v58, %v3804_v58 }
 0x141   :  { %5734 = vst [vmem:[#allocation24_spill] sm:$0xff] %v3806_v50  ;;  %v847_v30 = vadd.f32 %v846_v57, %v784_v16  ;;  %v715_v53 = vadd.f32 %v714_v4, %v3806_v50  ;;  %v785_v47 = vmul.f32 %v3806_v50, %v3806_v50 }
 0x143   :  { %v716_v12 = vadd.f32 %v3796_v55, %v715_v53  ;;  %v848_v0 = vadd.f32 %v847_v30, %v785_v47 }
 0x145   :  { %v849_v63 = vadd.f32 %v848_v0, %v786_v56  ;;  %v3816_v11 = vpop.f32.mrb[48].mxu0  ;;  %v717_v52 = vadd.f32 %v3804_v58, %v716_v12 }
 0x146   :  { %5735 = vst [vmem:[#allocation25_spill] sm:$0xff] %v3816_v11  ;;  %v3819_v57 = vpop.f32.mrb[49].mxu0  ;;  %v790_v12 = vmul.f32 %v3816_v11, %v3816_v11 }
 0x147   :  { %5736 = vst [vmem:[#allocation26_spill] sm:$0xff] %v3819_v57  ;;  %v718_v4 = vadd.f32 %v717_v52, %v3819_v57  ;;  %v788_v16 = vmul.f32 %v3819_v57, %v3819_v57  ;;  %v850_v43 = vadd.f32 %v849_v63, %v787_v51  ;;  %v3824_v44 = vpop.f32.mrb[50].mxu0 }
 0x148   :  { %5737 = vst [vmem:[#allocation27_spill] sm:$0xff] %v3824_v44  ;;  %v3826_v53 = vpop.f32.mrb[51].mxu0  ;;  %v791_v57 = vmul.f32 %v3824_v44, %v3824_v44 }
 0x149   :  { %5738 = vst [vmem:[#allocation28_spill] sm:$0xff] %v3826_v53  ;;  %v851_v30 = vadd.f32 %v850_v43, %v788_v16  ;;  %v719_v47 = vadd.f32 %v718_v4, %v3826_v53  ;;  %v789_v56 = vmul.f32 %v3826_v53, %v3826_v53 }
 0x14b   :  { %v720_v0 = vadd.f32 %v3816_v11, %v719_v47  ;;  %v852_v52 = vadd.f32 %v851_v30, %v789_v56 }
 0x14d   :  { %v853_v51 = vadd.f32 %v852_v52, %v790_v12  ;;  %v3836_v63 = vpop.f32.mrb[52].mxu0  ;;  %v721_v58 = vadd.f32 %v3824_v44, %v720_v0 }
 0x14e   :  { %5739 = vst [vmem:[#allocation29_spill] sm:$0xff] %v3836_v63  ;;  %v3839_v43 = vpop.f32.mrb[53].mxu0  ;;  %v794_v0 = vmul.f32 %v3836_v63, %v3836_v63 }
 0x14f   :  { %5740 = vst [vmem:[#allocation30_spill] sm:$0xff] %v3839_v43  ;;  %v722_v4 = vadd.f32 %v721_v58, %v3839_v43  ;;  %v792_v16 = vmul.f32 %v3839_v43, %v3839_v43  ;;  %v854_v53 = vadd.f32 %v853_v51, %v791_v57  ;;  %v3844_v55 = vpop.f32.mrb[54].mxu0 }
 0x150   :  { %5741 = vst [vmem:[#allocation31_spill] sm:$0xff] %v3844_v55  ;;  %v3846_v47 = vpop.f32.mrb[55].mxu0  ;;  %v795_v43 = vmul.f32 %v3844_v55, %v3844_v55 }
 0x151   :  { %5742 = vst [vmem:[#allocation32_spill] sm:$0xff] %v3846_v47  ;;  %v855_v30 = vadd.f32 %v854_v53, %v792_v16  ;;  %v723_v56 = vadd.f32 %v722_v4, %v3846_v47  ;;  %v793_v12 = vmul.f32 %v3846_v47, %v3846_v47 }
 0x153   :  { %v724_v52 = vadd.f32 %v3836_v63, %v723_v56  ;;  %v856_v58 = vadd.f32 %v855_v30, %v793_v12 }
 0x155   :  { %v857_v57 = vadd.f32 %v856_v58, %v794_v0  ;;  %v3856_v51 = vpop.f32.mrb[56].mxu0  ;;  %v725_v44 = vadd.f32 %v3844_v55, %v724_v52 }
 0x156   :  { %5743 = vst [vmem:[#allocation33_spill] sm:$0xff] %v3856_v51  ;;  %v3859_v53 = vpop.f32.mrb[57].mxu0  ;;  %v798_v52 = vmul.f32 %v3856_v51, %v3856_v51 }
 0x157   :  { %5744 = vst [vmem:[#allocation34_spill] sm:$0xff] %v3859_v53  ;;  %v726_v4 = vadd.f32 %v725_v44, %v3859_v53  ;;  %v796_v16 = vmul.f32 %v3859_v53, %v3859_v53  ;;  %v858_v47 = vadd.f32 %v857_v57, %v795_v43  ;;  %v3864_v11 = vpop.f32.mrb[58].mxu0 }
 0x158   :  { %5745 = vst [vmem:[#allocation35_spill] sm:$0xff] %v3864_v11  ;;  %v3866_v56 = vpop.f32.mrb[59].mxu0  ;;  %v799_v53 = vmul.f32 %v3864_v11, %v3864_v11 }
 0x159   :  { %5746 = vst [vmem:[#allocation36_spill] sm:$0xff] %v3866_v56  ;;  %v859_v30 = vadd.f32 %v858_v47, %v796_v16  ;;  %v727_v12 = vadd.f32 %v726_v4, %v3866_v56  ;;  %v797_v0 = vmul.f32 %v3866_v56, %v3866_v56 }
 0x15b   :  { %v728_v58 = vadd.f32 %v3856_v51, %v727_v12  ;;  %v860_v44 = vadd.f32 %v859_v30, %v797_v0 }
 0x15d   :  { %v861_v43 = vadd.f32 %v860_v44, %v798_v52  ;;  %v3876_v57 = vpop.f32.mrb[60].mxu0  ;;  %v729_v55 = vadd.f32 %v3864_v11, %v728_v58 }
 0x15e   :  { %v3879_v47 = vpop.f32.mrb[61].mxu0  ;;  %v802_v58 = vmul.f32 %v3876_v57, %v3876_v57 }
 0x15f   :  { %5747 = vst [vmem:[#allocation37_spill] sm:$0xff] %v3879_v47  ;;  %v730_v4 = vadd.f32 %v729_v55, %v3879_v47  ;;  %v800_v16 = vmul.f32 %v3879_v47, %v3879_v47  ;;  %v862_v56 = vadd.f32 %v861_v43, %v799_v53  ;;  %v3884_v63 = vpop.f32.mrb[62].mxu0 }
 0x160   :  { %5748 = vst [vmem:[#allocation38_spill] sm:$0xff] %v3884_v63  ;;  %v3886_v12 = vpop.f32.mrb[63].mxu0  ;;  %v803_v47 = vmul.f32 %v3884_v63, %v3884_v63 }
 0x161   :  { %5749 = vst [vmem:[#allocation39_spill] sm:$0xff] %v3886_v12  ;;  %v863_v30 = vadd.f32 %v862_v56, %v800_v16  ;;  %v731_v0 = vadd.f32 %v730_v4, %v3886_v12  ;;  %v801_v52 = vmul.f32 %v3886_v12, %v3886_v12 }
 0x163   :  { %v732_v44 = vadd.f32 %v3876_v57, %v731_v0  ;;  %v864_v55 = vadd.f32 %v863_v30, %v801_v52 }
 0x165   :  { %v733_v53 = vadd.f32 %v3884_v63, %v732_v44  ;;  %v865_v43 = vadd.f32 %v864_v55, %v802_v58  ;;  %v3190_v58 = vld [vmem:[%s5571_s2] sm:$0xff]  }
 0x166   :  { %2986 = vmatprep.subr.bf16.mxu1 %v3190_v58 }
 0x167   :  { %v734_v11 = vrot.slane %v733_v53, 4  ;;  %v866_v51 = vadd.f32 %v865_v43, %v803_v47  ;;  %2987 = vmatpush3.bf16.msra.mxu1 %v3190_v58  ;;  %v5750_v47 = vmov 0.0|0.0  }
 0x168   :  { %v5781_v63 = vld [vmem:[#allocation39_spill] sm:$0xff] }
 0x169   :  { %v735_v56 = vadd.f32 %v734_v11, %v733_v53  ;;  %v867_v16 = vrot.slane %v866_v51, 4  ;;  %v3191_v11 = vld [vmem:[%s5571_s2 + $0x8] sm:$0xff]  }
 0x16a   :  { %2988 = vmatprep.subr.bf16.mxu1 %v3191_v11 }
 0x16b   :  { %v736_v4 = vrot.slane %v735_v56, 2  ;;  %v868_v50 = vadd.f32 %v867_v16, %v866_v51  ;;  %2989 = vmatpush3.bf16.msra.mxu1 %v3191_v11  ;;  %v3197_v51 = vld [vmem:[%s5571_s2 + $0x38] sm:$0xff]  }
 0x16d   :  { %v737_v5 = vadd.f32 %v736_v4, %v735_v56  ;;  %v869_v12 = vrot.slane %v868_v50, 2 }
 0x16f   :  { %v738_v6 = vrot.slane %v737_v5, 1  ;;  %v870_v62 = vadd.f32 %v869_v12, %v868_v50  ;;  %v3196_v50 = vld [vmem:[%s5571_s2 + $0x30] sm:$0xff]  }
 0x171   :  { %v871_v41 = vrot.slane %v870_v62, 1  ;;  %v739_v0 = vadd.f32 %v738_v6, %v737_v5  ;;  %v3192_v6 = vld [vmem:[%s5571_s2 + $0x10] sm:$0xff]   ;;  %v3195_v5 = vld [vmem:[%s5571_s2 + $0x28] sm:$0xff]  }
 0x172   :  { %2990 = vmatprep.subr.bf16.mxu1 %v3192_v6 }
 0x173   :  { %v872_v30 = vadd.f32 %v871_v41, %v870_v62  ;;  %2991 = vmatpush3.bf16.msra.mxu1 %v3192_v6  ;;  %v3193_v62 = vld [vmem:[%s5571_s2 + $0x18] sm:$0xff]   ;;  %v3194_v41 = vld [vmem:[%s5571_s2 + $0x20] sm:$0xff]  }
 0x174   :  { %2992 = vmatprep.subr.bf16.mxu1 %v3193_v62 }
 0x175   :  { %v874_v52 = vsel %vm5635_vm15, %v739_v0, %v872_v30  ;;  %v3206_v0 = vmov 1966171168   ;;  %vm5820_vm15 = vmpackc.low %vm3394_vm2, %vm3389_vm1 }
 0x176   :  { %2984 = vmatmul.mubr.f32.vlgmr.msra.gmra.mrb[64].mxu0 %v874_v52  ;;  %v1227_v30 = vunpack.c.l.s4 %v3206_v0  ;;  %vm5824_vm1 = vmpackc.low %vm3423_vm5, %vm3418_vm4 }
 0x177   :  { %2993 = vmatpush3.bf16.msra.mxu1 %v3193_v62  ;;  %vm5827_vm2 = vmpackc.low %vm3446_vm8, %vm3441_vm7 }
 0x178   :  { %2994 = vmatprep.subr.bf16.mxu1 %v3194_v41  ;;  %v1228_v52 = vunpack.c.0.s8 %v1227_v30  ;;  %vm5837_vm4 = vmpackc.low %vm3469_vm11, %vm3464_vm10 }
 0x179   :  { %vm5847_vm5 = vmpackc.low %vm3492_vm14, %vm3487_vm13  ;;  %vm2602_vm13 = vcmask 1043459   ;;  %vm2604_vm14 = vcmask 1044484  }
 0x17a   :  { %v3924_v58 = vsub.s32 %v1228_v52, %v3376_v35  ;;  %vm5850_vm7 = vmpackc.low %vm3515_vm12, %vm3510_vm0  ;;  %vm2600_vm12 = vcmask 1042434   ;;  %vm2608_vm0 = vcmask 1046534  }
 0x17b   :  { %2995 = vmatpush3.bf16.msra.mxu1 %v3194_v41  ;;  %v669_v41 = vld [vmem:[%s5572_s3] sm:$0x1]  ;;  %vm5857_vm11 = vmpackc.low %vm3597_vm9, %vm3592_vm3  ;;  %vm5859_vm3 = vmmov 0   ;;  %vm2598_vm9 = vcmask 1041409  }
 0x17c   :  { %2996 = vmatprep.subr.bf16.mxu1 %v3195_v5  ;;  %5751 = vst [vmem:[#allocation40_spill] sm:$0xff] %v3924_v58 }
 0x17f   :  { %2997 = vmatpush3.bf16.msra.mxu1 %v3195_v5  ;;  %v3931_v5 = vsub.s32 0, %v3376_v35 }
 0x180   :  { %2998 = vmatprep.subr.bf16.mxu1 %v3196_v50 }
 0x181   :  { %5752 = vst [vmem:[#allocation41_spill] sm:$0xff] %v3931_v5 }
 0x183   :  { %2999 = vmatpush3.bf16.msra.mxu1 %v3196_v50 }
 0x184   :  { %3000 = vmatprep.subr.bf16.mxu1 %v3197_v51 }
 0x187   :  { %3001 = vmatpush3.bf16.msra.mxu1 %v3197_v51 }
 0x188   :  { %3125 = vmatprep.subr.bf16.mxu1 %v5750_v47  ;;  %v5772_v47 = vld [vmem:[#allocation30_spill] sm:$0xff] }
 0x249   :  { %v1212_v12 = vpop.f32.mrb[64].mxu0 }
 0x24a   :  { %v1216_v44 = vmul.f32 0.00048828125, %v1212_v12  ;;  %v2985_v55 = vpop.f32.mrb[65].mxu0  ;;  %v670_v12 = vld [vmem:[%s5573_s4] sm:$0x1] }
 0x24c   :  { %v1217_v53 = vmul.f32 %v1216_v44, %v1216_v44 }
 0x24e   :  { %v1219_v43 = vrot.slane %v1217_v53, 7 }
 0x250   :  { %v1221_v56 = vsub.f32 %v1216_v44, %v1219_v43 }
 0x252   :  { %v1222_v16 = vmax.f32 %v1221_v56, 0.0 }
 0x254   :  { %v1223_v4 = vadd.f32 1e-05, %v1222_v16 }
 0x256   :  { %3198 = vrsqrt.f32 %v1223_v4 }
 0x260   :  { %v3199_v11 = vpop.eup %3198 }
 0x261   :  { %v1232_v6 = vrot.slane %v3199_v11, %v3924_v58  ;;  %v5761_v11 = vld [vmem:[#allocation20_spill] sm:$0xff] }
 0x263   :  { %v1233_v62 = vcombine.high %v1232_v6, %v1232_v6 }
 0x265   :  { %v1240_v50 = vrot.slane %v1233_v62, %v3924_v58 }
 0x267   :  { %v1242_v51 = vmul.f32 %v1240_v50, %v669_v41  ;;  %v5764_v41 = vld [vmem:[#allocation22_spill] sm:$0xff]  ;;  %v5765_v50 = vld [vmem:[#allocation24_spill] sm:$0xff] }
 0x269   :  { %v1243_v55 = vmul.f32 %v1242_v51, %v1216_v44  ;;  %v3938_v53 = vrot.slane %v1242_v51, %v3931_v5 }
 0x26b   :  { %v1244_v43 = vsub.f32 %v670_v12, %v1243_v55  ;;  %v3942_v56 = vmul.f32 %v3938_v53, %v3555_v20  ;;  %v3946_v35 = vmul.f32 %v3938_v53, %v3559_v22  ;;  %v3950_v16 = vmul.f32 %v3553_v19, %v3938_v53  ;;  %v5768_v55 = vld [vmem:[#allocation26_spill] sm:$0xff] }
 0x26c   :  { %v3954_v4 = vmul.f32 %v3557_v21, %v3938_v53  ;;  %v3958_v44 = vmul.f32 %v3938_v53, %v3577_v37  ;;  %v3962_v20 = vmul.f32 %v3938_v53, %v3586_v48  ;;  %v3966_v22 = vmul.f32 %v3572_v31, %v3938_v53 }
 0x26d   :  { %5753 = vst [vmem:[#allocation42_spill] sm:$0xff] %v3942_v56  ;;  %5754 = vst [vmem:[#allocation43_spill] sm:$0xff] %v3946_v35  ;;  %v3969_v0 = vrot.slane %v1244_v43, %v3931_v5  ;;  %v1258_v19 = vmul.f32 %v3582_v42, %v3938_v53  ;;  %v1259_v21 = vmul.f32 %v3938_v53, %v3619_v3  ;;  %v5773_v35 = vld [vmem:[#allocation32_spill] sm:$0xff] }
 0x26e   :  { %5755 = vst [vmem:[#allocation44_spill] sm:$0xff] %v3950_v16  ;;  %5756 = vst [vmem:[#allocation45_spill] sm:$0xff] %v3954_v4  ;;  %v1260_v37 = vmul.f32 %v3938_v53, %v3626_v10  ;;  %v1261_v48 = vmul.f32 %v3616_v1, %v3938_v53  ;;  %v1262_v30 = vmul.f32 %v3624_v9, %v3938_v53  ;;  %v5780_v16 = vld [vmem:[#allocation37_spill] sm:$0xff] }
 0x26f   :  { %5757 = vst [vmem:[#allocation46_spill] sm:$0xff] %v3958_v44  ;;  %5758 = vst [vmem:[#allocation47_spill] sm:$0xff] %v3962_v20  ;;  %v1263_v31 = vmul.f32 %v3938_v53, %v3639_v29  ;;  %v1264_v52 = vmul.f32 %v3938_v53, %v3646_v38  ;;  %v1265_v42 = vmul.f32 %v3636_v27, %v3938_v53  ;;  %v5776_v20 = vld [vmem:[#allocation34_spill] sm:$0xff]  ;;  %v5777_v44 = vld [vmem:[#allocation36_spill] sm:$0xff] }
 0x270   :  { %5759 = vst [vmem:[#allocation48_spill] sm:$0xff] %v3966_v22  ;;  %5760 = vst [vmem:[#allocation49_spill] sm:$0xff] %v3969_v0  ;;  %v1266_v3 = vmul.f32 %v3644_v36, %v3938_v53  ;;  %v1267_v10 = vmul.f32 %v3938_v53, %v3659_v39  ;;  %v1268_v1 = vmul.f32 %v3938_v53, %v3666_v8 }
 0x271   :  { %v1269_v9 = vmul.f32 %v3656_v60, %v3938_v53  ;;  %v1270_v29 = vmul.f32 %v3664_v7, %v3938_v53  ;;  %v1271_v38 = vmul.f32 %v3938_v53, %v3679_v32  ;;  %v1272_v27 = vmul.f32 %v3938_v53, %v3686_v49 }
 0x272   :  { %v1273_v36 = vmul.f32 %v3676_v28, %v3938_v53  ;;  %v1274_v39 = vmul.f32 %v3684_v46, %v3938_v53  ;;  %v1275_v8 = vmul.f32 %v3938_v53, %v3699_v15  ;;  %v1276_v60 = vmul.f32 %v3938_v53, %v3706_v26 }
 0x273   :  { %v1277_v7 = vmul.f32 %v3696_v13, %v3938_v53  ;;  %v1278_v32 = vmul.f32 %v3704_v25, %v3938_v53  ;;  %v1279_v49 = vmul.f32 %v3938_v53, %v3719_v2  ;;  %v1280_v28 = vmul.f32 %v3938_v53, %v3726_v24 }
 0x274   :  { %v1281_v46 = vmul.f32 %v3716_v61, %v3938_v53  ;;  %v1282_v15 = vmul.f32 %v3724_v23, %v3938_v53  ;;  %v1283_v26 = vmul.f32 %v3938_v53, %v3739_v14  ;;  %v1284_v13 = vmul.f32 %v3938_v53, %v3746_v34 }
 0x275   :  { %v1285_v25 = vmul.f32 %v3736_v59, %v3938_v53  ;;  %v1286_v2 = vmul.f32 %v3744_v33, %v3938_v53  ;;  %v1287_v24 = vmul.f32 %v3938_v53, %v3759_v45  ;;  %v1288_v61 = vmul.f32 %v3938_v53, %v3766_v40  ;;  %v5762_v33 = vld [vmem:[#allocation18_spill] sm:$0xff]  ;;  %v5763_v45 = vld [vmem:[#allocation19_spill] sm:$0xff] }
 0x276   :  { %v1289_v23 = vmul.f32 %v3756_v54, %v3938_v53  ;;  %v1290_v14 = vmul.f32 %v3764_v18, %v3938_v53  ;;  %v1291_v34 = vmul.f32 %v3938_v53, %v3779_v17  ;;  %v1292_v59 = vmul.f32 %v3938_v53, %v5761_v11  ;;  %v5766_v18 = vld [vmem:[#allocation21_spill] sm:$0xff]  ;;  %v5767_v17 = vld [vmem:[#allocation23_spill] sm:$0xff]  ;;  %v5769_v11 = vld [vmem:[#allocation28_spill] sm:$0xff] }
 0x277   :  { %v1293_v6 = vmul.f32 %v5762_v33, %v3938_v53  ;;  %v1294_v62 = vmul.f32 %v5763_v45, %v3938_v53  ;;  %v1295_v40 = vmul.f32 %v3938_v53, %v5764_v41  ;;  %v1296_v54 = vmul.f32 %v3938_v53, %v5765_v50  ;;  %v5770_v45 = vld [vmem:[#allocation25_spill] sm:$0xff]  ;;  %v5771_v41 = vld [vmem:[#allocation27_spill] sm:$0xff] }
 0x278   :  { %v1297_v51 = vmul.f32 %v5766_v18, %v3938_v53  ;;  %v1298_v12 = vmul.f32 %v5767_v17, %v3938_v53  ;;  %v1299_v43 = vmul.f32 %v3938_v53, %v5768_v55  ;;  %v1300_v33 = vmul.f32 %v3938_v53, %v5769_v11  ;;  %v5774_v17 = vld [vmem:[#allocation29_spill] sm:$0xff]  ;;  %v5775_v55 = vld [vmem:[#allocation31_spill] sm:$0xff] }
 0x279   :  { %v1301_v5 = vmul.f32 %v5770_v45, %v3938_v53  ;;  %v1302_v58 = vmul.f32 %v5771_v41, %v3938_v53  ;;  %v1303_v50 = vmul.f32 %v3938_v53, %v5772_v47  ;;  %v1304_v18 = vmul.f32 %v3938_v53, %v5773_v35  ;;  %v5778_v41 = vld [vmem:[#allocation33_spill] sm:$0xff]  ;;  %v5779_v47 = vld [vmem:[#allocation35_spill] sm:$0xff] }
 0x27a   :  { %v1305_v56 = vmul.f32 %v5774_v17, %v3938_v53  ;;  %v1306_v22 = vmul.f32 %v5775_v55, %v3938_v53  ;;  %v1307_v11 = vmul.f32 %v3938_v53, %v5776_v20  ;;  %v1308_v45 = vmul.f32 %v3938_v53, %v5777_v44  ;;  %v5782_v20 = vld [vmem:[#allocation38_spill] sm:$0xff] }
 0x27b   :  { %v1309_v4 = vmul.f32 %v5778_v41, %v3938_v53  ;;  %v1310_v0 = vmul.f32 %v5779_v47, %v3938_v53  ;;  %v1311_v35 = vmul.f32 %v3938_v53, %v5780_v16  ;;  %v1312_v17 = vmul.f32 %v3938_v53, %v5781_v63  ;;  %v5783_v41 = vld [vmem:[#allocation44_spill] sm:$0xff]  ;;  %v5784_v47 = vld [vmem:[#allocation49_spill] sm:$0xff] }
 0x27c   :  { %v1313_v55 = vmul.f32 %v3876_v57, %v3938_v53  ;;  %v1314_v44 = vmul.f32 %v5782_v20, %v3938_v53  ;;  %v4087_v16 = vadd.f32 %v5784_v47, %v5783_v41  ;;  %v5786_v63 = vld [vmem:[#allocation45_spill] sm:$0xff]  ;;  %v5788_v20 = vld [vmem:[#allocation46_spill] sm:$0xff]  ;;  %v5790_v41 = vld [vmem:[#allocation47_spill] sm:$0xff] }
 0x27d   :  { %v4091_v57 = vadd.f32 %v5784_v47, %v5786_v63  ;;  %v4095_v53 = vadd.f32 %v5784_v47, %v5788_v20  ;;  %v5792_v63 = vld [vmem:[#allocation48_spill] sm:$0xff]  ;;  %v4106_v20 = vadd.f32 %v5784_v47, %v1258_v19  ;;  %v4124_v19 = vadd.f32 %v5784_v47, %v1264_v52 }
 0x27e   :  { %5785 = vst [vmem:[#allocation20_spill] sm:$0xff] %v4087_v16  ;;  %v4099_v16 = vadd.f32 %v5784_v47, %v5790_v41  ;;  %v4112_v41 = vadd.f32 %v5784_v47, %v1260_v37  ;;  %v4133_v37 = vadd.f32 %v5784_v47, %v1267_v10  ;;  %v4145_v52 = vadd.f32 %v5784_v47, %v1271_v38 }
 0x27f   :  { %5787 = vst [vmem:[#allocation18_spill] sm:$0xff] %v4091_v57  ;;  %5789 = vst [vmem:[#allocation19_spill] sm:$0xff] %v4095_v53  ;;  %v4103_v57 = vadd.f32 %v5784_v47, %v5792_v63  ;;  %v4109_v53 = vadd.f32 %v5784_v47, %v1259_v21  ;;  %v4118_v63 = vadd.f32 %v5784_v47, %v1262_v30 }
 0x280   :  { %5791 = vst [vmem:[#allocation22_spill] sm:$0xff] %v4099_v16  ;;  %5794 = vst [vmem:[#allocation21_spill] sm:$0xff] %v4106_v20  ;;  %v4115_v16 = vadd.f32 %v5784_v47, %v1261_v48  ;;  %v4127_v20 = vadd.f32 %v5784_v47, %v1265_v42  ;;  %v4130_v21 = vadd.f32 %v5784_v47, %v1266_v3 }
 0x281   :  { %5793 = vst [vmem:[#allocation24_spill] sm:$0xff] %v4103_v57  ;;  %v4121_v57 = vadd.f32 %v5784_v47, %v1263_v31  ;;  %v4136_v48 = vadd.f32 %v5784_v47, %v1268_v1  ;;  %v4139_v30 = vadd.f32 %v5784_v47, %v1269_v9  ;;  %v4142_v31 = vadd.f32 %v5784_v47, %v1270_v29 }
 0x282   :  { %v4148_v42 = vadd.f32 %v5784_v47, %v1272_v27  ;;  %v4151_v3 = vadd.f32 %v5784_v47, %v1273_v36  ;;  %v4154_v10 = vadd.f32 %v5784_v47, %v1274_v39  ;;  %v4157_v1 = vadd.f32 %v5784_v47, %v1275_v8 }
 0x283   :  { %v4160_v9 = vadd.f32 %v5784_v47, %v1276_v60  ;;  %v4163_v29 = vadd.f32 %v5784_v47, %v1277_v7  ;;  %v4166_v38 = vadd.f32 %v5784_v47, %v1278_v32  ;;  %v4169_v27 = vadd.f32 %v5784_v47, %v1279_v49 }
 0x284   :  { %v4172_v36 = vadd.f32 %v5784_v47, %v1280_v28  ;;  %v4175_v39 = vadd.f32 %v5784_v47, %v1281_v46  ;;  %v4178_v8 = vadd.f32 %v5784_v47, %v1282_v15  ;;  %v4181_v60 = vadd.f32 %v5784_v47, %v1283_v26 }
 0x285   :  { %v4184_v7 = vadd.f32 %v5784_v47, %v1284_v13  ;;  %v4187_v32 = vadd.f32 %v5784_v47, %v1285_v25  ;;  %v4190_v49 = vadd.f32 %v5784_v47, %v1286_v2  ;;  %v4193_v28 = vadd.f32 %v5784_v47, %v1287_v24 }
 0x286   :  { %v4196_v46 = vadd.f32 %v5784_v47, %v1288_v61  ;;  %v4199_v15 = vadd.f32 %v5784_v47, %v1289_v23  ;;  %v4202_v26 = vadd.f32 %v5784_v47, %v1290_v14  ;;  %v4205_v13 = vadd.f32 %v5784_v47, %v1291_v34 }
 0x287   :  { %v4208_v25 = vadd.f32 %v5784_v47, %v1292_v59  ;;  %v4211_v2 = vadd.f32 %v5784_v47, %v1293_v6  ;;  %v4214_v24 = vadd.f32 %v5784_v47, %v1294_v62  ;;  %v4217_v61 = vadd.f32 %v5784_v47, %v1295_v40 }
 0x288   :  { %v4220_v23 = vadd.f32 %v5784_v47, %v1296_v54  ;;  %v4223_v14 = vadd.f32 %v5784_v47, %v1297_v51  ;;  %v4226_v34 = vadd.f32 %v5784_v47, %v1298_v12  ;;  %v4229_v59 = vadd.f32 %v5784_v47, %v1299_v43 }
 0x289   :  { %v4232_v6 = vadd.f32 %v5784_v47, %v1300_v33  ;;  %v4235_v62 = vadd.f32 %v5784_v47, %v1301_v5  ;;  %v4238_v40 = vadd.f32 %v5784_v47, %v1302_v58  ;;  %v4241_v54 = vadd.f32 %v5784_v47, %v1303_v50 }
 0x28a   :  { %v4244_v51 = vadd.f32 %v5784_v47, %v1304_v18  ;;  %v4247_v12 = vadd.f32 %v5784_v47, %v1305_v56  ;;  %v4250_v43 = vadd.f32 %v5784_v47, %v1306_v22  ;;  %v4253_v33 = vadd.f32 %v5784_v47, %v1307_v11 }
 0x28b   :  { %5795 = vst [vmem:[#allocation23_spill] sm:$0xff] %v4235_v62  ;;  %5796 = vst [vmem:[#allocation26_spill] sm:$0xff] %v4238_v40  ;;  %v4256_v5 = vadd.f32 %v5784_v47, %v1308_v45  ;;  %v4259_v58 = vadd.f32 %v5784_v47, %v1309_v4  ;;  %v4262_v50 = vadd.f32 %v5784_v47, %v1310_v0  ;;  %v5809_v45 = vld [vmem:[#allocation42_spill] sm:$0xff]  ;;  %v5810_v4 = vld [vmem:[#allocation43_spill] sm:$0xff] }
 0x28c   :  { %5797 = vst [vmem:[#allocation28_spill] sm:$0xff] %v4241_v54  ;;  %5798 = vst [vmem:[#allocation25_spill] sm:$0xff] %v4244_v51  ;;  %v4265_v18 = vadd.f32 %v5784_v47, %v1311_v35  ;;  %v4268_v56 = vadd.f32 %v5784_v47, %v1312_v17  ;;  %v4271_v22 = vadd.f32 %v5784_v47, %v1313_v55  ;;  %v5811_v0 = vld [vmem:[#allocation20_spill] sm:$0xff]  ;;  %v5814_v17 = vld [vmem:[#allocation22_spill] sm:$0xff] }
 0x28d   :  { %5799 = vst [vmem:[#allocation27_spill] sm:$0xff] %v4247_v12  ;;  %5800 = vst [vmem:[#allocation30_spill] sm:$0xff] %v4250_v43  ;;  %v4274_v11 = vadd.f32 %v5784_v47, %v1314_v44  ;;  %v5815_v12 = vld [vmem:[#allocation24_spill] sm:$0xff] }
 0x28e   :  { %5801 = vst [vmem:[#allocation32_spill] sm:$0xff] %v4253_v33  ;;  %5802 = vst [vmem:[#allocation29_spill] sm:$0xff] %v4256_v5  ;;  %v1321_v5 = vadd.f32 %v5784_v47, %v5809_v45  ;;  %v5812_v33 = vld [vmem:[#allocation18_spill] sm:$0xff]  ;;  %v1391_v55 = vmax.f32 %v5815_v12, 0.0  ;;  %v1393_v45 = vmax.f32 %v4109_v53, 0.0  ;;  %v1398_v12 = vmax.f32 %v4124_v19, 0.0 }
 0x28f   :  { %5803 = vst [vmem:[#allocation31_spill] sm:$0xff] %v4259_v58  ;;  %5804 = vst [vmem:[#allocation34_spill] sm:$0xff] %v4262_v50  ;;  %v1322_v58 = vadd.f32 %v5784_v47, %v5810_v4  ;;  %v1387_v50 = vmax.f32 %v5811_v0, 0.0  ;;  %v1388_v35 = vmax.f32 %v5812_v33, 0.0  ;;  %v1394_v47 = vmax.f32 %v4112_v41, 0.0 }
 0x290   :  { %5805 = vst [vmem:[#allocation36_spill] sm:$0xff] %v4265_v18  ;;  %5806 = vst [vmem:[#allocation33_spill] sm:$0xff] %v4268_v56  ;;  %v5813_v18 = vld [vmem:[#allocation19_spill] sm:$0xff]  ;;  %v1390_v56 = vmax.f32 %v5814_v17, 0.0  ;;  %v1385_v44 = vmax.f32 %v1321_v5, 0.0  ;;  %v1395_v4 = vmax.f32 %v4115_v16, 0.0 }
 0x291   :  { %5807 = vst [vmem:[#allocation35_spill] sm:$0xff] %v4271_v22  ;;  %5808 = vst [vmem:[#allocation37_spill] sm:$0xff] %v4274_v11  ;;  %v1389_v43 = vmax.f32 %v5813_v18, 0.0  ;;  %v5816_v22 = vld [vmem:[#allocation21_spill] sm:$0xff]  ;;  %v1386_v11 = vmax.f32 %v1322_v58, 0.0  ;;  %v1450_v54 = vpack.c.bf16 %v1388_v35, %v1387_v50  ;;  %v1396_v18 = vmax.f32 %v4118_v63, 0.0 }
 0x292   :  { %v1392_v51 = vmax.f32 %v5816_v22, 0.0  ;;  %v1397_v0 = vmax.f32 %v4121_v57, 0.0  ;;  %v1453_v17 = vpack.c.bf16 %v1394_v47, %v1393_v45  ;;  %v1399_v5 = vmax.f32 %v4127_v20, 0.0 }
 0x293   :  { %v1451_v40 = vpack.c.bf16 %v1390_v56, %v1389_v43  ;;  %v1449_v33 = vpack.c.bf16 %v1386_v11, %v1385_v44  ;;  %v1400_v58 = vmax.f32 %v4130_v21, 0.0  ;;  %v1401_v53 = vmax.f32 %v4133_v37, 0.0 }
 0x294   :  { %v1452_v62 = vpack.c.bf16 %v1392_v51, %v1391_v55  ;;  %v4295_v51 = vpack.c.bf16 %v1396_v18, %v1395_v4  ;;  %v4297_v41 = vpack.c.bf16 %v1398_v12, %v1397_v0  ;;  %v1402_v16 = vmax.f32 %v4136_v48, 0.0 }
 0x295   :  { %3002 = vmatprep.mubr.bf16.mxu1 %v1449_v33  ;;  %v1403_v63 = vmax.f32 %v4139_v30, 0.0  ;;  %v4301_v57 = vpack.c.bf16 %v1400_v58, %v1399_v5  ;;  %v1404_v19 = vmax.f32 %v4142_v31, 0.0  ;;  %v1405_v20 = vmax.f32 %v4145_v52, 0.0  ;;  %v5832_v30 = vld [vmem:[#allocation27_spill] sm:$0xff] }
 0x296   :  { %3003 = vmatmul.mubr.bf16.vlgmr.msra.gmra.mrb[0].mxu1 %v1450_v54  ;;  %v1406_v21 = vmax.f32 %v4148_v42, 0.0  ;;  %v4306_v37 = vpack.c.bf16 %v1402_v16, %v1401_v53  ;;  %v1407_v43 = vmax.f32 %v4151_v3, 0.0  ;;  %v1408_v50 = vmax.f32 %v4154_v10, 0.0  ;;  %v5833_v54 = vld [vmem:[#allocation30_spill] sm:$0xff] }
 0x297   :  { %3006 = vmatprep.mubr.bf16.mxu1 %v1451_v40  ;;  %v1409_v48 = vmax.f32 %v4157_v1, 0.0  ;;  %v5817_v56 = vmov 1.0|1.0   ;;  %v4317_v31 = vpack.c.bf16 %v1404_v19, %v1403_v63  ;;  %v1410_v42 = vmax.f32 %v4160_v9, 0.0  ;;  %v5829_v19 = vld [vmem:[#allocation26_spill] sm:$0xff] }
 0x298   :  { %3127 = vmatpush3.bf16.msk.msra.mxu1 %vm5820_vm15, %v5817_v56  ;;  %v4319_v52 = vpack.c.bf16 %v1406_v21, %v1405_v20  ;;  %v1411_v40 = vmax.f32 %v4163_v29, 0.0  ;;  %v5821_v3 = vmov 0.0|0.0   ;;  %v4324_v10 = vpack.c.bf16 %v1408_v50, %v1407_v43  ;;  %v5830_v21 = vld [vmem:[#allocation28_spill] sm:$0xff]  ;;  %v5831_v50 = vld [vmem:[#allocation25_spill] sm:$0xff] }
 0x299   :  { %3128 = vmatprep.subr.bf16.mxu1 %v5821_v3  ;;  %v1412_v1 = vmax.f32 %v4166_v38, 0.0  ;;  %v1413_v22 = vmax.f32 %v4169_v27, 0.0  ;;  %v1414_v11 = vmax.f32 %v4172_v36, 0.0  ;;  %v4329_v35 = vpack.c.bf16 %v1410_v42, %v1409_v48  ;;  %v5834_v42 = vld [vmem:[#allocation32_spill] sm:$0xff]  ;;  %v5840_v27 = vld [vmem:[#allocation34_spill] sm:$0xff] }
 0x29a   :  { %v1415_v55 = vmax.f32 %v4175_v39, 0.0  ;;  %v1416_v44 = vmax.f32 %v4178_v8, 0.0  ;;  %v1417_v9 = vmax.f32 %v4181_v60, 0.0  ;;  %v1418_v47 = vmax.f32 %v4184_v7, 0.0 }
 0x29b   :  { %v4334_v45 = vpack.c.bf16 %v1412_v1, %v1411_v40  ;;  %v4336_v29 = vpack.c.bf16 %v1414_v11, %v1413_v22  ;;  %v1419_v38 = vmax.f32 %v4187_v32, 0.0  ;;  %v1420_v8 = vmax.f32 %v4190_v49, 0.0 }
 0x29c   :  { %3130 = vmatpush3.bf16.msk.msra.mxu1 %vm5824_vm1, %v5817_v56  ;;  %v4346_v39 = vpack.c.bf16 %v1416_v44, %v1415_v55  ;;  %v1421_v60 = vmax.f32 %v4193_v28, 0.0  ;;  %v1422_v4 = vmax.f32 %v4196_v46, 0.0  ;;  %v4352_v7 = vpack.c.bf16 %v1418_v47, %v1417_v9  ;;  %v5838_v55 = vld [vmem:[#allocation29_spill] sm:$0xff]  ;;  %v5839_v9 = vld [vmem:[#allocation31_spill] sm:$0xff] }
 0x29d   :  { %3131 = vmatprep.subr.bf16.mxu1 %v5821_v3  ;;  %v1423_v32 = vmax.f32 %v4199_v15, 0.0  ;;  %v1424_v33 = vmax.f32 %v4202_v26, 0.0  ;;  %v1425_v18 = vmax.f32 %v4205_v13, 0.0  ;;  %v1466_v0 = vpack.c.bf16 %v1420_v8, %v1419_v38  ;;  %v5841_v8 = vld [vmem:[#allocation36_spill] sm:$0xff] }
 0x29e   :  { %3007 = vmatmul.mubr.bf16.gmra.mrb[4].mxu1 %v1452_v62  ;;  %v1467_v12 = vpack.c.bf16 %v1422_v4, %v1421_v60  ;;  %v1426_v5 = vmax.f32 %v4208_v25, 0.0  ;;  %v1427_v49 = vmax.f32 %v4211_v2, 0.0  ;;  %v1428_v46 = vmax.f32 %v4214_v24, 0.0  ;;  %v5842_v4 = vld [vmem:[#allocation33_spill] sm:$0xff] }
 0x29f   :  { %3010 = vmatprep.mubr.bf16.mxu1 %v1453_v17  ;;  %v1468_v28 = vpack.c.bf16 %v1424_v33, %v1423_v32  ;;  %v1429_v58 = vmax.f32 %v4217_v61, 0.0  ;;  %v1430_v53 = vmax.f32 %v4220_v23, 0.0  ;;  %v1431_v25 = vmax.f32 %v4223_v14, 0.0  ;;  %v5828_v17 = vld [vmem:[#allocation23_spill] sm:$0xff] }
 0x2a0   :  { %3133 = vmatpush3.bf16.msk.msra.mxu1 %vm5827_vm2, %v5817_v56  ;;  %v1469_v13 = vpack.c.bf16 %v1426_v5, %v1425_v18  ;;  %v1432_v2 = vmax.f32 %v4226_v34, 0.0  ;;  %v1433_v62 = vmax.f32 %v4229_v59, 0.0  ;;  %v1470_v24 = vpack.c.bf16 %v1428_v46, %v1427_v49  ;;  %v5843_v18 = vld [vmem:[#allocation35_spill] sm:$0xff]  ;;  %v5844_v49 = vld [vmem:[#allocation37_spill] sm:$0xff] }
 0x2a1   :  { %3134 = vmatprep.subr.bf16.mxu1 %v5821_v3  ;;  %v1471_v61 = vpack.c.bf16 %v1430_v53, %v1429_v58  ;;  %v1434_v23 = vmax.f32 %v4232_v6, 0.0  ;;  %v1435_v16 = vmax.f32 %v5828_v17, 0.0  ;;  %v1436_v20 = vmax.f32 %v5829_v19, 0.0 }
 0x2a2   :  { %v1472_v63 = vpack.c.bf16 %v1432_v2, %v1431_v25  ;;  %v1437_v43 = vmax.f32 %v5830_v21, 0.0  ;;  %v1438_v48 = vmax.f32 %v5831_v50, 0.0  ;;  %v1439_v34 = vmax.f32 %v5832_v30, 0.0 }
 0x2a3   :  { %v1473_v14 = vpack.c.bf16 %v1434_v23, %v1433_v62  ;;  %v1440_v59 = vmax.f32 %v5833_v54, 0.0  ;;  %v1441_v40 = vmax.f32 %v5834_v42, 0.0  ;;  %v1474_v22 = vpack.c.bf16 %v1436_v20, %v1435_v16  ;;  %v5852_v62 = vld [vmem:[#allocation14_spill] sm:$0xff] }
 0x2a4   :  { %3136 = vmatpush3.bf16.msk.msra.mxu1 %vm5837_vm4, %v5817_v56  ;;  %v1475_v11 = vpack.c.bf16 %v1438_v48, %v1437_v43  ;;  %v1442_v44 = vmax.f32 %v5838_v55, 0.0  ;;  %v1443_v47 = vmax.f32 %v5839_v9, 0.0  ;;  %v1444_v36 = vmax.f32 %v5840_v27, 0.0 }
 0x2a5   :  { %3137 = vmatprep.subr.bf16.mxu1 %v5821_v3  ;;  %v1476_v38 = vpack.c.bf16 %v1440_v59, %v1439_v34  ;;  %v1445_v60 = vmax.f32 %v5841_v8, 0.0  ;;  %v1446_v32 = vmax.f32 %v5842_v4, 0.0  ;;  %v1447_v5 = vmax.f32 %v5843_v18, 0.0 }
 0x2a6   :  { %3011 = vmatmul.mubr.bf16.gmra.mrb[8].mxu1 %v4295_v51  ;;  %v1477_v33 = vpack.c.bf16 %v1442_v44, %v1441_v40  ;;  %v1448_v46 = vmax.f32 %v5844_v49, 0.0  ;;  %v1478_v58 = vpack.c.bf16 %v1444_v36, %v1443_v47  ;;  %vm5853_vm8 = vnez %v5852_v62 }
 0x2a7   :  { %3014 = vmatprep.mubr.bf16.mxu1 %v4297_v41  ;;  %v1479_v53 = vpack.c.bf16 %v1446_v32, %v1445_v60  ;;  %vm5854_vm10 = vmpackc.low %vm3538_vm6, %vm5853_vm8  ;;  %vm5882_vm6 = vcmask 1040384   ;;  %vm2606_vm15 = vcmask 1045509   ;;  %vm2610_vm1 = vcmask 1047559  }
 0x2a8   :  { %3139 = vmatpush3.bf16.msk.msra.mxu1 %vm5847_vm5, %v5817_v56  ;;  %v1480_v25 = vpack.c.bf16 %v1448_v46, %v1447_v5 }
 0x2a9   :  { %3140 = vmatprep.subr.bf16.mxu1 %v5821_v3 }
 0x2ac   :  { %3142 = vmatpush3.bf16.msk.msra.mxu1 %vm5850_vm7, %v5817_v56 }
 0x2ad   :  { %3143 = vmatprep.subr.bf16.mxu1 %v5821_v3 }
 0x2ae   :  { %3015 = vmatmul.mubr.bf16.gmra.mrb[12].mxu1 %v4301_v57  ;;  %v5858_v57 = vmov 0.0  }
 0x2af   :  { %3018 = vmatprep.mubr.bf16.mxu1 %v4306_v37 }
 0x2b0   :  { %3145 = vmatpush3.bf16.msk.msra.mxu1 %vm5854_vm10, %v5817_v56 }
 0x2b1   :  { %3146 = vmatprep.subr.bf16.mxu1 %v5821_v3 }
 0x2b4   :  { %3148 = vmatpush3.bf16.msk.msra.mxu1 %vm5857_vm11, %v5817_v56 }
 0x2b6   :  { %3019 = vmatmul.mubr.bf16.gmra.mrb[16].mxu1 %v4317_v31 }
 0x2b7   :  { %3022 = vmatprep.mubr.bf16.mxu1 %v4319_v52 }
 0x2be   :  { %3023 = vmatmul.mubr.bf16.gmra.mrb[20].mxu1 %v4324_v10 }
 0x2bf   :  { %3026 = vmatprep.mubr.bf16.mxu1 %v4329_v35 }
 0x2c6   :  { %3027 = vmatmul.mubr.bf16.gmra.mrb[24].mxu1 %v4334_v45 }
 0x2c7   :  { %3030 = vmatprep.mubr.bf16.mxu1 %v4336_v29 }
 0x2ce   :  { %3031 = vmatmul.mubr.bf16.gmra.mrb[28].mxu1 %v4346_v39 }
 0x2cf   :  { %3034 = vmatprep.mubr.bf16.mxu1 %v4352_v7 }
 0x2d6   :  { %3035 = vmatmul.mubr.bf16.gmra.mrb[32].mxu1 %v1466_v0 }
 0x2d7   :  { %3038 = vmatprep.mubr.bf16.mxu1 %v1467_v12 }
 0x2de   :  { %3039 = vmatmul.mubr.bf16.gmra.mrb[36].mxu1 %v1468_v28 }
 0x2df   :  { %3042 = vmatprep.mubr.bf16.mxu1 %v1469_v13 }
 0x2e6   :  { %3043 = vmatmul.mubr.bf16.gmra.mrb[40].mxu1 %v1470_v24 }
 0x2e7   :  { %3046 = vmatprep.mubr.bf16.mxu1 %v1471_v61 }
 0x2ee   :  { %3047 = vmatmul.mubr.bf16.gmra.mrb[44].mxu1 %v1472_v63 }
 0x2ef   :  { %3050 = vmatprep.mubr.bf16.mxu1 %v1473_v14 }
 0x2f6   :  { %3051 = vmatmul.mubr.bf16.gmra.mrb[48].mxu1 %v1474_v22 }
 0x2f7   :  { %3054 = vmatprep.mubr.bf16.mxu1 %v1475_v11 }
 0x2fe   :  { %3055 = vmatmul.mubr.bf16.gmra.mrb[52].mxu1 %v1476_v38 }
 0x2ff   :  { %3058 = vmatprep.mubr.bf16.mxu1 %v1477_v33 }
 0x306   :  { %3059 = vmatmul.mubr.bf16.gmra.mrb[56].mxu1 %v1478_v58 }
 0x307   :  { %3062 = vmatprep.mubr.bf16.mxu1 %v1479_v53 }
 0x30e   :  { %3063 = vmatmul.mubr.bf16.gmra.mrb[60].mxu1 %v1480_v25 }
 0x30f   :  { %3098 = vmatprep.mubr.msk.f32.mxu1 %vm5859_vm3, %v5858_v57 }
 0x369   :  { %v4435_v37 = vpop.f32.mrb[0].mxu1 }
 0x36a   :  { %v4437_v56 = vpop.f32.mrb[1].mxu1  ;;  %v1907_v45 = vmul.f32 %v4435_v37, %v4435_v37 }
 0x36b   :  { %v4439_v31 = vpop.f32.mrb[2].mxu1  ;;  %v1905_v3 = vmul.f32 %v4437_v56, %v4437_v56 }
 0x36c   :  { %v4441_v52 = vpop.f32.mrb[3].mxu1  ;;  %v1908_v7 = vmul.f32 %v4439_v31, %v4439_v31 }
 0x36d   :  { %v1836_v10 = vadd.f32 %v4441_v52, %v4437_v56  ;;  %v1906_v35 = vmul.f32 %v4441_v52, %v4441_v52 }
 0x36f   :  { %v1837_v29 = vadd.f32 %v4435_v37, %v1836_v10  ;;  %v1969_v39 = vadd.f32 %v1906_v35, %v1905_v3 }
 0x371   :  { %v1970_v0 = vadd.f32 %v1969_v39, %v1907_v45  ;;  %v4454_v12 = vpop.f32.mrb[4].mxu1  ;;  %v1838_v28 = vadd.f32 %v4439_v31, %v1837_v29 }
 0x372   :  { %v4457_v13 = vpop.f32.mrb[5].mxu1  ;;  %v1911_v50 = vmul.f32 %v4454_v12, %v4454_v12 }
 0x373   :  { %v1839_v24 = vadd.f32 %v1838_v28, %v4457_v13  ;;  %v1909_v61 = vmul.f32 %v4457_v13, %v4457_v13  ;;  %v1971_v16 = vadd.f32 %v1970_v0, %v1908_v7  ;;  %v4462_v63 = vpop.f32.mrb[6].mxu1 }
 0x374   :  { %v4464_v19 = vpop.f32.mrb[7].mxu1  ;;  %v1912_v30 = vmul.f32 %v4462_v63, %v4462_v63 }
 0x375   :  { %v1972_v20 = vadd.f32 %v1971_v16, %v1909_v61  ;;  %v1840_v21 = vadd.f32 %v1839_v24, %v4464_v19  ;;  %v1910_v43 = vmul.f32 %v4464_v19, %v4464_v19 }
 0x377   :  { %v1841_v48 = vadd.f32 %v4454_v12, %v1840_v21  ;;  %v1973_v14 = vadd.f32 %v1972_v20, %v1910_v43 }
 0x379   :  { %v1974_v34 = vadd.f32 %v1973_v14, %v1911_v50  ;;  %v4474_v54 = vpop.f32.mrb[8].mxu1  ;;  %v1842_v59 = vadd.f32 %v4462_v63, %v1841_v48 }
 0x37a   :  { %v4477_v42 = vpop.f32.mrb[9].mxu1  ;;  %v1915_v47 = vmul.f32 %v4474_v54, %v4474_v54 }
 0x37b   :  { %v1843_v40 = vadd.f32 %v1842_v59, %v4477_v42  ;;  %v1913_v1 = vmul.f32 %v4477_v42, %v4477_v42  ;;  %v1975_v6 = vadd.f32 %v1974_v34, %v1912_v30  ;;  %v4482_v22 = vpop.f32.mrb[10].mxu1 }
 0x37c   :  { %v4484_v11 = vpop.f32.mrb[11].mxu1  ;;  %v1916_v36 = vmul.f32 %v4482_v22, %v4482_v22 }
 0x37d   :  { %v1976_v55 = vadd.f32 %v1975_v6, %v1913_v1  ;;  %v1844_v44 = vadd.f32 %v1843_v40, %v4484_v11  ;;  %v1914_v9 = vmul.f32 %v4484_v11, %v4484_v11 }
 0x37f   :  { %v1845_v38 = vadd.f32 %v4474_v54, %v1844_v44  ;;  %v1977_v27 = vadd.f32 %v1976_v55, %v1914_v9 }
 0x381   :  { %v1978_v8 = vadd.f32 %v1977_v27, %v1915_v47  ;;  %v4494_v60 = vpop.f32.mrb[12].mxu1  ;;  %v1846_v4 = vadd.f32 %v4482_v22, %v1845_v38 }
 0x382   :  { %v4497_v32 = vpop.f32.mrb[13].mxu1  ;;  %v1919_v26 = vmul.f32 %v4494_v60, %v4494_v60 }
 0x383   :  { %v1847_v33 = vadd.f32 %v1846_v4, %v4497_v32  ;;  %v1917_v18 = vmul.f32 %v4497_v32, %v4497_v32  ;;  %v1979_v5 = vadd.f32 %v1978_v8, %v1916_v36  ;;  %v4502_v49 = vpop.f32.mrb[14].mxu1 }
 0x384   :  { %v4504_v46 = vpop.f32.mrb[15].mxu1  ;;  %v1920_v2 = vmul.f32 %v4502_v49, %v4502_v49 }
 0x385   :  { %v1980_v58 = vadd.f32 %v1979_v5, %v1917_v18  ;;  %v1848_v53 = vadd.f32 %v1847_v33, %v4504_v46  ;;  %v1918_v15 = vmul.f32 %v4504_v46, %v4504_v46 }
 0x387   :  { %v1849_v25 = vadd.f32 %v4494_v60, %v1848_v53  ;;  %v1981_v51 = vadd.f32 %v1980_v58, %v1918_v15 }
 0x389   :  { %v1982_v41 = vadd.f32 %v1981_v51, %v1919_v26  ;;  %v4514_v62 = vpop.f32.mrb[16].mxu1  ;;  %v1850_v23 = vadd.f32 %v4502_v49, %v1849_v25 }
 0x38a   :  { %v4517_v17 = vpop.f32.mrb[17].mxu1  ;;  %v1923_v0 = vmul.f32 %v4514_v62, %v4514_v62 }
 0x38b   :  { %v1851_v57 = vadd.f32 %v1850_v23, %v4517_v17  ;;  %v1921_v3 = vmul.f32 %v4517_v17, %v4517_v17  ;;  %v1983_v10 = vadd.f32 %v1982_v41, %v1920_v2  ;;  %v4522_v35 = vpop.f32.mrb[18].mxu1 }
 0x38c   :  { %v4524_v45 = vpop.f32.mrb[19].mxu1  ;;  %v1924_v61 = vmul.f32 %v4522_v35, %v4522_v35 }
 0x38d   :  { %v1984_v29 = vadd.f32 %v1983_v10, %v1921_v3  ;;  %v1852_v39 = vadd.f32 %v1851_v57, %v4524_v45  ;;  %v1922_v7 = vmul.f32 %v4524_v45, %v4524_v45 }
 0x38f   :  { %v1853_v28 = vadd.f32 %v4514_v62, %v1852_v39  ;;  %v1985_v24 = vadd.f32 %v1984_v29, %v1922_v7 }
 0x391   :  { %v1986_v16 = vadd.f32 %v1985_v24, %v1923_v0  ;;  %v4534_v20 = vpop.f32.mrb[20].mxu1  ;;  %v1854_v21 = vadd.f32 %v4522_v35, %v1853_v28 }
 0x392   :  { %v4537_v43 = vpop.f32.mrb[21].mxu1  ;;  %v1927_v6 = vmul.f32 %v4534_v20, %v4534_v20 }
 0x393   :  { %v1855_v50 = vadd.f32 %v1854_v21, %v4537_v43  ;;  %v1925_v48 = vmul.f32 %v4537_v43, %v4537_v43  ;;  %v1987_v14 = vadd.f32 %v1986_v16, %v1924_v61  ;;  %v4542_v30 = vpop.f32.mrb[22].mxu1 }
 0x394   :  { %v4544_v34 = vpop.f32.mrb[23].mxu1  ;;  %v1928_v9 = vmul.f32 %v4542_v30, %v4542_v30 }
 0x395   :  { %v1988_v59 = vadd.f32 %v1987_v14, %v1925_v48  ;;  %v1856_v40 = vadd.f32 %v1855_v50, %v4544_v34  ;;  %v1926_v1 = vmul.f32 %v4544_v34, %v4544_v34 }
 0x397   :  { %v1857_v55 = vadd.f32 %v4534_v20, %v1856_v40  ;;  %v1989_v44 = vadd.f32 %v1988_v59, %v1926_v1 }
 0x399   :  { %v1990_v47 = vadd.f32 %v1989_v44, %v1927_v6  ;;  %v4554_v38 = vpop.f32.mrb[24].mxu1  ;;  %v1858_v27 = vadd.f32 %v4542_v30, %v1857_v55 }
 0x39a   :  { %v4557_v36 = vpop.f32.mrb[25].mxu1  ;;  %v1931_v26 = vmul.f32 %v4554_v38, %v4554_v38 }
 0x39b   :  { %v1859_v8 = vadd.f32 %v1858_v27, %v4557_v36  ;;  %v1929_v4 = vmul.f32 %v4557_v36, %v4557_v36  ;;  %v1991_v33 = vadd.f32 %v1990_v47, %v1928_v9  ;;  %v4562_v18 = vpop.f32.mrb[26].mxu1 }
 0x39c   :  { %v4564_v5 = vpop.f32.mrb[27].mxu1  ;;  %v1932_v2 = vmul.f32 %v4562_v18, %v4562_v18 }
 0x39d   :  { %v1992_v58 = vadd.f32 %v1991_v33, %v1929_v4  ;;  %v1860_v53 = vadd.f32 %v1859_v8, %v4564_v5  ;;  %v1930_v15 = vmul.f32 %v4564_v5, %v4564_v5 }
 0x39f   :  { %v1861_v25 = vadd.f32 %v4554_v38, %v1860_v53  ;;  %v1993_v51 = vadd.f32 %v1992_v58, %v1930_v15 }
 0x3a1   :  { %v1994_v41 = vadd.f32 %v1993_v51, %v1931_v26  ;;  %v4574_v23 = vpop.f32.mrb[28].mxu1  ;;  %v1862_v57 = vadd.f32 %v4562_v18, %v1861_v25 }
 0x3a2   :  { %v4577_v3 = vpop.f32.mrb[29].mxu1  ;;  %v1935_v16 = vmul.f32 %v4574_v23, %v4574_v23 }
 0x3a3   :  { %v1863_v10 = vadd.f32 %v1862_v57, %v4577_v3  ;;  %v1933_v29 = vmul.f32 %v4577_v3, %v4577_v3  ;;  %v1995_v39 = vadd.f32 %v1994_v41, %v1932_v2  ;;  %v4582_v7 = vpop.f32.mrb[30].mxu1 }
 0x3a4   :  { %v4584_v0 = vpop.f32.mrb[31].mxu1  ;;  %v1936_v48 = vmul.f32 %v4582_v7, %v4582_v7 }
 0x3a5   :  { %v1996_v28 = vadd.f32 %v1995_v39, %v1933_v29  ;;  %v1864_v24 = vadd.f32 %v1863_v10, %v4584_v0  ;;  %v1934_v61 = vmul.f32 %v4584_v0, %v4584_v0 }
 0x3a7   :  { %v1865_v21 = vadd.f32 %v4574_v23, %v1864_v24  ;;  %v1997_v50 = vadd.f32 %v1996_v28, %v1934_v61 }
 0x3a9   :  { %v1998_v14 = vadd.f32 %v1997_v50, %v1935_v16  ;;  %v4594_v59 = vpop.f32.mrb[32].mxu1  ;;  %v1866_v40 = vadd.f32 %v4582_v7, %v1865_v21 }
 0x3aa   :  { %v4597_v1 = vpop.f32.mrb[33].mxu1  ;;  %v1939_v33 = vmul.f32 %v4594_v59, %v4594_v59 }
 0x3ab   :  { %v1867_v6 = vadd.f32 %v1866_v40, %v4597_v1  ;;  %v1937_v55 = vmul.f32 %v4597_v1, %v4597_v1  ;;  %v1999_v44 = vadd.f32 %v1998_v14, %v1936_v48  ;;  %v4602_v9 = vpop.f32.mrb[34].mxu1 }
 0x3ac   :  { %v4604_v47 = vpop.f32.mrb[35].mxu1  ;;  %v1940_v15 = vmul.f32 %v4602_v9, %v4602_v9 }
 0x3ad   :  { %v2000_v27 = vadd.f32 %v1999_v44, %v1937_v55  ;;  %v1868_v8 = vadd.f32 %v1867_v6, %v4604_v47  ;;  %v1938_v4 = vmul.f32 %v4604_v47, %v4604_v47 }
 0x3af   :  { %v1869_v58 = vadd.f32 %v4594_v59, %v1868_v8  ;;  %v2001_v53 = vadd.f32 %v2000_v27, %v1938_v4 }
 0x3b1   :  { %v2002_v26 = vadd.f32 %v2001_v53, %v1939_v33  ;;  %v4614_v25 = vpop.f32.mrb[36].mxu1  ;;  %v1870_v51 = vadd.f32 %v4602_v9, %v1869_v58 }
 0x3b2   :  { %v4617_v2 = vpop.f32.mrb[37].mxu1  ;;  %v1943_v16 = vmul.f32 %v4614_v25, %v4614_v25 }
 0x3b3   :  { %v1871_v41 = vadd.f32 %v1870_v51, %v4617_v2  ;;  %v1941_v57 = vmul.f32 %v4617_v2, %v4617_v2  ;;  %v2003_v10 = vadd.f32 %v2002_v26, %v1940_v15  ;;  %v4622_v29 = vpop.f32.mrb[38].mxu1 }
 0x3b4   :  { %v4624_v39 = vpop.f32.mrb[39].mxu1  ;;  %v1944_v48 = vmul.f32 %v4622_v29, %v4622_v29 }
 0x3b5   :  { %v2004_v28 = vadd.f32 %v2003_v10, %v1941_v57  ;;  %v1872_v24 = vadd.f32 %v1871_v41, %v4624_v39  ;;  %v1942_v61 = vmul.f32 %v4624_v39, %v4624_v39 }
 0x3b7   :  { %v1873_v21 = vadd.f32 %v4614_v25, %v1872_v24  ;;  %v2005_v50 = vadd.f32 %v2004_v28, %v1942_v61 }
 0x3b9   :  { %v2006_v14 = vadd.f32 %v2005_v50, %v1943_v16  ;;  %v4634_v40 = vpop.f32.mrb[40].mxu1  ;;  %v1874_v6 = vadd.f32 %v4622_v29, %v1873_v21 }
 0x3ba   :  { %5860 = vst [vmem:[#allocation39_spill] sm:$0xff] %v4634_v40  ;;  %v4637_v55 = vpop.f32.mrb[41].mxu1  ;;  %v1947_v26 = vmul.f32 %v4634_v40, %v4634_v40 }
 0x3bb   :  { %v1875_v44 = vadd.f32 %v1874_v6, %v4637_v55  ;;  %v1945_v27 = vmul.f32 %v4637_v55, %v4637_v55  ;;  %v2007_v8 = vadd.f32 %v2006_v14, %v1944_v48  ;;  %v4642_v4 = vpop.f32.mrb[42].mxu1 }
 0x3bc   :  { %5861 = vst [vmem:[#allocation38_spill] sm:$0xff] %v4642_v4  ;;  %v4644_v33 = vpop.f32.mrb[43].mxu1  ;;  %v1948_v57 = vmul.f32 %v4642_v4, %v4642_v4 }
 0x3bd   :  { %5862 = vst [vmem:[#allocation44_spill] sm:$0xff] %v4644_v33  ;;  %v2008_v58 = vadd.f32 %v2007_v8, %v1945_v27  ;;  %v1876_v53 = vadd.f32 %v1875_v44, %v4644_v33  ;;  %v1946_v15 = vmul.f32 %v4644_v33, %v4644_v33 }
 0x3bf   :  { %v1877_v51 = vadd.f32 %v4634_v40, %v1876_v53  ;;  %v2009_v41 = vadd.f32 %v2008_v58, %v1946_v15 }
 0x3c1   :  { %v2010_v10 = vadd.f32 %v2009_v41, %v1947_v26  ;;  %v4654_v28 = vpop.f32.mrb[44].mxu1  ;;  %v1878_v24 = vadd.f32 %v4642_v4, %v1877_v51 }
 0x3c2   :  { %5863 = vst [vmem:[#allocation49_spill] sm:$0xff] %v4654_v28  ;;  %v4657_v61 = vpop.f32.mrb[45].mxu1  ;;  %v1951_v8 = vmul.f32 %v4654_v28, %v4654_v28 }
 0x3c3   :  { %5864 = vst [vmem:[#allocation45_spill] sm:$0xff] %v4657_v61  ;;  %v1879_v16 = vadd.f32 %v1878_v24, %v4657_v61  ;;  %v1949_v21 = vmul.f32 %v4657_v61, %v4657_v61  ;;  %v2011_v50 = vadd.f32 %v2010_v10, %v1948_v57  ;;  %v4662_v48 = vpop.f32.mrb[46].mxu1 }
 0x3c4   :  { %5865 = vst [vmem:[#allocation46_spill] sm:$0xff] %v4662_v48  ;;  %v4664_v14 = vpop.f32.mrb[47].mxu1  ;;  %v1952_v15 = vmul.f32 %v4662_v48, %v4662_v48 }
 0x3c5   :  { %5866 = vst [vmem:[#allocation47_spill] sm:$0xff] %v4664_v14  ;;  %v2012_v6 = vadd.f32 %v2011_v50, %v1949_v21  ;;  %v1880_v44 = vadd.f32 %v1879_v16, %v4664_v14  ;;  %v1950_v27 = vmul.f32 %v4664_v14, %v4664_v14 }
 0x3c7   :  { %v1881_v58 = vadd.f32 %v4654_v28, %v1880_v44  ;;  %v2013_v53 = vadd.f32 %v2012_v6, %v1950_v27 }
 0x3c9   :  { %v2014_v26 = vadd.f32 %v2013_v53, %v1951_v8  ;;  %v4674_v51 = vpop.f32.mrb[48].mxu1  ;;  %v1882_v41 = vadd.f32 %v4662_v48, %v1881_v58 }
 0x3ca   :  { %5867 = vst [vmem:[#allocation48_spill] sm:$0xff] %v4674_v51  ;;  %v4677_v57 = vpop.f32.mrb[49].mxu1  ;;  %v1955_v8 = vmul.f32 %v4674_v51, %v4674_v51 }
 0x3cb   :  { %5868 = vst [vmem:[#allocation42_spill] sm:$0xff] %v4677_v57  ;;  %v1883_v10 = vadd.f32 %v1882_v41, %v4677_v57  ;;  %v1953_v24 = vmul.f32 %v4677_v57, %v4677_v57  ;;  %v2015_v16 = vadd.f32 %v2014_v26, %v1952_v15  ;;  %v4682_v21 = vpop.f32.mrb[50].mxu1 }
 0x3cc   :  { %5869 = vst [vmem:[#allocation43_spill] sm:$0xff] %v4682_v21  ;;  %v4684_v50 = vpop.f32.mrb[51].mxu1  ;;  %v1956_v41 = vmul.f32 %v4682_v21, %v4682_v21 }
 0x3cd   :  { %5870 = vst [vmem:[#allocation20_spill] sm:$0xff] %v4684_v50  ;;  %v2016_v6 = vadd.f32 %v2015_v16, %v1953_v24  ;;  %v1884_v44 = vadd.f32 %v1883_v10, %v4684_v50  ;;  %v1954_v27 = vmul.f32 %v4684_v50, %v4684_v50 }
 0x3cf   :  { %v1885_v58 = vadd.f32 %v4674_v51, %v1884_v44  ;;  %v2017_v53 = vadd.f32 %v2016_v6, %v1954_v27 }
 0x3d1   :  { %v2018_v15 = vadd.f32 %v2017_v53, %v1955_v8  ;;  %v4694_v26 = vpop.f32.mrb[52].mxu1  ;;  %v1886_v57 = vadd.f32 %v4682_v21, %v1885_v58 }
 0x3d2   :  { %5871 = vst [vmem:[#allocation18_spill] sm:$0xff] %v4694_v26  ;;  %v4697_v24 = vpop.f32.mrb[53].mxu1  ;;  %v1959_v58 = vmul.f32 %v4694_v26, %v4694_v26 }
 0x3d3   :  { %5872 = vst [vmem:[#allocation19_spill] sm:$0xff] %v4697_v24  ;;  %v1887_v10 = vadd.f32 %v1886_v57, %v4697_v24  ;;  %v1957_v16 = vmul.f32 %v4697_v24, %v4697_v24  ;;  %v2019_v50 = vadd.f32 %v2018_v15, %v1956_v41  ;;  %v4702_v48 = vpop.f32.mrb[54].mxu1 }
 0x3d4   :  { %5873 = vst [vmem:[#allocation22_spill] sm:$0xff] %v4702_v48  ;;  %v4704_v44 = vpop.f32.mrb[55].mxu1  ;;  %v1960_v24 = vmul.f32 %v4702_v48, %v4702_v48 }
 0x3d5   :  { %5874 = vst [vmem:[#allocation24_spill] sm:$0xff] %v4704_v44  ;;  %v2020_v6 = vadd.f32 %v2019_v50, %v1957_v16  ;;  %v1888_v27 = vadd.f32 %v1887_v10, %v4704_v44  ;;  %v1958_v8 = vmul.f32 %v4704_v44, %v4704_v44 }
 0x3d7   :  { %v1889_v53 = vadd.f32 %v4694_v26, %v1888_v27  ;;  %v2021_v57 = vadd.f32 %v2020_v6, %v1958_v8 }
 0x3d9   :  { %v2022_v41 = vadd.f32 %v2021_v57, %v1959_v58  ;;  %v4714_v15 = vpop.f32.mrb[56].mxu1  ;;  %v1890_v21 = vadd.f32 %v4702_v48, %v1889_v53 }
 0x3da   :  { %5875 = vst [vmem:[#allocation21_spill] sm:$0xff] %v4714_v15  ;;  %v4717_v50 = vpop.f32.mrb[57].mxu1  ;;  %v1963_v53 = vmul.f32 %v4714_v15, %v4714_v15 }
 0x3db   :  { %5876 = vst [vmem:[#allocation3_spill] sm:$0xff] %v4717_v50  ;;  %v1891_v10 = vadd.f32 %v1890_v21, %v4717_v50  ;;  %v1961_v16 = vmul.f32 %v4717_v50, %v4717_v50  ;;  %v2023_v44 = vadd.f32 %v2022_v41, %v1960_v24  ;;  %v4722_v51 = vpop.f32.mrb[58].mxu1 }
 0x3dc   :  { %5877 = vst [vmem:[#allocation2_spill] sm:$0xff] %v4722_v51  ;;  %v4724_v27 = vpop.f32.mrb[59].mxu1  ;;  %v1964_v50 = vmul.f32 %v4722_v51, %v4722_v51 }
 0x3dd   :  { %5878 = vst [vmem:[#allocation5_spill] sm:$0xff] %v4724_v27  ;;  %v2024_v6 = vadd.f32 %v2023_v44, %v1961_v16  ;;  %v1892_v8 = vadd.f32 %v1891_v10, %v4724_v27  ;;  %v1962_v58 = vmul.f32 %v4724_v27, %v4724_v27 }
 0x3df   :  { %v1893_v57 = vadd.f32 %v4714_v15, %v1892_v8  ;;  %v2025_v21 = vadd.f32 %v2024_v6, %v1962_v58 }
 0x3e1   :  { %v2026_v24 = vadd.f32 %v2025_v21, %v1963_v53  ;;  %v4734_v41 = vpop.f32.mrb[60].mxu1  ;;  %v1894_v48 = vadd.f32 %v4722_v51, %v1893_v57 }
 0x3e2   :  { %5879 = vst [vmem:[#allocation4_spill] sm:$0xff] %v4734_v41  ;;  %v4737_v44 = vpop.f32.mrb[61].mxu1  ;;  %v1967_v57 = vmul.f32 %v4734_v41, %v4734_v41 }
 0x3e3   :  { %5880 = vst [vmem:[#allocation7_spill] sm:$0xff] %v4737_v44  ;;  %v1895_v10 = vadd.f32 %v1894_v48, %v4737_v44  ;;  %v1965_v16 = vmul.f32 %v4737_v44, %v4737_v44  ;;  %v2027_v27 = vadd.f32 %v2026_v24, %v1964_v50  ;;  %v4742_v26 = vpop.f32.mrb[62].mxu1 }
 0x3e4   :  { %v4744_v8 = vpop.f32.mrb[63].mxu1  ;;  %v1968_v44 = vmul.f32 %v4742_v26, %v4742_v26 }
 0x3e5   :  { %5881 = vst [vmem:[#allocation6_spill] sm:$0xff] %v4744_v8  ;;  %v2028_v6 = vadd.f32 %v2027_v27, %v1965_v16  ;;  %v1896_v58 = vadd.f32 %v1895_v10, %v4744_v8  ;;  %v1966_v53 = vmul.f32 %v4744_v8, %v4744_v8 }
 0x3e7   :  { %v1897_v21 = vadd.f32 %v4734_v41, %v1896_v58  ;;  %v2029_v48 = vadd.f32 %v2028_v6, %v1966_v53 }
 0x3e9   :  { %v1898_v50 = vadd.f32 %v4742_v26, %v1897_v21  ;;  %v2030_v24 = vadd.f32 %v2029_v48, %v1967_v57 }
 0x3eb   :  { %v1899_v51 = vrot.slane %v1898_v50, 4  ;;  %v2031_v15 = vadd.f32 %v2030_v24, %v1968_v44  ;;  %v5883_v24 = vld [vmem:[#allocation40_spill] sm:$0xff] }
 0x3ed   :  { %v1900_v27 = vadd.f32 %v1899_v51, %v1898_v50  ;;  %v2032_v16 = vrot.slane %v2031_v15, 4 }
 0x3ef   :  { %v1901_v10 = vrot.slane %v1900_v27, 2  ;;  %v2033_v28 = vadd.f32 %v2032_v16, %v2031_v15 }
 0x3f1   :  { %v1902_v14 = vadd.f32 %v1901_v10, %v1900_v27  ;;  %v2034_v8 = vrot.slane %v2033_v28, 2  ;;  %v5902_v10 = vld [vmem:[#allocation24_spill] sm:$0xff] }
 0x3f3   :  { %v1903_v61 = vrot.slane %v1902_v14, 1  ;;  %v2035_v4 = vadd.f32 %v2034_v8, %v2033_v28  ;;  %v4764_v28 = vld [vmem:[%s5575_s6] sm:$0x1] }
 0x3f5   :  { %v2036_v40 = vrot.slane %v2035_v4, 1  ;;  %v1904_v33 = vadd.f32 %v1903_v61, %v1902_v14  ;;  %v5884_v14 = vld [vmem:[#allocation41_spill] sm:$0xff] }
 0x3f7   :  { %v2037_v58 = vadd.f32 %v2036_v40, %v2035_v4  ;;  %v1834_v40 = vld [vmem:[%s5574_s5] sm:$0x1] }
 0x3f9   :  { %v2038_v6 = vsel %vm5882_vm6, %v1904_v33, %v2037_v58 }
 0x3fa   :  { %3099 = vmatmul.mubr.f32.vlgmr.msra.gmra.mrb[64].mxu1 %v2038_v6 }
 0x4cd   :  { %v2105_v53 = vpop.f32.mrb[64].mxu1 }
 0x4ce   :  { %v2109_v41 = vmul.f32 0.00048828125, %v2105_v53  ;;  %v3100_v21 = vpop.f32.mrb[65].mxu1 }
 0x4d0   :  { %v2110_v57 = vmul.f32 %v2109_v41, %v2109_v41 }
 0x4d2   :  { %v2112_v48 = vrot.slane %v2110_v57, 7  ;;  %v5885_v57 = vld [vmem:[#allocation44_spill] sm:$0xff] }
 0x4d4   :  { %v2114_v44 = vsub.f32 %v2109_v41, %v2112_v48  ;;  %v5886_v48 = vld [vmem:[#allocation39_spill] sm:$0xff] }
 0x4d6   :  { %v2115_v51 = vmax.f32 %v2114_v44, 0.0  ;;  %v5887_v44 = vld [vmem:[#allocation38_spill] sm:$0xff] }
 0x4d8   :  { %v2116_v50 = vadd.f32 1e-05, %v2115_v51  ;;  %v5888_v51 = vld [vmem:[#allocation45_spill] sm:$0xff] }
 0x4da   :  { %3200 = vrsqrt.f32 %v2116_v50  ;;  %v5889_v50 = vld [vmem:[#allocation47_spill] sm:$0xff] }
 0x4e4   :  { %v3201_v15 = vpop.eup %3200 }
 0x4e5   :  { %v2125_v27 = vrot.slane %v3201_v15, %v5883_v24  ;;  %v5890_v15 = vld [vmem:[#allocation49_spill] sm:$0xff] }
 0x4e7   :  { %v2126_v16 = vcombine.high %v2125_v27, %v2125_v27  ;;  %v5891_v27 = vld [vmem:[#allocation46_spill] sm:$0xff] }
 0x4e9   :  { %v2133_v4 = vrot.slane %v2126_v16, %v5883_v24 }
 0x4eb   :  { %v2135_v33 = vmul.f32 %v2133_v4, %v1834_v40  ;;  %v5892_v40 = vld [vmem:[#allocation42_spill] sm:$0xff] }
 0x4ed   :  { %v4766_v61 = vmul.f32 %v2135_v33, %v2109_v41  ;;  %v4769_v8 = vrot.slane %v2135_v33, %v5884_v14  ;;  %v5894_v33 = vld [vmem:[#allocation20_spill] sm:$0xff] }
 0x4ef   :  { %v4775_v58 = vmul.f32 %v4769_v8, %v4437_v56  ;;  %v4779_v6 = vmul.f32 %v4769_v8, %v4441_v52  ;;  %v4783_v53 = vmul.f32 %v4435_v37, %v4769_v8  ;;  %v4787_v41 = vmul.f32 %v4439_v31, %v4769_v8 }
 0x4f0   :  { %v4791_v21 = vmul.f32 %v4769_v8, %v4457_v13  ;;  %v4795_v56 = vmul.f32 %v4769_v8, %v4464_v19  ;;  %v4799_v52 = vmul.f32 %v4454_v12, %v4769_v8  ;;  %v4803_v37 = vmul.f32 %v4462_v63, %v4769_v8 }
 0x4f1   :  { %v4807_v31 = vmul.f32 %v4769_v8, %v4477_v42  ;;  %v4811_v13 = vmul.f32 %v4769_v8, %v4484_v11  ;;  %v4815_v19 = vmul.f32 %v4474_v54, %v4769_v8  ;;  %v4819_v12 = vmul.f32 %v4482_v22, %v4769_v8 }
 0x4f2   :  { %v4823_v63 = vmul.f32 %v4769_v8, %v4497_v32  ;;  %v4827_v42 = vmul.f32 %v4769_v8, %v4504_v46  ;;  %v4831_v11 = vmul.f32 %v4494_v60, %v4769_v8  ;;  %v4835_v54 = vmul.f32 %v4502_v49, %v4769_v8 }
 0x4f3   :  { %v4839_v22 = vmul.f32 %v4769_v8, %v4517_v17  ;;  %v4843_v32 = vmul.f32 %v4769_v8, %v4524_v45  ;;  %v4847_v46 = vmul.f32 %v4514_v62, %v4769_v8  ;;  %v4851_v60 = vmul.f32 %v4522_v35, %v4769_v8 }
 0x4f4   :  { %v4855_v49 = vmul.f32 %v4769_v8, %v4537_v43  ;;  %v4859_v17 = vmul.f32 %v4769_v8, %v4544_v34  ;;  %v4863_v45 = vmul.f32 %v4534_v20, %v4769_v8  ;;  %v4867_v62 = vmul.f32 %v4542_v30, %v4769_v8 }
 0x4f5   :  { %v4871_v35 = vmul.f32 %v4769_v8, %v4557_v36  ;;  %v4875_v43 = vmul.f32 %v4769_v8, %v4564_v5  ;;  %v4879_v34 = vmul.f32 %v4554_v38, %v4769_v8  ;;  %v4883_v20 = vmul.f32 %v4562_v18, %v4769_v8 }
 0x4f6   :  { %v4887_v30 = vmul.f32 %v4769_v8, %v4577_v3  ;;  %v4891_v36 = vmul.f32 %v4769_v8, %v4584_v0  ;;  %v4895_v5 = vmul.f32 %v4574_v23, %v4769_v8  ;;  %v4899_v38 = vmul.f32 %v4582_v7, %v4769_v8 }
 0x4f7   :  { %v4903_v18 = vmul.f32 %v4769_v8, %v4597_v1  ;;  %v4907_v3 = vmul.f32 %v4769_v8, %v4604_v47  ;;  %v4911_v0 = vmul.f32 %v4594_v59, %v4769_v8  ;;  %v4915_v23 = vmul.f32 %v4602_v9, %v4769_v8 }
 0x4f8   :  { %v4919_v7 = vmul.f32 %v4769_v8, %v4617_v2  ;;  %v4923_v1 = vmul.f32 %v4769_v8, %v4624_v39  ;;  %v4927_v47 = vmul.f32 %v4614_v25, %v4769_v8  ;;  %v4931_v59 = vmul.f32 %v4622_v29, %v4769_v8 }
 0x4f9   :  { %v4935_v9 = vmul.f32 %v4769_v8, %v4637_v55  ;;  %v4939_v2 = vmul.f32 %v4769_v8, %v5885_v57  ;;  %v4943_v39 = vmul.f32 %v5886_v48, %v4769_v8  ;;  %v4947_v25 = vmul.f32 %v5887_v44, %v4769_v8  ;;  %v5896_v48 = vld [vmem:[#allocation48_spill] sm:$0xff] }
 0x4fa   :  { %v4951_v29 = vmul.f32 %v4769_v8, %v5888_v51  ;;  %v4955_v55 = vmul.f32 %v4769_v8, %v5889_v50  ;;  %v4959_v24 = vmul.f32 %v5890_v15, %v4769_v8  ;;  %v4963_v16 = vmul.f32 %v5891_v27, %v4769_v8  ;;  %v5898_v51 = vld [vmem:[#allocation43_spill] sm:$0xff] }
 0x4fb   :  { %v4967_v4 = vmul.f32 %v4769_v8, %v5892_v40  ;;  %v4971_v57 = vmul.f32 %v4769_v8, %v5894_v33  ;;  %v4975_v44 = vmul.f32 %v5896_v48, %v4769_v8  ;;  %v4979_v50 = vmul.f32 %v5898_v51, %v4769_v8  ;;  %v5900_v15 = vld [vmem:[#allocation19_spill] sm:$0xff] }
 0x4fc   :  { %v4983_v27 = vmul.f32 %v4769_v8, %v5900_v15  ;;  %v4987_v40 = vmul.f32 %v4769_v8, %v5902_v10 }
 0x4fd   :  { %5893 = vst [vmem:[#allocation23_spill] sm:$0xff] %v4967_v4  ;;  %5895 = vst [vmem:[#allocation26_spill] sm:$0xff] %v4971_v57  ;;  %v5904_v4 = vld [vmem:[#allocation18_spill] sm:$0xff] }
 0x4fe   :  { %5897 = vst [vmem:[#allocation28_spill] sm:$0xff] %v4975_v44  ;;  %5899 = vst [vmem:[#allocation25_spill] sm:$0xff] %v4979_v50  ;;  %v4991_v33 = vmul.f32 %v5904_v4, %v4769_v8  ;;  %v5906_v57 = vld [vmem:[#allocation22_spill] sm:$0xff]  ;;  %v5908_v44 = vld [vmem:[#allocation3_spill] sm:$0xff] }
 0x4ff   :  { %5901 = vst [vmem:[#allocation27_spill] sm:$0xff] %v4983_v27  ;;  %5903 = vst [vmem:[#allocation30_spill] sm:$0xff] %v4987_v40  ;;  %v4995_v48 = vmul.f32 %v5906_v57, %v4769_v8  ;;  %v4999_v51 = vmul.f32 %v4769_v8, %v5908_v44  ;;  %v5910_v50 = vld [vmem:[#allocation5_spill] sm:$0xff]  ;;  %v5912_v40 = vld [vmem:[#allocation2_spill] sm:$0xff] }
 0x500   :  { %5905 = vst [vmem:[#allocation32_spill] sm:$0xff] %v4991_v33  ;;  %v5003_v15 = vmul.f32 %v4769_v8, %v5910_v50  ;;  %v5911_v27 = vld [vmem:[#allocation21_spill] sm:$0xff]  ;;  %v5011_v4 = vmul.f32 %v5912_v40, %v4769_v8  ;;  %v5914_v33 = vld [vmem:[#allocation7_spill] sm:$0xff]  ;;  %v5917_v40 = vsub.f32 %v4764_v28, %v4766_v61 }
 0x501   :  { %5907 = vst [vmem:[#allocation9_spill] sm:$0xff] %v4995_v48  ;;  %5909 = vst [vmem:[#allocation8_spill] sm:$0xff] %v4999_v51  ;;  %v5007_v10 = vmul.f32 %v5911_v27, %v4769_v8  ;;  %v5015_v57 = vmul.f32 %v4769_v8, %v5914_v33  ;;  %v5915_v48 = vld [vmem:[#allocation6_spill] sm:$0xff]  ;;  %v5916_v51 = vld [vmem:[#allocation4_spill] sm:$0xff]  ;;  %v5027_v27 = vmul.f32 %v4742_v26, %v4769_v8 }
 0x502   :  { %5913 = vst [vmem:[#allocation29_spill] sm:$0xff] %v5011_v4  ;;  %v5019_v44 = vmul.f32 %v4769_v8, %v5915_v48  ;;  %v5023_v50 = vmul.f32 %v5916_v51, %v4769_v8  ;;  %v5033_v4 = vrot.slane %v5917_v40, %v5884_v14 }
 0x504   :  { %v5037_v33 = vadd.f32 %v5033_v4, %v4775_v58  ;;  %v5041_v48 = vadd.f32 %v5033_v4, %v4779_v6  ;;  %v5045_v51 = vadd.f32 %v5033_v4, %v4783_v53  ;;  %v5049_v26 = vadd.f32 %v5033_v4, %v4787_v41 }
 0x505   :  { %v5053_v28 = vadd.f32 %v5033_v4, %v4791_v21  ;;  %v5057_v61 = vadd.f32 %v5033_v4, %v4795_v56  ;;  %v5061_v14 = vadd.f32 %v5033_v4, %v4799_v52  ;;  %v5065_v8 = vadd.f32 %v5033_v4, %v4803_v37  ;;  %v5931_v40 = vld [vmem:[#allocation25_spill] sm:$0xff] }
 0x506   :  { %v5069_v58 = vadd.f32 %v5033_v4, %v4807_v31  ;;  %v5073_v6 = vadd.f32 %v5033_v4, %v4811_v13  ;;  %v5077_v53 = vadd.f32 %v5033_v4, %v4815_v19  ;;  %v5081_v41 = vadd.f32 %v5033_v4, %v4819_v12 }
 0x507   :  { %v5085_v21 = vadd.f32 %v5033_v4, %v4823_v63  ;;  %v5089_v56 = vadd.f32 %v5033_v4, %v4827_v42  ;;  %v5093_v52 = vadd.f32 %v5033_v4, %v4831_v11  ;;  %v5097_v37 = vadd.f32 %v5033_v4, %v4835_v54 }
 0x508   :  { %v5101_v31 = vadd.f32 %v5033_v4, %v4839_v22  ;;  %v5105_v13 = vadd.f32 %v5033_v4, %v4843_v32  ;;  %v5109_v19 = vadd.f32 %v5033_v4, %v4847_v46  ;;  %v5113_v12 = vadd.f32 %v5033_v4, %v4851_v60 }
 0x509   :  { %v5117_v63 = vadd.f32 %v5033_v4, %v4855_v49  ;;  %v5121_v42 = vadd.f32 %v5033_v4, %v4859_v17  ;;  %v5125_v11 = vadd.f32 %v5033_v4, %v4863_v45  ;;  %v5129_v54 = vadd.f32 %v5033_v4, %v4867_v62 }
 0x50a   :  { %v5133_v22 = vadd.f32 %v5033_v4, %v4871_v35  ;;  %v5137_v32 = vadd.f32 %v5033_v4, %v4875_v43  ;;  %v5141_v46 = vadd.f32 %v5033_v4, %v4879_v34  ;;  %v5145_v60 = vadd.f32 %v5033_v4, %v4883_v20 }
 0x50b   :  { %v5149_v49 = vadd.f32 %v5033_v4, %v4887_v30  ;;  %v5153_v17 = vadd.f32 %v5033_v4, %v4891_v36  ;;  %v5157_v45 = vadd.f32 %v5033_v4, %v4895_v5  ;;  %v5161_v62 = vadd.f32 %v5033_v4, %v4899_v38 }
 0x50c   :  { %v5165_v35 = vadd.f32 %v5033_v4, %v4903_v18  ;;  %v5169_v43 = vadd.f32 %v5033_v4, %v4907_v3  ;;  %v5173_v34 = vadd.f32 %v5033_v4, %v4911_v0  ;;  %v5177_v20 = vadd.f32 %v5033_v4, %v4915_v23 }
 0x50d   :  { %v5181_v30 = vadd.f32 %v5033_v4, %v4919_v7  ;;  %v5185_v36 = vadd.f32 %v5033_v4, %v4923_v1  ;;  %v5189_v5 = vadd.f32 %v5033_v4, %v4927_v47  ;;  %v5193_v38 = vadd.f32 %v5033_v4, %v4931_v59 }
 0x50e   :  { %v5197_v18 = vadd.f32 %v5033_v4, %v4935_v9  ;;  %v5201_v3 = vadd.f32 %v5033_v4, %v4939_v2  ;;  %v5205_v0 = vadd.f32 %v5033_v4, %v4943_v39  ;;  %v5209_v23 = vadd.f32 %v5033_v4, %v4947_v25  ;;  %v5925_v9 = vld [vmem:[#allocation23_spill] sm:$0xff]  ;;  %v5927_v39 = vld [vmem:[#allocation26_spill] sm:$0xff] }
 0x50f   :  { %5918 = vst [vmem:[#allocation31_spill] sm:$0xff] %v5181_v30  ;;  %5919 = vst [vmem:[#allocation34_spill] sm:$0xff] %v5185_v36  ;;  %v5213_v7 = vadd.f32 %v5033_v4, %v4951_v29  ;;  %v5217_v1 = vadd.f32 %v5033_v4, %v4955_v55  ;;  %v5221_v47 = vadd.f32 %v5033_v4, %v4959_v24  ;;  %v5929_v29 = vld [vmem:[#allocation28_spill] sm:$0xff] }
 0x510   :  { %5920 = vst [vmem:[#allocation36_spill] sm:$0xff] %v5189_v5  ;;  %5921 = vst [vmem:[#allocation33_spill] sm:$0xff] %v5193_v38  ;;  %v5225_v59 = vadd.f32 %v5033_v4, %v4963_v16  ;;  %v5229_v2 = vadd.f32 %v5033_v4, %v5925_v9  ;;  %v5233_v25 = vadd.f32 %v5033_v4, %v5927_v39 }
 0x511   :  { %5922 = vst [vmem:[#allocation35_spill] sm:$0xff] %v5205_v0  ;;  %5923 = vst [vmem:[#allocation37_spill] sm:$0xff] %v5221_v47  ;;  %v5237_v55 = vadd.f32 %v5033_v4, %v5929_v29  ;;  %v5241_v24 = vadd.f32 %v5033_v4, %v5931_v40  ;;  %v5933_v47 = vld [vmem:[#allocation27_spill] sm:$0xff] }
 0x512   :  { %5924 = vst [vmem:[#allocation11_spill] sm:$0xff] %v5225_v59  ;;  %5926 = vst [vmem:[#allocation10_spill] sm:$0xff] %v5229_v2  ;;  %v5245_v16 = vadd.f32 %v5033_v4, %v5933_v47  ;;  %v5934_v59 = vld [vmem:[#allocation30_spill] sm:$0xff]  ;;  %v5936_v2 = vld [vmem:[#allocation32_spill] sm:$0xff]  ;;  %v5265_v47 = vadd.f32 %v5033_v4, %v5003_v15  ;;  %v5285_v15 = vadd.f32 %v5033_v4, %v5023_v50  ;;  %v2285_v50 = vmax.f32 %v5065_v8, 0.0 }
 0x513   :  { %5928 = vst [vmem:[#allocation13_spill] sm:$0xff] %v5233_v25  ;;  %5930 = vst [vmem:[#allocation12_spill] sm:$0xff] %v5237_v55  ;;  %v5249_v9 = vadd.f32 %v5033_v4, %v5934_v59  ;;  %v5253_v39 = vadd.f32 %v5033_v4, %v5936_v2  ;;  %v5938_v25 = vld [vmem:[#allocation9_spill] sm:$0xff]  ;;  %v5940_v55 = vld [vmem:[#allocation8_spill] sm:$0xff]  ;;  %v5269_v59 = vadd.f32 %v5033_v4, %v5007_v10 }
 0x514   :  { %5932 = vst [vmem:[#allocation15_spill] sm:$0xff] %v5241_v24  ;;  %v5257_v29 = vadd.f32 %v5033_v4, %v5938_v25  ;;  %v5261_v40 = vadd.f32 %v5033_v4, %v5940_v55  ;;  %5942 = vst [vmem:[#allocation41_spill] sm:$0xff] %v5265_v47  ;;  %v5277_v25 = vadd.f32 %v5033_v4, %v5015_v57  ;;  %v2281_v57 = vmax.f32 %v5049_v26, 0.0 }
 0x515   :  { %5935 = vst [vmem:[#allocation14_spill] sm:$0xff] %v5249_v9  ;;  %5937 = vst [vmem:[#allocation17_spill] sm:$0xff] %v5253_v39  ;;  %v5944_v9 = vld [vmem:[#allocation29_spill] sm:$0xff]  ;;  %v5281_v55 = vadd.f32 %v5033_v4, %v5019_v44  ;;  %v5289_v10 = vadd.f32 %v5033_v4, %v5027_v27  ;;  %v2283_v44 = vmax.f32 %v5057_v61, 0.0  ;;  %v2288_v27 = vmax.f32 %v5077_v53, 0.0 }
 0x516   :  { %5939 = vst [vmem:[#allocation16_spill] sm:$0xff] %v5257_v29  ;;  %5941 = vst [vmem:[#allocation40_spill] sm:$0xff] %v5261_v40  ;;  %v5273_v2 = vadd.f32 %v5033_v4, %v5944_v9  ;;  %v2287_v4 = vmax.f32 %v5073_v6, 0.0  ;;  %v2291_v26 = vmax.f32 %v5089_v56, 0.0  ;;  %v2293_v61 = vmax.f32 %v5097_v37, 0.0 }
 0x517   :  { %5943 = vst [vmem:[#allocation44_spill] sm:$0xff] %v5269_v59  ;;  %5946 = vst [vmem:[#allocation38_spill] sm:$0xff] %v5277_v25  ;;  %v2282_v25 = vmax.f32 %v5053_v28, 0.0  ;;  %v2289_v59 = vmax.f32 %v5081_v41, 0.0  ;;  %v2292_v28 = vmax.f32 %v5093_v52, 0.0  ;;  %v5961_v52 = vmax.f32 %v5041_v48, 0.0 }
 0x518   :  { %5945 = vst [vmem:[#allocation39_spill] sm:$0xff] %v5273_v2  ;;  %5947 = vst [vmem:[#allocation45_spill] sm:$0xff] %v5281_v55  ;;  %v2284_v55 = vmax.f32 %v5061_v14, 0.0  ;;  %v2290_v2 = vmax.f32 %v5085_v21, 0.0  ;;  %v5962_v37 = vmax.f32 %v5037_v33, 0.0  ;;  %v5963_v14 = vmax.f32 %v5045_v51, 0.0 }
 0x519   :  { %5948 = vst [vmem:[#allocation47_spill] sm:$0xff] %v5285_v15  ;;  %5949 = vst [vmem:[#allocation49_spill] sm:$0xff] %v5289_v10  ;;  %v2286_v15 = vmax.f32 %v5069_v58, 0.0  ;;  %v5951_v30 = vld [vmem:[#allocation11_spill] sm:$0xff]  ;;  %v2356_v40 = vmax.f32 %v2282_v25, %v2283_v44  ;;  %v2377_v6 = vmax.f32 %v2288_v27, %v2289_v59  ;;  %v2391_v53 = vmax.f32 %v2292_v28, %v2293_v61 }
 0x51a   :  { %v2342_v39 = vmax.f32 %v5962_v37, %v5961_v52  ;;  %v2349_v8 = vmax.f32 %v5963_v14, %v2281_v57  ;;  %v2363_v58 = vmax.f32 %v2284_v55, %v2285_v50  ;;  %v2384_v36 = vmax.f32 %v2290_v2, %v2291_v26 }
 0x51b   :  { %v2370_v9 = vmax.f32 %v2286_v15, %v2287_v4  ;;  %v2357_v38 = vrot.slane %v2356_v40, 4  ;;  %v2378_v56 = vrot.slane %v2377_v6, 4  ;;  %v2392_v48 = vrot.slane %v2391_v53, 4 }
 0x51c   :  { %v5955_v0 = vld [vmem:[#allocation14_spill] sm:$0xff]  ;;  %v2343_v5 = vrot.slane %v2342_v39, 4  ;;  %v2350_v41 = vrot.slane %v2349_v8, 4  ;;  %v2364_v21 = vrot.slane %v2363_v58, 4  ;;  %v2385_v10 = vrot.slane %v2384_v36, 4 }
 0x51d   :  { %v2371_v24 = vrot.slane %v2370_v9, 4  ;;  %v2358_v52 = vmax.f32 %v2356_v40, %v2357_v38  ;;  %v2379_v57 = vmax.f32 %v2377_v6, %v2378_v56  ;;  %v2393_v55 = vmax.f32 %v2391_v53, %v2392_v48 }
 0x51e   :  { %v2344_v47 = vmax.f32 %v2342_v39, %v2343_v5  ;;  %v2351_v33 = vmax.f32 %v2349_v8, %v2350_v41  ;;  %v2365_v37 = vmax.f32 %v2363_v58, %v2364_v21  ;;  %v2386_v25 = vmax.f32 %v2384_v36, %v2385_v10 }
 0x51f   :  { %v2372_v51 = vmax.f32 %v2370_v9, %v2371_v24  ;;  %v2359_v2 = vrot.slane %v2358_v52, 2  ;;  %v2380_v4 = vrot.slane %v2379_v57, 2  ;;  %v2394_v26 = vrot.slane %v2393_v55, 2 }
 0x520   :  { %v2345_v15 = vrot.slane %v2344_v47, 2  ;;  %v2352_v59 = vrot.slane %v2351_v33, 2  ;;  %v2366_v44 = vrot.slane %v2365_v37, 2  ;;  %v2387_v27 = vrot.slane %v2386_v25, 2 }
 0x521   :  { %v2373_v50 = vrot.slane %v2372_v51, 2  ;;  %v2360_v14 = vmax.f32 %v2358_v52, %v2359_v2  ;;  %v2381_v39 = vmax.f32 %v2379_v57, %v2380_v4  ;;  %v2395_v40 = vmax.f32 %v2393_v55, %v2394_v26 }
 0x522   :  { %v2346_v28 = vmax.f32 %v2344_v47, %v2345_v15  ;;  %v2353_v61 = vmax.f32 %v2351_v33, %v2352_v59  ;;  %v2367_v29 = vmax.f32 %v2365_v37, %v2366_v44  ;;  %v2388_v38 = vmax.f32 %v2386_v25, %v2387_v27 }
 0x523   :  { %v2374_v5 = vmax.f32 %v2372_v51, %v2373_v50  ;;  %v2361_v36 = vrot.slane %v2360_v14, 1  ;;  %v2382_v58 = vrot.slane %v2381_v39, 1  ;;  %v2396_v53 = vrot.slane %v2395_v40, 1 }
 0x524   :  { %v2347_v24 = vrot.slane %v2346_v28, 1  ;;  %v2354_v9 = vrot.slane %v2353_v61, 1  ;;  %v2368_v10 = vrot.slane %v2367_v29, 1  ;;  %v2389_v6 = vrot.slane %v2388_v38, 1 }
 0x525   :  { %v2375_v8 = vrot.slane %v2374_v5, 1  ;;  %v5365_v47 = vmax.f32 %v2360_v14, %v2361_v36  ;;  %v5371_v33 = vmax.f32 %v2381_v39, %v2382_v58  ;;  %v5375_v37 = vmax.f32 %v2395_v40, %v2396_v53 }
 0x526   :  { %v5361_v41 = vmax.f32 %v2346_v28, %v2347_v24  ;;  %v5363_v21 = vmax.f32 %v2353_v61, %v2354_v9  ;;  %v5367_v56 = vmax.f32 %v2367_v29, %v2368_v10  ;;  %v5373_v52 = vmax.f32 %v2388_v38, %v2389_v6 }
 0x527   :  { %v5369_v48 = vmax.f32 %v2374_v5, %v2375_v8  ;;  %v5964_v51 = vmax.f32 %v5105_v13, 0.0  ;;  %v5965_v57 = vmax.f32 %v5101_v31, 0.0  ;;  %v5966_v55 = vmax.f32 %v5113_v12, 0.0 }
 0x528   :  { %v5967_v15 = vmax.f32 %v5109_v19, 0.0  ;;  %v5968_v29 = vmax.f32 %v5121_v42, 0.0  ;;  %v5969_v2 = vmax.f32 %v5117_v63, 0.0  ;;  %v5970_v50 = vmax.f32 %v5129_v54, 0.0 }
 0x529   :  { %v2398_v25 = vmax.f32 %v5965_v57, %v5964_v51  ;;  %v5971_v4 = vmax.f32 %v5125_v11, 0.0  ;;  %v5972_v13 = vmax.f32 %v5137_v32, 0.0  ;;  %v5973_v31 = vmax.f32 %v5133_v22, 0.0 }
 0x52a   :  { %v2405_v59 = vmax.f32 %v5967_v15, %v5966_v55  ;;  %v2412_v44 = vmax.f32 %v5969_v2, %v5968_v29  ;;  %v5974_v12 = vmax.f32 %v5145_v60, 0.0  ;;  %v5975_v19 = vmax.f32 %v5141_v46, 0.0 }
 0x52b   :  { %v2419_v27 = vmax.f32 %v5971_v4, %v5970_v50  ;;  %v2426_v26 = vmax.f32 %v5973_v31, %v5972_v13  ;;  %v5976_v42 = vmax.f32 %v5153_v17, 0.0  ;;  %v5977_v63 = vmax.f32 %v5149_v49, 0.0 }
 0x52c   :  { %v2433_v28 = vmax.f32 %v5975_v19, %v5974_v12  ;;  %v5978_v54 = vmax.f32 %v5161_v62, 0.0  ;;  %v5979_v11 = vmax.f32 %v5157_v45, 0.0  ;;  %v2399_v5 = vrot.slane %v2398_v25, 4 }
 0x52d   :  { %v2440_v61 = vmax.f32 %v5977_v63, %v5976_v42  ;;  %v2406_v32 = vrot.slane %v2405_v59, 4  ;;  %v2413_v39 = vrot.slane %v2412_v44, 4  ;;  %v2420_v22 = vrot.slane %v2419_v27, 4 }
 0x52e   :  { %v2447_v14 = vmax.f32 %v5979_v11, %v5978_v54  ;;  %v2427_v38 = vrot.slane %v2426_v26, 4  ;;  %v2434_v40 = vrot.slane %v2433_v28, 4  ;;  %v2400_v46 = vmax.f32 %v2398_v25, %v2399_v5 }
 0x52f   :  { %v2441_v60 = vrot.slane %v2440_v61, 4  ;;  %v2407_v9 = vmax.f32 %v2405_v59, %v2406_v32  ;;  %v2414_v36 = vmax.f32 %v2412_v44, %v2413_v39  ;;  %v2421_v17 = vmax.f32 %v2419_v27, %v2420_v22 }
 0x530   :  { %v2448_v24 = vrot.slane %v2447_v14, 4  ;;  %v2428_v10 = vmax.f32 %v2426_v26, %v2427_v38  ;;  %v2435_v49 = vmax.f32 %v2433_v28, %v2434_v40  ;;  %v2401_v62 = vrot.slane %v2400_v46, 2 }
 0x531   :  { %v2442_v8 = vmax.f32 %v2440_v61, %v2441_v60  ;;  %v2408_v6 = vrot.slane %v2407_v9, 2  ;;  %v2415_v45 = vrot.slane %v2414_v36, 2  ;;  %v2422_v53 = vrot.slane %v2421_v17, 2 }
 0x532   :  { %v2449_v58 = vmax.f32 %v2447_v14, %v2448_v24  ;;  %v2429_v51 = vrot.slane %v2428_v10, 2  ;;  %v2436_v57 = vrot.slane %v2435_v49, 2  ;;  %v2402_v29 = vmax.f32 %v2400_v46, %v2401_v62 }
 0x533   :  { %v2443_v55 = vrot.slane %v2442_v8, 2  ;;  %v2409_v2 = vmax.f32 %v2407_v9, %v2408_v6  ;;  %v2416_v50 = vmax.f32 %v2414_v36, %v2415_v45  ;;  %v2423_v4 = vmax.f32 %v2421_v17, %v2422_v53  ;;  %v5984_v36 = vld [vmem:[#allocation34_spill] sm:$0xff]  ;;  %v5990_v6 = vld [vmem:[#allocation36_spill] sm:$0xff] }
 0x534   :  { %v2450_v15 = vrot.slane %v2449_v58, 2  ;;  %v2430_v25 = vmax.f32 %v2428_v10, %v2429_v51  ;;  %v2437_v59 = vmax.f32 %v2435_v49, %v2436_v57  ;;  %v2403_v13 = vrot.slane %v2402_v29, 1  ;;  %v5986_v10 = vld [vmem:[#allocation31_spill] sm:$0xff] }
 0x535   :  { %v2444_v44 = vmax.f32 %v2442_v8, %v2443_v55  ;;  %v2410_v31 = vrot.slane %v2409_v2, 1  ;;  %v2417_v26 = vrot.slane %v2416_v50, 1  ;;  %v2424_v12 = vrot.slane %v2423_v4, 1  ;;  %v5995_v57 = vld [vmem:[#allocation35_spill] sm:$0xff] }
 0x536   :  { %v2451_v27 = vmax.f32 %v2449_v58, %v2450_v15  ;;  %v2431_v19 = vrot.slane %v2430_v25, 1  ;;  %v2438_v28 = vrot.slane %v2437_v59, 1  ;;  %v5409_v61 = vmax.f32 %v2402_v29, %v2403_v13  ;;  %v5988_v58 = vld [vmem:[#allocation33_spill] sm:$0xff] }
 0x537   :  { %v2445_v42 = vrot.slane %v2444_v44, 1  ;;  %v5411_v54 = vmax.f32 %v2409_v2, %v2410_v31  ;;  %v5413_v11 = vmax.f32 %v2416_v50, %v2417_v26  ;;  %v5415_v14 = vmax.f32 %v2423_v4, %v2424_v12  ;;  %v6000_v4 = vld [vmem:[#allocation37_spill] sm:$0xff] }
 0x538   :  { %v2452_v63 = vrot.slane %v2451_v27, 1  ;;  %v5417_v5 = vmax.f32 %v2430_v25, %v2431_v19  ;;  %v5419_v32 = vmax.f32 %v2437_v59, %v2438_v28  ;;  %v5980_v38 = vmax.f32 %v5169_v43, 0.0 }
 0x539   :  { %v5421_v39 = vmax.f32 %v2444_v44, %v2445_v42  ;;  %v5981_v40 = vmax.f32 %v5165_v35, 0.0  ;;  %v5982_v24 = vmax.f32 %v5177_v20, 0.0  ;;  %v5983_v46 = vmax.f32 %v5173_v34, 0.0 }
 0x53a   :  { %v5423_v22 = vmax.f32 %v2451_v27, %v2452_v63  ;;  %v5985_v17 = vmax.f32 %v5984_v36, 0.0  ;;  %v5987_v49 = vmax.f32 %v5986_v10, 0.0  ;;  %v5989_v62 = vmax.f32 %v5988_v58, 0.0 }
 0x53b   :  { %v2454_v60 = vmax.f32 %v5981_v40, %v5980_v38  ;;  %v2461_v9 = vmax.f32 %v5983_v46, %v5982_v24  ;;  %v5991_v45 = vmax.f32 %v5990_v6, 0.0  ;;  %v5992_v43 = vmax.f32 %v5201_v3, 0.0 }
 0x53c   :  { %v2468_v8 = vmax.f32 %v5987_v49, %v5985_v17  ;;  %v5993_v35 = vmax.f32 %v5197_v18, 0.0  ;;  %v5994_v20 = vmax.f32 %v5209_v23, 0.0  ;;  %v5996_v34 = vmax.f32 %v5995_v57, 0.0 }
 0x53d   :  { %v2475_v53 = vmax.f32 %v5991_v45, %v5989_v62  ;;  %v5997_v15 = vmax.f32 %v5217_v1, 0.0  ;;  %v5998_v29 = vmax.f32 %v5213_v7, 0.0  ;;  %v5999_v50 = vmax.f32 %v5951_v30, 0.0 }
 0x53e   :  { %v2482_v51 = vmax.f32 %v5993_v35, %v5992_v43  ;;  %v2489_v55 = vmax.f32 %v5996_v34, %v5994_v20  ;;  %v6001_v25 = vmax.f32 %v6000_v4, 0.0  ;;  %v2455_v44 = vrot.slane %v2454_v60, 4 }
 0x53f   :  { %v2496_v2 = vmax.f32 %v5998_v29, %v5997_v15  ;;  %v2462_v3 = vrot.slane %v2461_v9, 4  ;;  %v2469_v27 = vrot.slane %v2468_v8, 4  ;;  %v2476_v18 = vrot.slane %v2475_v53, 4 }
 0x540   :  { %v2503_v59 = vmax.f32 %v6001_v25, %v5999_v50  ;;  %v2483_v13 = vrot.slane %v2482_v51, 4  ;;  %v2490_v31 = vrot.slane %v2489_v55, 4  ;;  %v2456_v12 = vmax.f32 %v2454_v60, %v2455_v44 }
 0x541   :  { %v2497_v23 = vrot.slane %v2496_v2, 4  ;;  %v2463_v19 = vmax.f32 %v2461_v9, %v2462_v3  ;;  %v2470_v28 = vmax.f32 %v2468_v8, %v2469_v27  ;;  %v2477_v1 = vmax.f32 %v2475_v53, %v2476_v18  ;;  %v6002_v27 = vld [vmem:[#allocation13_spill] sm:$0xff] }
 0x542   :  { %v2504_v26 = vrot.slane %v2503_v59, 4  ;;  %v2484_v42 = vmax.f32 %v2482_v51, %v2483_v13  ;;  %v2491_v7 = vmax.f32 %v2489_v55, %v2490_v31  ;;  %v2457_v30 = vrot.slane %v2456_v12, 2  ;;  %v6004_v13 = vld [vmem:[#allocation10_spill] sm:$0xff] }
 0x543   :  { %v2498_v63 = vmax.f32 %v2496_v2, %v2497_v23  ;;  %v2464_v40 = vrot.slane %v2463_v19, 2  ;;  %v2471_v24 = vrot.slane %v2470_v28, 2  ;;  %v2478_v46 = vrot.slane %v2477_v1, 2 }
 0x544   :  { %v2505_v38 = vmax.f32 %v2503_v59, %v2504_v26  ;;  %v2485_v36 = vrot.slane %v2484_v42, 2  ;;  %v2492_v17 = vrot.slane %v2491_v7, 2  ;;  %v2458_v58 = vmax.f32 %v2456_v12, %v2457_v30  ;;  %v6006_v26 = vld [vmem:[#allocation15_spill] sm:$0xff] }
 0x545   :  { %v2499_v10 = vrot.slane %v2498_v63, 2  ;;  %v2465_v62 = vmax.f32 %v2463_v19, %v2464_v40  ;;  %v2472_v6 = vmax.f32 %v2470_v28, %v2471_v24  ;;  %v2479_v45 = vmax.f32 %v2477_v1, %v2478_v46  ;;  %v6008_v19 = vld [vmem:[#allocation12_spill] sm:$0xff]  ;;  %v6014_v40 = vld [vmem:[#allocation17_spill] sm:$0xff] }
 0x546   :  { %v2506_v49 = vrot.slane %v2505_v38, 2  ;;  %v2486_v60 = vmax.f32 %v2484_v42, %v2485_v36  ;;  %v2493_v9 = vmax.f32 %v2491_v7, %v2492_v17  ;;  %v2459_v43 = vrot.slane %v2458_v58, 1  ;;  %v6016_v36 = vld [vmem:[#allocation41_spill] sm:$0xff] }
 0x547   :  { %v2500_v8 = vmax.f32 %v2498_v63, %v2499_v10  ;;  %v2466_v35 = vrot.slane %v2465_v62, 1  ;;  %v2473_v51 = vrot.slane %v2472_v6, 1  ;;  %v2480_v20 = vrot.slane %v2479_v45, 1  ;;  %v6018_v10 = vld [vmem:[#allocation40_spill] sm:$0xff] }
 0x548   :  { %v2507_v53 = vmax.f32 %v2505_v38, %v2506_v49  ;;  %v2487_v57 = vrot.slane %v2486_v60, 1  ;;  %v2494_v34 = vrot.slane %v2493_v9, 1  ;;  %v5457_v29 = vmax.f32 %v2458_v58, %v2459_v43  ;;  %v6012_v38 = vld [vmem:[#allocation16_spill] sm:$0xff] }
 0x549   :  { %v2501_v55 = vrot.slane %v2500_v8, 1  ;;  %v5459_v2 = vmax.f32 %v2465_v62, %v2466_v35  ;;  %v5461_v50 = vmax.f32 %v2472_v6, %v2473_v51  ;;  %v5463_v4 = vmax.f32 %v2479_v45, %v2480_v20  ;;  %v6020_v62 = vld [vmem:[#allocation39_spill] sm:$0xff]  ;;  %v6022_v45 = vld [vmem:[#allocation44_spill] sm:$0xff]  ;;  %v6028_v35 = vld [vmem:[#allocation49_spill] sm:$0xff] }
 0x54a   :  { %v2508_v15 = vrot.slane %v2507_v53, 1  ;;  %v5465_v25 = vmax.f32 %v2486_v60, %v2487_v57  ;;  %v5467_v59 = vmax.f32 %v2493_v9, %v2494_v34  ;;  %v6003_v18 = vmax.f32 %v6002_v27, 0.0  ;;  %v6030_v20 = vld [vmem:[#allocation47_spill] sm:$0xff] }
 0x54b   :  { %v5469_v44 = vmax.f32 %v2500_v8, %v2501_v55  ;;  %v6005_v31 = vmax.f32 %v6004_v13, 0.0  ;;  %v6007_v12 = vmax.f32 %v6006_v26, 0.0  ;;  %v6009_v28 = vmax.f32 %v6008_v19, 0.0  ;;  %v6024_v8 = vld [vmem:[#allocation45_spill] sm:$0xff] }
 0x54c   :  { %v5471_v3 = vmax.f32 %v2507_v53, %v2508_v15  ;;  %v6010_v42 = vmax.f32 %v5955_v0, 0.0  ;;  %v6011_v7 = vmax.f32 %v5245_v16, 0.0  ;;  %v6013_v30 = vmax.f32 %v6012_v38, 0.0  ;;  %v6026_v53 = vld [vmem:[#allocation38_spill] sm:$0xff] }
 0x54d   :  { %v2510_v23 = vmax.f32 %v6005_v31, %v6003_v18  ;;  %v2517_v1 = vmax.f32 %v6009_v28, %v6007_v12  ;;  %v6015_v24 = vmax.f32 %v6014_v40, 0.0  ;;  %v6017_v17 = vmax.f32 %v6016_v36, 0.0 }
 0x54e   :  { %v2524_v63 = vmax.f32 %v6011_v7, %v6010_v42  ;;  %v6019_v49 = vmax.f32 %v6018_v10, 0.0  ;;  %v6021_v6 = vmax.f32 %v6020_v62, 0.0  ;;  %v6023_v60 = vmax.f32 %v6022_v45, 0.0 }
 0x54f   :  { %v2531_v46 = vmax.f32 %v6015_v24, %v6013_v30  ;;  %v6025_v0 = vmax.f32 %v6024_v8, 0.0  ;;  %v6027_v16 = vmax.f32 %v6026_v53, 0.0  ;;  %v6029_v51 = vmax.f32 %v6028_v35, 0.0 }
 0x550   :  { %v2538_v58 = vmax.f32 %v6019_v49, %v6017_v17  ;;  %v2545_v9 = vmax.f32 %v6023_v60, %v6021_v6  ;;  %v6031_v57 = vmax.f32 %v6030_v20, 0.0  ;;  %v2511_v55 = vrot.slane %v2510_v23, 4 }
 0x551   :  { %v2552_v43 = vmax.f32 %v6027_v16, %v6025_v0  ;;  %v2518_v15 = vrot.slane %v2517_v1, 4  ;;  %v2525_v27 = vrot.slane %v2524_v63, 4  ;;  %v2532_v18 = vrot.slane %v2531_v46, 4 }
 0x552   :  { %v2559_v34 = vmax.f32 %v6031_v57, %v6029_v51  ;;  %v2539_v13 = vrot.slane %v2538_v58, 4  ;;  %v2546_v31 = vrot.slane %v2545_v9, 4  ;;  %v2512_v19 = vmax.f32 %v2510_v23, %v2511_v55 }
 0x553   :  { %v2553_v26 = vrot.slane %v2552_v43, 4  ;;  %v2519_v28 = vmax.f32 %v2517_v1, %v2518_v15  ;;  %v2526_v42 = vmax.f32 %v2524_v63, %v2525_v27  ;;  %v2533_v7 = vmax.f32 %v2531_v46, %v2532_v18 }
 0x554   :  { %v2560_v12 = vrot.slane %v2559_v34, 4  ;;  %v2540_v38 = vmax.f32 %v2538_v58, %v2539_v13  ;;  %v2547_v30 = vmax.f32 %v2545_v9, %v2546_v31  ;;  %v2513_v36 = vrot.slane %v2512_v19, 2 }
 0x555   :  { %v2554_v40 = vmax.f32 %v2552_v43, %v2553_v26  ;;  %v2520_v17 = vrot.slane %v2519_v28, 2  ;;  %v2527_v10 = vrot.slane %v2526_v42, 2  ;;  %v2534_v49 = vrot.slane %v2533_v7, 2 }
 0x556   :  { %v2561_v24 = vmax.f32 %v2559_v34, %v2560_v12  ;;  %v2541_v62 = vrot.slane %v2540_v38, 2  ;;  %v2548_v6 = vrot.slane %v2547_v30, 2  ;;  %v2514_v23 = vmax.f32 %v2512_v19, %v2513_v36 }
 0x557   :  { %v2555_v45 = vrot.slane %v2554_v40, 2  ;;  %v2521_v1 = vmax.f32 %v2519_v28, %v2520_v17  ;;  %v2528_v63 = vmax.f32 %v2526_v42, %v2527_v10  ;;  %v2535_v46 = vmax.f32 %v2533_v7, %v2534_v49 }
 0x558   :  { %v2562_v60 = vrot.slane %v2561_v24, 2  ;;  %v2542_v58 = vmax.f32 %v2540_v38, %v2541_v62  ;;  %v2549_v9 = vmax.f32 %v2547_v30, %v2548_v6  ;;  %v2515_v53 = vrot.slane %v2514_v23, 1 }
 0x559   :  { %v2556_v8 = vmax.f32 %v2554_v40, %v2555_v45  ;;  %v2522_v16 = vrot.slane %v2521_v1, 1  ;;  %v2529_v43 = vrot.slane %v2528_v63, 1  ;;  %v2536_v35 = vrot.slane %v2535_v46, 1 }
 0x55a   :  { %v2563_v0 = vmax.f32 %v2561_v24, %v2562_v60  ;;  %v2543_v51 = vrot.slane %v2542_v58, 1  ;;  %v2550_v20 = vrot.slane %v2549_v9, 1  ;;  %v2516_v55 = vmax.f32 %v2514_v23, %v2515_v53 }
 0x55b   :  { %v2557_v57 = vrot.slane %v2556_v8, 1  ;;  %v2523_v15 = vmax.f32 %v2521_v1, %v2522_v16  ;;  %v2530_v27 = vmax.f32 %v2528_v63, %v2529_v43  ;;  %v2537_v18 = vmax.f32 %v2535_v46, %v2536_v35 }
 0x55c   :  { %v2564_v34 = vrot.slane %v2563_v0, 1  ;;  %v2544_v13 = vmax.f32 %v2542_v58, %v2543_v51  ;;  %v2551_v31 = vmax.f32 %v2549_v9, %v2550_v20  ;;  %v2599_v19 = vsel %vm2598_vm9, %v5363_v21, %v5361_v41 }
 0x55d   :  { %v2558_v26 = vmax.f32 %v2556_v8, %v2557_v57  ;;  %v2612_v28 = vsel %vm2598_vm9, %v5411_v54, %v5409_v61  ;;  %v2619_v42 = vsel %vm2598_vm9, %v5459_v2, %v5457_v29  ;;  %v2626_v7 = vsel %vm2598_vm9, %v2523_v15, %v2516_v55 }
 0x55e   :  { %v2565_v12 = vmax.f32 %v2563_v0, %v2564_v34  ;;  %v2601_v38 = vsel %vm2600_vm12, %v5365_v47, %v2599_v19  ;;  %v2613_v30 = vsel %vm2600_vm12, %v5413_v11, %v2612_v28  ;;  %v2620_v40 = vsel %vm2600_vm12, %v5461_v50, %v2619_v42 }
 0x55f   :  { %v2627_v41 = vsel %vm2600_vm12, %v2530_v27, %v2626_v7  ;;  %v2603_v21 = vsel %vm2602_vm13, %v5367_v56, %v2601_v38  ;;  %v2614_v61 = vsel %vm2602_vm13, %v5415_v14, %v2613_v30  ;;  %v2621_v54 = vsel %vm2602_vm13, %v5463_v4, %v2620_v40 }
 0x560   :  { %v2628_v29 = vsel %vm2602_vm13, %v2537_v18, %v2627_v41  ;;  %v2605_v47 = vsel %vm2604_vm14, %v5369_v48, %v2603_v21  ;;  %v2615_v11 = vsel %vm2604_vm14, %v5417_v5, %v2614_v61  ;;  %v2622_v2 = vsel %vm2604_vm14, %v5465_v25, %v2621_v54 }
 0x561   :  { %v2629_v50 = vsel %vm2604_vm14, %v2544_v13, %v2628_v29  ;;  %v2607_v56 = vsel %vm2606_vm15, %v5371_v33, %v2605_v47  ;;  %v2616_v14 = vsel %vm2606_vm15, %v5419_v32, %v2615_v11  ;;  %v2623_v4 = vsel %vm2606_vm15, %v5467_v59, %v2622_v2 }
 0x562   :  { %v2630_v24 = vsel %vm2606_vm15, %v2551_v31, %v2629_v50  ;;  %v2609_v48 = vsel %vm2608_vm0, %v5373_v52, %v2607_v56  ;;  %v2617_v5 = vsel %vm2608_vm0, %v5421_v39, %v2616_v14  ;;  %v2624_v25 = vsel %vm2608_vm0, %v5469_v44, %v2623_v4 }
 0x563   :  { %v2631_v36 = vsel %vm2608_vm0, %v2558_v26, %v2630_v24  ;;  %v2611_v33 = vsel %vm2610_vm1, %v5375_v37, %v2609_v48  ;;  %v2618_v32 = vsel %vm2610_vm1, %v5423_v22, %v2617_v5  ;;  %v2625_v59 = vsel %vm2610_vm1, %v5471_v3, %v2624_v25 }
 0x564   :  { %v2632_v17 = vsel %vm2610_vm1, %v2565_v12, %v2631_v36  ;;  %2637 = vst [vmem:[%s5576_s7] sm:$0xff] %v2611_v33  ;;  %2638 = vst [vmem:[%s5576_s7 + $0x8] sm:$0xff] %v2618_v32 }
 0x565   :  { %2639 = vst [vmem:[%s5576_s7 + $0x10] sm:$0xff] %v2625_v59  ;;  %2640 = vst [vmem:[%s5576_s7 + $0x18] sm:$0xff] %v2632_v17 }

</bundles_post_ra>
